<compile_context>
chip_gen: v5e
topology: v5e:2x2
jax: 0.10.0
libtpu: 0.0.40
codegen_flags: <defaults>
</compile_context>

<pallas_src>
import functools
import math

import jax
import jax.numpy as jnp
from jax.experimental import pallas as pl
from jax.experimental.pallas import tpu as pltpu

KH = KW = 4          # kernel size fixed by the module
NEG_SLOPE = 0.2
EPS = 1e-5


def _round_up(x, m):
    return ((x + m - 1) // m) * m


def _vmem_capacity_bytes():
    try:
        return int(pltpu.get_tpu_info().vmem_capacity_bytes)
    except Exception:
        return 64 * 1024 * 1024        # conservative (v7x-sized) fallback


def _conv_stats_kernel(*refs, stride, OW, OW_pad, R, R_pad, tr,
                       C_in, C_out, K_pack, n_x):
    """One tile: pack 16 taps -> single MXU matmul -> conv out + shifted BN partials."""
    x_refs = refs[:n_x]                 # 4*stride phase views, (tr, w_need, C_in) bf16
    w_ref = refs[n_x]                   # (K_pack, C_out) bf16 packed weight
    conv_ref = refs[n_x + 1]            # (tr*OW_pad, C_out) bf16 conv output block
    stat_ref = refs[n_x + 2]            # (1, 3, C_out) f32: [shifted sum, shifted sumsq, shift]
    patch_ref = refs[n_x + 3]           # VMEM scratch (tr, OW_pad, K_pack) bf16

    rows = tr * OW_pad
    KC = KH * KW * C_in

    # ---- pack the 16 taps into the patch scratch (bf16, no casts) ----------
    if K_pack > KC:                     # zero the padded K lanes (only when C_in is tiny)
        patch_ref[:, :, KC:] = jnp.zeros((tr, OW_pad, K_pack - KC), jnp.bfloat16)
    for kh in range(KH):
        for kw in range(KW):
            q, rem = divmod(kw, stride)
            off = (kh * KW + kw) * C_in
            patch_ref[:, :, off:off + C_in] = \
                x_refs[kh * stride + rem][:, q:q + OW_pad, :]

    # ---- single MXU matmul, K = 16*C_in (accumulation happens inside the MXU)
    # OW_pad % 16 == 0 and K_pack % 128 == 0 -> this reshape is a pure bf16-tile
    # regroup of the leading dims (no relayout).
    patch = patch_ref[...].reshape(rows, K_pack)
    acc = jnp.dot(patch, w_ref[...], preferred_element_type=jnp.float32)   # (rows, C_out) f32

    conv_ref[...] = acc.astype(conv_ref.dtype)

    # ---- shift-centered per-tile partial statistics -------------------------
    # shift = first conv row of this tile (always a valid output element);
    # Chan's parallel-variance combine across tiles happens in the wrapper.
    shift = acc[0:1, :]                                     # (1, C_out) f32
    d = acc - shift
    need_col = OW_pad != OW
    need_row = R_pad != R
    if need_col or need_row:
        ridx = jax.lax.broadcasted_iota(jnp.int32, (rows, 1), 0)
        valid = None
        if need_col:
            valid = (ridx % OW_pad) < OW
        if need_row:
            rmask = (pl.program_id(0) * tr + ridx // OW_pad) < R
            valid = rmask if valid is None else jnp.logical_and(valid, rmask)
        d = jnp.where(valid, d, 0.0)
    stat_ref[:, 0:1, :] = jnp.sum(d, axis=0, keepdims=True).reshape(1, 1, C_out)
    stat_ref[:, 1:2, :] = jnp.sum(d * d, axis=0, keepdims=True).reshape(1, 1, C_out)
    stat_ref[:, 2:3, :] = shift.reshape(1, 1, C_out)


def _bn_lrelu_kernel(x_ref, scale_ref, shift_ref, o_ref):
    """Fused BatchNorm affine + LeakyReLU(0.2) on lane-dense blocks."""
    y = x_ref[...].astype(jnp.float32) * scale_ref[...] + shift_ref[...]
    o_ref[...] = jnp.where(y >= 0.0, y, NEG_SLOPE * y)


def bloco_disc_forward(x_nchw, weight, gamma, beta, *, stride, eps=EPS,
                       target_rows=None):
    """Forward pass of Bloco_Disc. x_nchw: (N, C_in, H, W) f32 -> NCHW f32."""
    N, C_in, H, W = x_nchw.shape
    C_out = weight.shape[0]
    s = int(stride)

    # ---- glue: reflect padding (padding_mode='reflect', pad=1), NHWC --------
    x = jnp.transpose(x_nchw, (0, 2, 3, 1)).astype(jnp.float32)
    xp = jnp.pad(x, ((0, 0), (1, 1), (1, 1), (0, 0)), mode="reflect")
    HP, WP = H + 2, W + 2
    OH = (HP - KH) // s + 1
    OW = (WP - KW) // s + 1
    R = N * OH                          # output image-rows
    M = R * OW                          # BN element count per channel

    # ---- per-chip tiling / VMEM budgeting -----------------------------------
    cap = _vmem_capacity_bytes()
    vmem_limit = min(cap * 3 // 4, 96 * 1024 * 1024)
    if target_rows is None:
        target_rows = 2048 if cap >= (100 << 20) else 1024

    OW_pad = _round_up(OW, 16)          # bf16 sublane tile -> relayout-free reshapes
    L = math.lcm(C_out, 128)            # lane-dense width for the BN/LReLU pass
    g = L // C_out                      # conv rows folded per lane-dense row
    m = (8 * g) // math.gcd(OW_pad, 8 * g)     # tr granularity (keeps all blocks aligned)
    q_max = (KW - 1) // s
    w_need = q_max + OW_pad             # columns kept per phase view
    KC = KH * KW * C_in
    K_pack = _round_up(max(KC, 128), 128)
    n_x = KH * s

    def vmem_est(t):
        rows = t * OW_pad
        est = 2 * n_x * t * w_need * C_in * 2      # phase views (double-buffered)
        est += 2 * K_pack * C_out * 2              # packed weight
        est += 2 * rows * C_out * 2                # conv out block
        est += t * OW_pad * K_pack * 2 * 2         # patch scratch + its loaded value
        est += rows * C_out * 8                    # f32 accumulator / epilogue temps
        return est + (1 << 20)

    tr = max(m, (target_rows // OW_pad) // m * m)
    tr = min(tr, _round_up(R, m))
    while tr > m and vmem_est(tr) > vmem_limit - (2 << 20):
        tr -= m
    # best-effort: even tile count so the 'parallel' axis shards over v7x's 2 cores
    for cand in range(tr, max(m, tr // 2) - 1, -m):
        if (-(-R // cand)) % 2 == 0:
            tr = cand
            break
    n_tiles = -(-R // tr)
    R_pad = n_tiles * tr

    # ---- glue: 4*stride row/column phase views of the padded input (bf16) ---
    # (~(4/stride)x input bytes instead of a 16x materialized im2col)
    xs = []
    for kh in range(KH):
        xk = xp[:, kh:kh + s * (OH - 1) + 1:s, :, :]            # (N, OH, WP, C_in)
        for rem in range(s):
            xc = xk[:, :, rem::s, :][:, :, :w_need, :]          # (N, OH, ncols, C_in)
            ncols = xc.shape[2]
            xc = xc.reshape(R, ncols, C_in)
            xc = jnp.pad(xc, ((0, R_pad - R), (0, w_need - ncols), (0, 0)))
            xs.append(xc.astype(jnp.bfloat16))

    # packed weight: row (kh*4 + kw)*C_in + ci  ->  column co; K padded with zeros
    w_packed = jnp.transpose(weight, (2, 3, 1, 0)).reshape(KC, C_out)
    w_packed = jnp.pad(w_packed, ((0, K_pack - KC), (0, 0))).astype(jnp.bfloat16)

    kernel1 = functools.partial(
        _conv_stats_kernel, stride=s, OW=OW, OW_pad=OW_pad, R=R, R_pad=R_pad,
        tr=tr, C_in=C_in, C_out=C_out, K_pack=K_pack, n_x=n_x)

    # ---- Pallas kernel 1: packed conv matmul + per-tile shifted stats -------
    conv_flat, stats = pl.pallas_call(
        kernel1,
        out_shape=(
            jax.ShapeDtypeStruct((R_pad * OW_pad, C_out), jnp.bfloat16),
            jax.ShapeDtypeStruct((n_tiles, 3, C_out), jnp.float32),
        ),
        grid=(n_tiles,),
        in_specs=[pl.BlockSpec((tr, w_need, C_in), lambda i: (i, 0, 0))
                  for _ in range(n_x)]
                 + [pl.BlockSpec((K_pack, C_out), lambda i: (0, 0))],
        out_specs=(
            pl.BlockSpec((tr * OW_pad, C_out), lambda i: (i, 0)),
            pl.BlockSpec((1, 3, C_out), lambda i: (i, 0, 0)),
        ),
        scratch_shapes=[pltpu.VMEM((tr, OW_pad, K_pack), jnp.bfloat16)],
        compiler_params=pltpu.CompilerParams(
            dimension_semantics=("parallel",),
            vmem_limit_bytes=vmem_limit),
    )(*xs, w_packed)

    # ---- glue: Chan's parallel-variance combine of the per-tile partials ----
    counts = [min(tr, R - i * tr) * OW for i in range(n_tiles)]
    cnt = jnp.asarray(counts, jnp.float32)[:, None]             # (n_tiles, 1)
    ssum, ssq, sft = stats[:, 0, :], stats[:, 1, :], stats[:, 2, :]
    mu_t = sft + ssum / cnt                                     # per-tile means
    m2_t = jnp.maximum(ssq - ssum * ssum / cnt, 0.0)            # per-tile sum (x-mu_t)^2
    mean = jnp.sum(cnt * mu_t, axis=0) / M
    var = (jnp.sum(m2_t, axis=0) + jnp.sum(cnt * (mu_t - mean) ** 2, axis=0)) / M
    inv_std = jax.lax.rsqrt(var + eps)                          # biased var (BN train mode)
    scale = gamma.astype(jnp.float32) * inv_std
    shift_bn = beta.astype(jnp.float32) - mean * scale

    # ---- Pallas kernel 2: fused BN affine + LeakyReLU, lane-dense blocks ----
    rows2 = (R_pad * OW_pad) // g
    bm2 = (tr * OW_pad) // g
    n2 = rows2 // bm2
    blk_cap = (16 << 20) if cap >= (100 << 20) else (8 << 20)   # ~6 B/elem payload cap
    while n2 % 2 == 0 and (2 * bm2) * L * 6 <= blk_cap:
        bm2 *= 2
        n2 //= 2

    scale_row = jnp.tile(scale, g).reshape(1, L)                # lane l -> channel l % C_out
    shift_row = jnp.tile(shift_bn, g).reshape(1, L)

    out2 = pl.pallas_call(
        _bn_lrelu_kernel,
        out_shape=jax.ShapeDtypeStruct((rows2, L), jnp.float32),
        grid=(n2,),
        in_specs=[pl.BlockSpec((bm2, L), lambda i: (i, 0)),
                  pl.BlockSpec((1, L), lambda i: (0, 0)),
                  pl.BlockSpec((1, L), lambda i: (0, 0))],
        out_specs=pl.BlockSpec((bm2, L), lambda i: (i, 0)),
        compiler_params=pltpu.CompilerParams(
            dimension_semantics=("parallel",),
            vmem_limit_bytes=vmem_limit),
    )(conv_flat.reshape(rows2, L), scale_row, shift_row)

    # ---- glue: crop padding, back to NCHW (kept for module fidelity) --------
    out = out2.reshape(R_pad, OW_pad, C_out)[:R, :OW, :]
    out = out.reshape(N, OH, OW, C_out)
    return jnp.transpose(out, (0, 3, 1, 2))


def _reference(x_nchw, weight, gamma, beta, stride, eps=EPS):
    """Pure-XLA reference (f32) for a sanity check."""
    xpad = jnp.pad(x_nchw, ((0, 0), (0, 0), (1, 1), (1, 1)), mode="reflect")
    y = jax.lax.conv_general_dilated(
        xpad, weight, window_strides=(stride, stride), padding="VALID",
        dimension_numbers=("NCHW", "OIHW", "NCHW"))
    mean = jnp.mean(y, axis=(0, 2, 3), keepdims=True)
    var = jnp.var(y, axis=(0, 2, 3), keepdims=True)      # biased, train-mode BN
    yn = (y - mean) * jax.lax.rsqrt(var + eps)
    yn = gamma[None, :, None, None] * yn + beta[None, :, None, None]
    return jnp.where(yn >= 0, yn, NEG_SLOPE * yn)


if __name__ == "__main__":
    key = jax.random.PRNGKey(0)
    k_x, k_w, k_g, k_b = jax.random.split(key, 4)

    # Small shapes consistent with the module: Conv2d(4 -> 8, k=4, stride=2, pad=1)
    N, C_in, H, W = 2, 4, 16, 16
    C_out, stride = 8, 2

    x = jax.random.normal(k_x, (N, C_in, H, W), jnp.float32)
    weight = 0.1 * jax.random.normal(k_w, (C_out, C_in, 4, 4), jnp.float32)
    gamma = 1.0 + 0.1 * jax.random.normal(k_g, (C_out,), jnp.float32)
    beta = 0.1 * jax.random.normal(k_b, (C_out,), jnp.float32)

    fwd = jax.jit(functools.partial(bloco_disc_forward, stride=stride))
    out = jax.block_until_ready(fwd(x, weight, gamma, beta))
    assert out.shape == (N, C_out, H // stride, W // stride)

    # loose numerical sanity check (bf16 conv inputs/intermediate vs f32 ref)
    ref = _reference(x, weight, gamma, beta, stride)
    err = float(jnp.max(jnp.abs(out - ref)))
    assert err < 0.1, f"max abs error {err}"

    print("KERNEL_OK")
</pallas_src>

<mosaic_0001>
module attributes {stable_mosaic.version = 11 : i64} {
  func.func @_conv_stats_kernel(%arg0: i32, %arg1: memref<8x17x4xbf16, #tpu.memory_space<vmem>>, %arg2: memref<8x17x4xbf16, #tpu.memory_space<vmem>>, %arg3: memref<8x17x4xbf16, #tpu.memory_space<vmem>>, %arg4: memref<8x17x4xbf16, #tpu.memory_space<vmem>>, %arg5: memref<8x17x4xbf16, #tpu.memory_space<vmem>>, %arg6: memref<8x17x4xbf16, #tpu.memory_space<vmem>>, %arg7: memref<8x17x4xbf16, #tpu.memory_space<vmem>>, %arg8: memref<8x17x4xbf16, #tpu.memory_space<vmem>>, %arg9: memref<128x8xbf16, #tpu.memory_space<vmem>>, %arg10: memref<128x8xbf16, #tpu.memory_space<vmem>>, %arg11: memref<1x3x8xf32, #tpu.memory_space<vmem>>, %arg12: memref<8x16x128xbf16, #tpu.memory_space<vmem>>) attributes {dimension_semantics = [#tpu.dimension_semantics<parallel>], iteration_bounds = array<i64: 2>, scalar_prefetch = 0 : i64, scratch_operands = 1 : i64, tpu.core_type = #tpu.core_type<tc>, window_params = [{transform_indices = @transform_0, window_bounds = array<i64: 8, 17, 4>}, {transform_indices = @transform_1, window_bounds = array<i64: 8, 17, 4>}, {transform_indices = @transform_2, window_bounds = array<i64: 8, 17, 4>}, {transform_indices = @transform_3, window_bounds = array<i64: 8, 17, 4>}, {transform_indices = @transform_4, window_bounds = array<i64: 8, 17, 4>}, {transform_indices = @transform_5, window_bounds = array<i64: 8, 17, 4>}, {transform_indices = @transform_6, window_bounds = array<i64: 8, 17, 4>}, {transform_indices = @transform_7, window_bounds = array<i64: 8, 17, 4>}, {pipeline_mode = #tpu.pipeline_mode<synchronous>, transform_indices = @transform_8, window_bounds = array<i64: 128, 8>}, {transform_indices = @transform_9, window_bounds = array<i64: 128, 8>}, {transform_indices = @transform_10, window_bounds = array<i64: 1, 3, 8>}]} {
    %cst = arith.constant 0.000000e+00 : bf16
    %0 = vector.broadcast %cst : bf16 to vector<8x16x64xbf16>
    %c0 = arith.constant 0 : index
    %c0_0 = arith.constant 0 : index
    %c64 = arith.constant 64 : index
    %1 = vector.load %arg12[%c0, %c0_0, %c64] : memref<8x16x128xbf16, #tpu.memory_space<vmem>>, vector<8x16x64xbf16>
    tpu.vector_store %arg12[%c0, %c0_0, %c64], %0 {strides = array<i32>} : memref<8x16x128xbf16, #tpu.memory_space<vmem>>, vector<8x16x64xbf16>,
    %c0_1 = arith.constant 0 : index
    %c0_2 = arith.constant 0 : index
    %c0_3 = arith.constant 0 : index
    %2 = vector.load %arg1[%c0_1, %c0_2, %c0_3] : memref<8x17x4xbf16, #tpu.memory_space<vmem>>, vector<8x16x4xbf16>
    %c0_4 = arith.constant 0 : index
    %c0_5 = arith.constant 0 : index
    %c0_6 = arith.constant 0 : index
    %3 = vector.load %arg12[%c0_4, %c0_5, %c0_6] : memref<8x16x128xbf16, #tpu.memory_space<vmem>>, vector<8x16x4xbf16>
    tpu.vector_store %arg12[%c0_4, %c0_5, %c0_6], %2 {strides = array<i32>} : memref<8x16x128xbf16, #tpu.memory_space<vmem>>, vector<8x16x4xbf16>,
    %c0_7 = arith.constant 0 : index
    %c0_8 = arith.constant 0 : index
    %c0_9 = arith.constant 0 : index
    %4 = vector.load %arg2[%c0_7, %c0_8, %c0_9] : memref<8x17x4xbf16, #tpu.memory_space<vmem>>, vector<8x16x4xbf16>
    %c0_10 = arith.constant 0 : index
    %c0_11 = arith.constant 0 : index
    %c4 = arith.constant 4 : index
    %5 = vector.load %arg12[%c0_10, %c0_11, %c4] : memref<8x16x128xbf16, #tpu.memory_space<vmem>>, vector<8x16x4xbf16>
    tpu.vector_store %arg12[%c0_10, %c0_11, %c4], %4 {strides = array<i32>} : memref<8x16x128xbf16, #tpu.memory_space<vmem>>, vector<8x16x4xbf16>,
    %c0_12 = arith.constant 0 : index
    %c1 = arith.constant 1 : index
    %c0_13 = arith.constant 0 : index
    %6 = vector.load %arg1[%c0_12, %c1, %c0_13] : memref<8x17x4xbf16, #tpu.memory_space<vmem>>, vector<8x16x4xbf16>
    %c0_14 = arith.constant 0 : index
    %c0_15 = arith.constant 0 : index
    %c8 = arith.constant 8 : index
    %7 = vector.load %arg12[%c0_14, %c0_15, %c8] : memref<8x16x128xbf16, #tpu.memory_space<vmem>>, vector<8x16x4xbf16>
    tpu.vector_store %arg12[%c0_14, %c0_15, %c8], %6 {strides = array<i32>} : memref<8x16x128xbf16, #tpu.memory_space<vmem>>, vector<8x16x4xbf16>,
    %c0_16 = arith.constant 0 : index
    %c1_17 = arith.constant 1 : index
    %c0_18 = arith.constant 0 : index
    %8 = vector.load %arg2[%c0_16, %c1_17, %c0_18] : memref<8x17x4xbf16, #tpu.memory_space<vmem>>, vector<8x16x4xbf16>
    %c0_19 = arith.constant 0 : index
    %c0_20 = arith.constant 0 : index
    %c12 = arith.constant 12 : index
    %9 = vector.load %arg12[%c0_19, %c0_20, %c12] : memref<8x16x128xbf16, #tpu.memory_space<vmem>>, vector<8x16x4xbf16>
    tpu.vector_store %arg12[%c0_19, %c0_20, %c12], %8 {strides = array<i32>} : memref<8x16x128xbf16, #tpu.memory_space<vmem>>, vector<8x16x4xbf16>,
    %c0_21 = arith.constant 0 : index
    %c0_22 = arith.constant 0 : index
    %c0_23 = arith.constant 0 : index
    %10 = vector.load %arg3[%c0_21, %c0_22, %c0_23] : memref<8x17x4xbf16, #tpu.memory_space<vmem>>, vector<8x16x4xbf16>
    %c0_24 = arith.constant 0 : index
    %c0_25 = arith.constant 0 : index
    %c16 = arith.constant 16 : index
    %11 = vector.load %arg12[%c0_24, %c0_25, %c16] : memref<8x16x128xbf16, #tpu.memory_space<vmem>>, vector<8x16x4xbf16>
    tpu.vector_store %arg12[%c0_24, %c0_25, %c16], %10 {strides = array<i32>} : memref<8x16x128xbf16, #tpu.memory_space<vmem>>, vector<8x16x4xbf16>,
    %c0_26 = arith.constant 0 : index
    %c0_27 = arith.constant 0 : index
    %c0_28 = arith.constant 0 : index
    %12 = vector.load %arg4[%c0_26, %c0_27, %c0_28] : memref<8x17x4xbf16, #tpu.memory_space<vmem>>, vector<8x16x4xbf16>
    %c0_29 = arith.constant 0 : index
    %c0_30 = arith.constant 0 : index
    %c20 = arith.constant 20 : index
    %13 = vector.load %arg12[%c0_29, %c0_30, %c20] : memref<8x16x128xbf16, #tpu.memory_space<vmem>>, vector<8x16x4xbf16>
    tpu.vector_store %arg12[%c0_29, %c0_30, %c20], %12 {strides = array<i32>} : memref<8x16x128xbf16, #tpu.memory_space<vmem>>, vector<8x16x4xbf16>,
    %c0_31 = arith.constant 0 : index
    %c1_32 = arith.constant 1 : index
    %c0_33 = arith.constant 0 : index
    %14 = vector.load %arg3[%c0_31, %c1_32, %c0_33] : memref<8x17x4xbf16, #tpu.memory_space<vmem>>, vector<8x16x4xbf16>
    %c0_34 = arith.constant 0 : index
    %c0_35 = arith.constant 0 : index
    %c24 = arith.constant 24 : index
    %15 = vector.load %arg12[%c0_34, %c0_35, %c24] : memref<8x16x128xbf16, #tpu.memory_space<vmem>>, vector<8x16x4xbf16>
    tpu.vector_store %arg12[%c0_34, %c0_35, %c24], %14 {strides = array<i32>} : memref<8x16x128xbf16, #tpu.memory_space<vmem>>, vector<8x16x4xbf16>,
    %c0_36 = arith.constant 0 : index
    %c1_37 = arith.constant 1 : index
    %c0_38 = arith.constant 0 : index
    %16 = vector.load %arg4[%c0_36, %c1_37, %c0_38] : memref<8x17x4xbf16, #tpu.memory_space<vmem>>, vector<8x16x4xbf16>
    %c0_39 = arith.constant 0 : index
    %c0_40 = arith.constant 0 : index
    %c28 = arith.constant 28 : index
    %17 = vector.load %arg12[%c0_39, %c0_40, %c28] : memref<8x16x128xbf16, #tpu.memory_space<vmem>>, vector<8x16x4xbf16>
    tpu.vector_store %arg12[%c0_39, %c0_40, %c28], %16 {strides = array<i32>} : memref<8x16x128xbf16, #tpu.memory_space<vmem>>, vector<8x16x4xbf16>,
    %c0_41 = arith.constant 0 : index
    %c0_42 = arith.constant 0 : index
    %c0_43 = arith.constant 0 : index
    %18 = vector.load %arg5[%c0_41, %c0_42, %c0_43] : memref<8x17x4xbf16, #tpu.memory_space<vmem>>, vector<8x16x4xbf16>
    %c0_44 = arith.constant 0 : index
    %c0_45 = arith.constant 0 : index
    %c32 = arith.constant 32 : index
    %19 = vector.load %arg12[%c0_44, %c0_45, %c32] : memref<8x16x128xbf16, #tpu.memory_space<vmem>>, vector<8x16x4xbf16>
    tpu.vector_store %arg12[%c0_44, %c0_45, %c32], %18 {strides = array<i32>} : memref<8x16x128xbf16, #tpu.memory_space<vmem>>, vector<8x16x4xbf16>,
    %c0_46 = arith.constant 0 : index
    %c0_47 = arith.constant 0 : index
    %c0_48 = arith.constant 0 : index
    %20 = vector.load %arg6[%c0_46, %c0_47, %c0_48] : memref<8x17x4xbf16, #tpu.memory_space<vmem>>, vector<8x16x4xbf16>
    %c0_49 = arith.constant 0 : index
    %c0_50 = arith.constant 0 : index
    %c36 = arith.constant 36 : index
    %21 = vector.load %arg12[%c0_49, %c0_50, %c36] : memref<8x16x128xbf16, #tpu.memory_space<vmem>>, vector<8x16x4xbf16>
    tpu.vector_store %arg12[%c0_49, %c0_50, %c36], %20 {strides = array<i32>} : memref<8x16x128xbf16, #tpu.memory_space<vmem>>, vector<8x16x4xbf16>,
    %c0_51 = arith.constant 0 : index
    %c1_52 = arith.constant 1 : index
    %c0_53 = arith.constant 0 : index
    %22 = vector.load %arg5[%c0_51, %c1_52, %c0_53] : memref<8x17x4xbf16, #tpu.memory_space<vmem>>, vector<8x16x4xbf16>
    %c0_54 = arith.constant 0 : index
    %c0_55 = arith.constant 0 : index
    %c40 = arith.constant 40 : index
    %23 = vector.load %arg12[%c0_54, %c0_55, %c40] : memref<8x16x128xbf16, #tpu.memory_space<vmem>>, vector<8x16x4xbf16>
    tpu.vector_store %arg12[%c0_54, %c0_55, %c40], %22 {strides = array<i32>} : memref<8x16x128xbf16, #tpu.memory_space<vmem>>, vector<8x16x4xbf16>,
    %c0_56 = arith.constant 0 : index
    %c1_57 = arith.constant 1 : index
    %c0_58 = arith.constant 0 : index
    %24 = vector.load %arg6[%c0_56, %c1_57, %c0_58] : memref<8x17x4xbf16, #tpu.memory_space<vmem>>, vector<8x16x4xbf16>
    %c0_59 = arith.constant 0 : index
    %c0_60 = arith.constant 0 : index
    %c44 = arith.constant 44 : index
    %25 = vector.load %arg12[%c0_59, %c0_60, %c44] : memref<8x16x128xbf16, #tpu.memory_space<vmem>>, vector<8x16x4xbf16>
    tpu.vector_store %arg12[%c0_59, %c0_60, %c44], %24 {strides = array<i32>} : memref<8x16x128xbf16, #tpu.memory_space<vmem>>, vector<8x16x4xbf16>,
    %c0_61 = arith.constant 0 : index
    %c0_62 = arith.constant 0 : index
    %c0_63 = arith.constant 0 : index
    %26 = vector.load %arg7[%c0_61, %c0_62, %c0_63] : memref<8x17x4xbf16, #tpu.memory_space<vmem>>, vector<8x16x4xbf16>
    %c0_64 = arith.constant 0 : index
    %c0_65 = arith.constant 0 : index
    %c48 = arith.constant 48 : index
    %27 = vector.load %arg12[%c0_64, %c0_65, %c48] : memref<8x16x128xbf16, #tpu.memory_space<vmem>>, vector<8x16x4xbf16>
    tpu.vector_store %arg12[%c0_64, %c0_65, %c48], %26 {strides = array<i32>} : memref<8x16x128xbf16, #tpu.memory_space<vmem>>, vector<8x16x4xbf16>,
    %c0_66 = arith.constant 0 : index
    %c0_67 = arith.constant 0 : index
    %c0_68 = arith.constant 0 : index
    %28 = vector.load %arg8[%c0_66, %c0_67, %c0_68] : memref<8x17x4xbf16, #tpu.memory_space<vmem>>, vector<8x16x4xbf16>
    %c0_69 = arith.constant 0 : index
    %c0_70 = arith.constant 0 : index
    %c52 = arith.constant 52 : index
    %29 = vector.load %arg12[%c0_69, %c0_70, %c52] : memref<8x16x128xbf16, #tpu.memory_space<vmem>>, vector<8x16x4xbf16>
    tpu.vector_store %arg12[%c0_69, %c0_70, %c52], %28 {strides = array<i32>} : memref<8x16x128xbf16, #tpu.memory_space<vmem>>, vector<8x16x4xbf16>,
    %c0_71 = arith.constant 0 : index
    %c1_72 = arith.constant 1 : index
    %c0_73 = arith.constant 0 : index
    %30 = vector.load %arg7[%c0_71, %c1_72, %c0_73] : memref<8x17x4xbf16, #tpu.memory_space<vmem>>, vector<8x16x4xbf16>
    %c0_74 = arith.constant 0 : index
    %c0_75 = arith.constant 0 : index
    %c56 = arith.constant 56 : index
    %31 = vector.load %arg12[%c0_74, %c0_75, %c56] : memref<8x16x128xbf16, #tpu.memory_space<vmem>>, vector<8x16x4xbf16>
    tpu.vector_store %arg12[%c0_74, %c0_75, %c56], %30 {strides = array<i32>} : memref<8x16x128xbf16, #tpu.memory_space<vmem>>, vector<8x16x4xbf16>,
    %c0_76 = arith.constant 0 : index
    %c1_77 = arith.constant 1 : index
    %c0_78 = arith.constant 0 : index
    %32 = vector.load %arg8[%c0_76, %c1_77, %c0_78] : memref<8x17x4xbf16, #tpu.memory_space<vmem>>, vector<8x16x4xbf16>
    %c0_79 = arith.constant 0 : index
    %c0_80 = arith.constant 0 : index
    %c60 = arith.constant 60 : index
    %33 = vector.load %arg12[%c0_79, %c0_80, %c60] : memref<8x16x128xbf16, #tpu.memory_space<vmem>>, vector<8x16x4xbf16>
    tpu.vector_store %arg12[%c0_79, %c0_80, %c60], %32 {strides = array<i32>} : memref<8x16x128xbf16, #tpu.memory_space<vmem>>, vector<8x16x4xbf16>,
    %c0_81 = arith.constant 0 : index
    %c0_82 = arith.constant 0 : index
    %c0_83 = arith.constant 0 : index
    %34 = vector.load %arg12[%c0_81, %c0_82, %c0_83] : memref<8x16x128xbf16, #tpu.memory_space<vmem>>, vector<8x16x128xbf16>
    %35 = vector.shape_cast %34 : vector<8x16x128xbf16> to vector<128x128xbf16>
    %c0_84 = arith.constant 0 : index
    %c0_85 = arith.constant 0 : index
    %36 = vector.load %arg9[%c0_84, %c0_85] : memref<128x8xbf16, #tpu.memory_space<vmem>>, vector<128x8xbf16>
    %cst_86 = arith.constant dense<0.000000e+00> : vector<128x8xf32>
    %37 = tpu.matmul %35, %36, %cst_86 {dimension_numbers = #tpu.dot_dimension_numbers<[1], [0], [0], [1], [0, 0, 1, 1], [], []>} : vector<128x128xbf16>, vector<128x8xbf16>, vector<128x8xf32> -> vector<128x8xf32>
    %38 = arith.truncf %37 : vector<128x8xf32> to vector<128x8xbf16>
    %c0_87 = arith.constant 0 : index
    %c0_88 = arith.constant 0 : index
    %39 = vector.load %arg10[%c0_87, %c0_88] : memref<128x8xbf16, #tpu.memory_space<vmem>>, vector<128x8xbf16>
    tpu.vector_store %arg10[%c0_87, %c0_88], %38 {strides = array<i32>} : memref<128x8xbf16, #tpu.memory_space<vmem>>, vector<128x8xbf16>,
    %40 = vector.extract_strided_slice %37 {offsets = [0, 0], sizes = [1, 8], strides = [1, 1]} : vector<128x8xf32> to vector<1x8xf32>
    %41 = vector.broadcast %40 : vector<1x8xf32> to vector<128x8xf32>
    %42 = arith.subf %37, %41 : vector<128x8xf32>
    %43 = tpu.iota {dimensions = array<i32: 0>} : vector<128x1xi32>
    %c16_i32 = arith.constant 16 : i32
    %c0_i32 = arith.constant 0 : i32
    %44 = arith.cmpi eq, %c16_i32, %c0_i32 : i32
    %c1_i32 = arith.constant 1 : i32
    %45 = arith.select %44, %c1_i32, %c16_i32 : i32
    %46 = vector.broadcast %45 : i32 to vector<128x1xi32>
    %47 = arith.remsi %43, %46 : vector<128x1xi32>
    %c0_i32_89 = arith.constant 0 : i32
    %48 = vector.broadcast %c0_i32_89 : i32 to vector<128x1xi32>
    %49 = arith.cmpi ne, %47, %48 : vector<128x1xi32>
    %c0_i32_90 = arith.constant 0 : i32
    %50 = vector.broadcast %c0_i32_90 : i32 to vector<128x1xi32>
    %51 = arith.cmpi slt, %47, %50 : vector<128x1xi32>
    %c0_i32_91 = arith.constant 0 : i32
    %52 = arith.cmpi slt, %45, %c0_i32_91 : i32
    %53 = vector.broadcast %52 : i1 to vector<128x1xi1>
    %54 = vector.broadcast %53 : vector<128x1xi1> to vector<128x1xi1>
    %55 = arith.xori %51, %54 : vector<128x1xi1>
    %56 = arith.andi %55, %49 : vector<128x1xi1>
    %57 = vector.broadcast %45 : i32 to vector<128x1xi32>
    %58 = arith.addi %47, %57 : vector<128x1xi32>
    %59 = arith.select %56, %58, %47 : vector<128x1xi1>, vector<128x1xi32>
    %c8_i32 = arith.constant 8 : i32
    %60 = vector.broadcast %c8_i32 : i32 to vector<128x1xi32>
    %61 = arith.cmpi slt, %59, %60 : vector<128x1xi32>
    %cst_92 = arith.constant 0.000000e+00 : f32
    %62 = vector.shape_cast %61 : vector<128x1xi1> to vector<128x1xi1>
    %63 = vector.broadcast %62 : vector<128x1xi1> to vector<128x8xi1>
    %64 = vector.broadcast %cst_92 : f32 to vector<128x8xf32>
    %65 = arith.select %63, %42, %64 : vector<128x8xi1>, vector<128x8xf32>
    %cst_93 = arith.constant dense<0.000000e+00> : vector<8xf32>
    %66 = vector.multi_reduction <add>, %65, %cst_93 [0] : vector<128x8xf32> to vector<8xf32>
    %67 = vector.shape_cast %66 : vector<8xf32> to vector<1x8xf32>
    %68 = vector.shape_cast %67 : vector<1x8xf32> to vector<1x1x8xf32>
    %c0_94 = arith.constant 0 : index
    %c0_95 = arith.constant 0 : index
    %c0_96 = arith.constant 0 : index
    %69 = vector.load %arg11[%c0_94, %c0_95, %c0_96] : memref<1x3x8xf32, #tpu.memory_space<vmem>>, vector<1x1x8xf32>
    tpu.vector_store %arg11[%c0_94, %c0_95, %c0_96], %68 {strides = array<i32>} : memref<1x3x8xf32, #tpu.memory_space<vmem>>, vector<1x1x8xf32>,
    %70 = arith.mulf %65, %65 : vector<128x8xf32>
    %cst_97 = arith.constant dense<0.000000e+00> : vector<8xf32>
    %71 = vector.multi_reduction <add>, %70, %cst_97 [0] : vector<128x8xf32> to vector<8xf32>
    %72 = vector.shape_cast %71 : vector<8xf32> to vector<1x8xf32>
    %73 = vector.shape_cast %72 : vector<1x8xf32> to vector<1x1x8xf32>
    %c0_98 = arith.constant 0 : index
    %c1_99 = arith.constant 1 : index
    %c0_100 = arith.constant 0 : index
    %74 = vector.load %arg11[%c0_98, %c1_99, %c0_100] : memref<1x3x8xf32, #tpu.memory_space<vmem>>, vector<1x1x8xf32>
    tpu.vector_store %arg11[%c0_98, %c1_99, %c0_100], %73 {strides = array<i32>} : memref<1x3x8xf32, #tpu.memory_space<vmem>>, vector<1x1x8xf32>,
    %75 = vector.shape_cast %40 : vector<1x8xf32> to vector<1x1x8xf32>
    %c0_101 = arith.constant 0 : index
    %c2 = arith.constant 2 : index
    %c0_102 = arith.constant 0 : index
    %76 = vector.load %arg11[%c0_101, %c2, %c0_102] : memref<1x3x8xf32, #tpu.memory_space<vmem>>, vector<1x1x8xf32>
    tpu.vector_store %arg11[%c0_101, %c2, %c0_102], %75 {strides = array<i32>} : memref<1x3x8xf32, #tpu.memory_space<vmem>>, vector<1x1x8xf32>,
    return
  }
  func.func @transform_0(%arg0: i32) -> (i32, i32, i32) {
    %c0_i32 = arith.constant 0 : i32
    %c0_i32_0 = arith.constant 0 : i32
    %c0_i32_1 = arith.constant 0 : i32
    return %arg0, %c0_i32, %c0_i32_0 : i32, i32, i32
  }
  func.func @transform_1(%arg0: i32) -> (i32, i32, i32) {
    %c0_i32 = arith.constant 0 : i32
    %c0_i32_0 = arith.constant 0 : i32
    %c0_i32_1 = arith.constant 0 : i32
    return %arg0, %c0_i32, %c0_i32_0 : i32, i32, i32
  }
  func.func @transform_2(%arg0: i32) -> (i32, i32, i32) {
    %c0_i32 = arith.constant 0 : i32
    %c0_i32_0 = arith.constant 0 : i32
    %c0_i32_1 = arith.constant 0 : i32
    return %arg0, %c0_i32, %c0_i32_0 : i32, i32, i32
  }
  func.func @transform_3(%arg0: i32) -> (i32, i32, i32) {
    %c0_i32 = arith.constant 0 : i32
    %c0_i32_0 = arith.constant 0 : i32
    %c0_i32_1 = arith.constant 0 : i32
    return %arg0, %c0_i32, %c0_i32_0 : i32, i32, i32
  }
  func.func @transform_4(%arg0: i32) -> (i32, i32, i32) {
    %c0_i32 = arith.constant 0 : i32
    %c0_i32_0 = arith.constant 0 : i32
    %c0_i32_1 = arith.constant 0 : i32
    return %arg0, %c0_i32, %c0_i32_0 : i32, i32, i32
  }
  func.func @transform_5(%arg0: i32) -> (i32, i32, i32) {
    %c0_i32 = arith.constant 0 : i32
    %c0_i32_0 = arith.constant 0 : i32
    %c0_i32_1 = arith.constant 0 : i32
    return %arg0, %c0_i32, %c0_i32_0 : i32, i32, i32
  }
  func.func @transform_6(%arg0: i32) -> (i32, i32, i32) {
    %c0_i32 = arith.constant 0 : i32
    %c0_i32_0 = arith.constant 0 : i32
    %c0_i32_1 = arith.constant 0 : i32
    return %arg0, %c0_i32, %c0_i32_0 : i32, i32, i32
  }
  func.func @transform_7(%arg0: i32) -> (i32, i32, i32) {
    %c0_i32 = arith.constant 0 : i32
    %c0_i32_0 = arith.constant 0 : i32
    %c0_i32_1 = arith.constant 0 : i32
    return %arg0, %c0_i32, %c0_i32_0 : i32, i32, i32
  }
  func.func @transform_8(%arg0: i32) -> (i32, i32) {
    %c0_i32 = arith.constant 0 : i32
    %c0_i32_0 = arith.constant 0 : i32
    %c0_i32_1 = arith.constant 0 : i32
    return %c0_i32, %c0_i32_0 : i32, i32
  }
  func.func @transform_9(%arg0: i32) -> (i32, i32) {
    %c0_i32 = arith.constant 0 : i32
    %c0_i32_0 = arith.constant 0 : i32
    return %arg0, %c0_i32 : i32, i32
  }
  func.func @transform_10(%arg0: i32) -> (i32, i32, i32) {
    %c0_i32 = arith.constant 0 : i32
    %c0_i32_0 = arith.constant 0 : i32
    %c0_i32_1 = arith.constant 0 : i32
    return %arg0, %c0_i32, %c0_i32_0 : i32, i32, i32
  }
}

module attributes {stable_mosaic.version = 11 : i64} {
  func.func @_bn_lrelu_kernel(%arg0: i32, %arg1: memref<16x128xbf16, #tpu.memory_space<vmem>>, %arg2: memref<1x128xf32, #tpu.memory_space<vmem>>, %arg3: memref<1x128xf32, #tpu.memory_space<vmem>>, %arg4: memref<16x128xf32, #tpu.memory_space<vmem>>) attributes {dimension_semantics = [#tpu.dimension_semantics<parallel>], iteration_bounds = array<i64: 1>, scalar_prefetch = 0 : i64, scratch_operands = 0 : i64, tpu.core_type = #tpu.core_type<tc>, window_params = [{transform_indices = @transform_0, window_bounds = array<i64: 16, 128>}, {pipeline_mode = #tpu.pipeline_mode<synchronous>, transform_indices = @transform_1, window_bounds = array<i64: 1, 128>}, {pipeline_mode = #tpu.pipeline_mode<synchronous>, transform_indices = @transform_2, window_bounds = array<i64: 1, 128>}, {transform_indices = @transform_3, window_bounds = array<i64: 16, 128>}]} {
    %c0 = arith.constant 0 : index
    %c0_0 = arith.constant 0 : index
    %0 = vector.load %arg1[%c0, %c0_0] : memref<16x128xbf16, #tpu.memory_space<vmem>>, vector<16x128xbf16>
    %1 = arith.extf %0 : vector<16x128xbf16> to vector<16x128xf32>
    %c0_1 = arith.constant 0 : index
    %c0_2 = arith.constant 0 : index
    %2 = vector.load %arg2[%c0_1, %c0_2] : memref<1x128xf32, #tpu.memory_space<vmem>>, vector<1x128xf32>
    %3 = vector.broadcast %2 : vector<1x128xf32> to vector<16x128xf32>
    %4 = arith.mulf %1, %3 : vector<16x128xf32>
    %c0_3 = arith.constant 0 : index
    %c0_4 = arith.constant 0 : index
    %5 = vector.load %arg3[%c0_3, %c0_4] : memref<1x128xf32, #tpu.memory_space<vmem>>, vector<1x128xf32>
    %6 = vector.broadcast %5 : vector<1x128xf32> to vector<16x128xf32>
    %7 = arith.addf %4, %6 : vector<16x128xf32>
    %cst = arith.constant 0.000000e+00 : f32
    %8 = vector.broadcast %cst : f32 to vector<16x128xf32>
    %9 = arith.cmpf oge, %7, %8 : vector<16x128xf32>
    %cst_5 = arith.constant 2.000000e-01 : f32
    %10 = vector.broadcast %cst_5 : f32 to vector<16x128xf32>
    %11 = arith.mulf %10, %7 : vector<16x128xf32>
    %12 = arith.select %9, %7, %11 : vector<16x128xi1>, vector<16x128xf32>
    %c0_6 = arith.constant 0 : index
    %c0_7 = arith.constant 0 : index
    %13 = vector.load %arg4[%c0_6, %c0_7] : memref<16x128xf32, #tpu.memory_space<vmem>>, vector<16x128xf32>
    tpu.vector_store %arg4[%c0_6, %c0_7], %12 {strides = array<i32>} : memref<16x128xf32, #tpu.memory_space<vmem>>, vector<16x128xf32>,
    return
  }
  func.func @transform_0(%arg0: i32) -> (i32, i32) {
    %c0_i32 = arith.constant 0 : i32
    %c0_i32_0 = arith.constant 0 : i32
    return %arg0, %c0_i32 : i32, i32
  }
  func.func @transform_1(%arg0: i32) -> (i32, i32) {
    %c0_i32 = arith.constant 0 : i32
    %c0_i32_0 = arith.constant 0 : i32
    %c0_i32_1 = arith.constant 0 : i32
    return %c0_i32, %c0_i32_0 : i32, i32
  }
  func.func @transform_2(%arg0: i32) -> (i32, i32) {
    %c0_i32 = arith.constant 0 : i32
    %c0_i32_0 = arith.constant 0 : i32
    %c0_i32_1 = arith.constant 0 : i32
    return %c0_i32, %c0_i32_0 : i32, i32
  }
  func.func @transform_3(%arg0: i32) -> (i32, i32) {
    %c0_i32 = arith.constant 0 : i32
    %c0_i32_0 = arith.constant 0 : i32
    return %arg0, %c0_i32 : i32, i32
  }
}

</mosaic_0001>

<bundles_post_ra>
// kernel: tile.18
= control target key start
LH: loop header
LB: loop body
LE: loop exit
PB: predicated region body
PF: predicated region fallthrough
CT: control target
= control target key end

     0   :  { %s28_s0 = inlined_call_operand.vmem [shape: f32[8], index: 0, kind: input, shape index: {}]   ;;  %s29_s1 = inlined_call_operand.vmem [shape: f32[16,8], index: 1, kind: output, shape index: {}]  }
   0x1   :  { %v4_v0 = vld [vmem:[%s28_s0] ss:$0 sm:$0xff] }
   0x2   :  { %5 = vst [vmem:[%s29_s1] sm:$0xff] %v4_v0 }
   0x3   :  { %8 = vst [vmem:[%s29_s1 + $0x8] sm:$0xff] %v4_v0 }

// kernel: tile.19
= control target key start
LH: loop header
LB: loop body
LE: loop exit
PB: predicated region body
PF: predicated region fallthrough
CT: control target
= control target key end

     0   :  { %s131_s10 = smov 120   ;;  %s132_s11 = smov 104   ;;  %vm3_vm0 = vcmask 64512   ;;  %vm9_vm1 = vcmask 1048512   ;;  %vm15_vm2 = vcmask 982912   ;;  %vm21_vm3 = vcmask 917312   ;;  %s207_s0 = inlined_call_operand.vmem [shape: f32[16,8], index: 0, kind: input, shape index: {}]   ;;  %s208_s1 = inlined_call_operand.vmem [shape: f32[1,128], index: 1, kind: output, shape index: {}]  }
   0x1   :  { %v101_v0 = vld [vmem:[%s207_s0 + $0xf] sm:$0x1]   ;;  %v103_v1 = vld [vmem:[%s207_s0 + $0xd] sm:$0x1]   ;;  %v105_v2 = vld [vmem:[%s207_s0 + $0xb] sm:$0x1]  }
   0x2   :  { %7 = vrot.lane.b32.xlu0 %v101_v0, %s131_s10  ;;  %19 = vrot.lane.b32.xlu1 %v103_v1, %s132_s11  ;;  %s133_s14 = smov 88   ;;  %v102_v3 = vld [vmem:[%s207_s0 + $0xe] sm:$0x1]   ;;  %v104_v4 = vld [vmem:[%s207_s0 + $0xc] sm:$0x1]   ;;  %s134_s19 = smov 112  }
   0x3   :  { %31 = vrot.lane.b32.xlu2 %v105_v2, %s133_s14  ;;  %s135_s20 = smov 96   ;;  %v106_v5 = vld [vmem:[%s207_s0 + $0xa] sm:$0x1]   ;;  %s136_s23 = smov 80   ;;  %v107_v6 = vld [vmem:[%s207_s0 + $0x9] sm:$0x1]  }
   0x4   :  { %v108_v7 = vld [vmem:[%s207_s0 + $0x8] sm:$0x1]   ;;  %s137_s28 = smov 72   ;;  %s138_s29 = smov 64   ;;  %v109_v8 = vld [vmem:[%s207_s0 + $0x7] sm:$0x1]  }
   0x5   :  { %s139_s3 = smov 56   ;;  %v110_v9 = vld [vmem:[%s207_s0 + $0x6] sm:$0x1]   ;;  %v111_v10 = vld [vmem:[%s207_s0 + $0x5] sm:$0x1]   ;;  %s140_s8 = smov 48  }
   0x6   :  { %s141_s9 = smov 40   ;;  %v112_v11 = vld [vmem:[%s207_s0 + $0x4] sm:$0x1]   ;;  %s142_s12 = smov 32   ;;  %v113_v12 = vld [vmem:[%s207_s0 + $0x3] sm:$0x1]  }
   0x7   :  { %v114_v13 = vld [vmem:[%s207_s0 + $0x2] sm:$0x1]   ;;  %s143_s17 = smov 24   ;;  %s144_s18 = smov 16   ;;  %v115_v14 = vld [vmem:[%s207_s0 + $0x1] sm:$0x1]  }
   0x8   :  { %s145_s21 = smov 8   ;;  %v2_v15 = vld [vmem:[%s207_s0] sm:$0x1]   ;;  %vm27_vm4 = vcmask 851712   ;;  %vm33_vm5 = vcmask 786112   ;;  %vm39_vm6 = vcmask 720512  }
   0x9   :  { %4 = vst.msk [vmem:[#allocation0] sm:$0x1] %vm3_vm0, %v2_v15   ;;  %vm45_vm7 = vcmask 654912   ;;  %vm51_vm8 = vcmask 589312   ;;  %vm57_vm9 = vcmask 523712   ;;  %vm63_vm10 = vcmask 458112  }
   0xa   :  { %13 = vrot.lane.b32.xlu0 %v102_v3, %s134_s19  ;;  %25 = vrot.lane.b32.xlu1 %v104_v4, %s135_s20  ;;  %vm69_vm11 = vcmask 392512   ;;  %vm75_vm12 = vcmask 326912   ;;  %vm81_vm13 = vcmask 261312   ;;  %vm87_vm14 = vcmask 195712  }
   0xb   :  { %37 = vrot.lane.b32.xlu2 %v106_v5, %s136_s23  ;;  %vm93_vm15 = vcmask 130112  }
  0x12   :  { %43 = vrot.lane.b32.xlu0 %v107_v6, %s137_s28  ;;  %49 = vrot.lane.b32.xlu1 %v108_v7, %s138_s29 }
  0x13   :  { %55 = vrot.lane.b32.xlu2 %v109_v8, %s139_s3 }
  0x1a   :  { %61 = vrot.lane.b32.xlu0 %v110_v9, %s140_s8  ;;  %67 = vrot.lane.b32.xlu1 %v111_v10, %s141_s9 }
  0x1b   :  { %73 = vrot.lane.b32.xlu2 %v112_v11, %s142_s12 }
  0x22   :  { %79 = vrot.lane.b32.xlu0 %v113_v12, %s143_s17  ;;  %85 = vrot.lane.b32.xlu1 %v114_v13, %s144_s18 }
  0x23   :  { %91 = vrot.lane.b32.xlu2 %v115_v14, %s145_s21 }
  0x5d   :  { %v32_v16 = vpop.permute.xlu2 %31  }
  0x65   :  { %v38_v17 = vpop.permute.xlu2 %37  }
  0x6d   :  { %v56_v18 = vpop.permute.xlu2 %55  }
  0x74   :  { %v8_v19 = vpop.permute.xlu0 %7   ;;  %v20_v20 = vpop.permute.xlu1 %19  }
  0x75   :  { %10 = vst.msk [vmem:[#allocation0] sm:$0x1] %vm9_vm1, %v8_v19   ;;  %v74_v21 = vpop.permute.xlu2 %73  }
  0x7c   :  { %v14_v22 = vpop.permute.xlu0 %13   ;;  %v26_v23 = vpop.permute.xlu1 %25  }
  0x7d   :  { %16 = vst.msk [vmem:[#allocation0] sm:$0x1] %vm15_vm2, %v14_v22   ;;  %v92_v24 = vpop.permute.xlu2 %91  }
  0x7e   :  { %22 = vst.msk [vmem:[#allocation0] sm:$0x1] %vm21_vm3, %v20_v20  }
  0x7f   :  { %28 = vst.msk [vmem:[#allocation0] sm:$0x1] %vm27_vm4, %v26_v23  }
  0x80   :  { %34 = vst.msk [vmem:[#allocation0] sm:$0x1] %vm33_vm5, %v32_v16  }
  0x81   :  { %40 = vst.msk [vmem:[#allocation0] sm:$0x1] %vm39_vm6, %v38_v17  }
  0x84   :  { %v44_v25 = vpop.permute.xlu0 %43   ;;  %v50_v26 = vpop.permute.xlu1 %49  }
  0x85   :  { %46 = vst.msk [vmem:[#allocation0] sm:$0x1] %vm45_vm7, %v44_v25  }
  0x86   :  { %52 = vst.msk [vmem:[#allocation0] sm:$0x1] %vm51_vm8, %v50_v26  }
  0x87   :  { %58 = vst.msk [vmem:[#allocation0] sm:$0x1] %vm57_vm9, %v56_v18  }
  0x8c   :  { %v62_v27 = vpop.permute.xlu0 %61   ;;  %v68_v28 = vpop.permute.xlu1 %67  }
  0x8d   :  { %64 = vst.msk [vmem:[#allocation0] sm:$0x1] %vm63_vm10, %v62_v27  }
  0x8e   :  { %70 = vst.msk [vmem:[#allocation0] sm:$0x1] %vm69_vm11, %v68_v28  }
  0x8f   :  { %76 = vst.msk [vmem:[#allocation0] sm:$0x1] %vm75_vm12, %v74_v21  }
  0x94   :  { %v80_v29 = vpop.permute.xlu0 %79   ;;  %v86_v30 = vpop.permute.xlu1 %85  }
  0x95   :  { %82 = vst.msk [vmem:[#allocation0] sm:$0x1] %vm81_vm13, %v80_v29  }
  0x96   :  { %88 = vst.msk [vmem:[#allocation0] sm:$0x1] %vm87_vm14, %v86_v30  }
  0x97   :  { %94 = vst.msk [vmem:[#allocation0] sm:$0x1] %vm93_vm15, %v92_v24  }
  0x9e   :  { %v97_v31 = vld [vmem:[#allocation0] sm:$0x1] }
  0x9f   :  { %100 = vst [vmem:[%s208_s1] sm:$0x1] %v97_v31 }

// kernel: bloco_disc_forward.3
= control target key start
LH: loop header
LB: loop body
LE: loop exit
PB: predicated region body
PF: predicated region fallthrough
CT: control target
= control target key end

     0   :  { %s83_s0 = inlined_call_operand.vmem [shape: bf16[16,128], index: 0, kind: input, shape index: {}]   ;;  %s84_s1 = inlined_call_operand.vmem [shape: f32[1,128], index: 1, kind: input, shape index: {}]   ;;  %s85_s2 = inlined_call_operand.vmem [shape: f32[1,128], index: 2, kind: input, shape index: {}]   ;;  %s86_s3 = inlined_call_operand.vmem [shape: f32[16,128], index: 3, kind: output, shape index: {}]  }
   0x1   :  { %v43_v0 = vld [vmem:[%s83_s0] sm:$0xff]  }
   0x2   :  { %v46_v1 = vld [vmem:[%s84_s1] ss:$0 sm:$0xff]  ;;  %v44_v2 = vunpack.c.l.bf16 %v43_v0  ;;  %v45_v4 = vunpack.c.h.bf16 %v43_v0 }
   0x3   :  { %v47_v3 = vld [vmem:[%s85_s2] ss:$0 sm:$0xff] }
   0x4   :  { %v22_v5 = vmul.f32 %v46_v1, %v44_v2  ;;  %v23_v6 = vmul.f32 %v46_v1, %v45_v4 }
   0x6   :  { %v28_v7 = vadd.f32 %v47_v3, %v22_v5  ;;  %v29_v8 = vadd.f32 %v47_v3, %v23_v6 }
   0x8   :  { %vm30_vm0 = vcmp.ge.f32.partialorder %v28_v7, 0.0  ;;  %v32_v9 = vmul.f32 0.2, %v28_v7  ;;  %vm31_vm1 = vcmp.ge.f32.partialorder %v29_v8, 0.0  ;;  %v33_v10 = vmul.f32 0.2, %v29_v8 }
   0xa   :  { %v34_v11 = vsel %vm30_vm0, %v28_v7, %v32_v9  ;;  %v35_v12 = vsel %vm31_vm1, %v29_v8, %v33_v10 }
   0xb   :  { %36 = vst [vmem:[%s86_s3] sm:$0xff] %v34_v11 }
   0xc   :  { %37 = vst [vmem:[%s86_s3 + $0x8] sm:$0xff] %v35_v12 }

// kernel: bloco_disc_forward.2
= control target key start
LH: loop header
LB: loop body
LE: loop exit
PB: predicated region body
PF: predicated region fallthrough
CT: control target
= control target key end

     0   :  { %s4533_s13 = smov 0   ;;  %s5882_s0 = inlined_call_operand.vmem [shape: bf16[16,17,4], index: 0, kind: input, shape index: {}]   ;;  %s5883_s1 = inlined_call_operand.vmem [shape: bf16[16,17,4], index: 1, kind: input, shape index: {}]   ;;  %s5884_s2 = inlined_call_operand.vmem [shape: bf16[16,17,4], index: 2, kind: input, shape index: {}]   ;;  %s5885_s3 = inlined_call_operand.vmem [shape: bf16[16,17,4], index: 3, kind: input, shape index: {}]   ;;  %s5886_s4 = inlined_call_operand.vmem [shape: bf16[16,17,4], index: 4, kind: input, shape index: {}]   ;;  %s5887_s5 = inlined_call_operand.vmem [shape: bf16[16,17,4], index: 5, kind: input, shape index: {}]   ;;  %s5888_s6 = inlined_call_operand.vmem [shape: bf16[16,17,4], index: 6, kind: input, shape index: {}]   ;;  %s5889_s7 = inlined_call_operand.vmem [shape: bf16[16,17,4], index: 7, kind: input, shape index: {}]   ;;  %s5890_s8 = inlined_call_operand.vmem [shape: bf16[128,8], index: 8, kind: input, shape index: {}]   ;;  %s5891_s9 = inlined_call_operand.vmem [shape: bf16[256,8], index: 9, kind: output, shape index: {0}]   ;;  %s5892_s10 = inlined_call_operand.vmem [shape: f32[2,3,8], index: 10, kind: output, shape index: {1}]  }
   0x1 LB: > { %s4539_s14 = sadd.s32 4294967295, %s4460_s13   ;;  %p4303_p0 = scmp.ge.s32.totalorder %s4460_s13, 1  ;;  %s4460_s13 = sphi %s4533_s13, %s21_s13  }
   0x2   : > { %p401_p1 = scmp.lt.s32.totalorder %s4460_s13, 3 }
   0x4   : > { %p402_p2 = pnand %p4303_p0, %p401_p1 }
   0x5   : > { %s4304_s15 = sshll.u32 (!%p402_p2), %s4539_s14, 3  ;;  %s4462_s20 = smov (!%p402_p2), 4  }
   0x6   : > { %405 = sbr.rel (%p402_p2) target bundleno = 925 (0x39d), region = 56  ;;  %p487_p3 = scmp.lt.s32.totalorder (!%p402_p2), %s4304_s15, 15 }
   0x7   : > { %s4463_s24 = smov (!%p402_p2), 8   ;;  %s4465_s25 = smov (!%p402_p2), 12  }
   0x8   : > { %s4466_s29 = smov (!%p402_p2), 16   ;;  %s4468_s17 = smov (!%p402_p2), 24  }
   0x9   : > { %s4469_s18 = smov (!%p402_p2), 28   ;;  %s4470_s22 = smov (!%p402_p2), 32  }
   0xa   : > { %s4471_s26 = smov (!%p402_p2), 36   ;;  %s4472_s27 = smov (!%p402_p2), 40  }
   0xb   : > { %s5896_s15 = smov (!%p487_p3, %s4304_s15), 15  ;;  %vm724_vm0 = vsmask.f32 3328  ;;  %vm725_vm1 = vsmask.f32 7440  ;;  %vm553_vm3 = vcmask 1043968  }
   0xc   : > { %s4544_s16 = smul.u32 12, %s5896_s15  ;;  %vm4597_vm2 = vmor %vm724_vm0, %vm725_vm1  ;;  %vm586_vm4 = vcmask 27648   ;;  %vm683_vm5 = vcmask 60448   ;;  %vm967_vm6 = vcmask 93248   ;;  %s4467_s15 = smov 20   ;;  %vm1248_vm7 = vcmask 126048  }
   0xd   : > { %vm1345_vm8 = vcmask 158848   ;;  %vm1442_vm9 = vcmask 191648   ;;  %vm1723_vm10 = vcmask 224448   ;;  %vm2004_vm11 = vcmask 257248   ;;  %p548_p4 = scmp.lt.s32.totalorder %s4539_s14, 1 }
   0xe   : > { %s4550_s19 = scalar_lea.vmem %s5883_s1, %s4544_s16  ;;  %s4571_s23 = scalar_lea.vmem %s5882_s0, %s4544_s16  ;;  %vm2101_vm12 = vcmask 290048   ;;  %vm2198_vm13 = vcmask 322848   ;;  %vm2479_vm14 = vcmask 355648   ;;  %vm2760_vm15 = vcmask 388448  }
   0xf   : > { %v605_v0 = vld [vmem:[%s4550_s19 + $0xc] sm:$0xf]  ;;  %v603_v1 = vld [vmem:[%s4550_s19] sm:$0xf]  ;;  %v607_v2 = vld [vmem:[%s4550_s19 + $0x18] sm:$0xf]  ;;  %s4833_s28 = scalar_lea.vmem %s5884_s2, %s4544_s16  ;;  %s4886_s12 = scalar_lea.vmem %s5885_s3, %s4544_s16 }
  0x10   : > { %639 = vrot.lane.b32.xlu1 %v605_v0, %s4462_s20  ;;  %635 = vrot.lane.b32.xlu0 %v603_v1, %s4462_s20  ;;  %v606_v3 = vld [vmem:[%s4550_s19 + $0x10] sm:$0xf]  ;;  %v604_v4 = vld [vmem:[%s4550_s19 + $0x4] sm:$0xf]  ;;  %s5131_s21 = scalar_lea.vmem %s5886_s4, %s4544_s16  ;;  %s5379_s11 = scalar_lea.vmem %s5888_s6, %s4544_s16  ;;  %vm2857_vm0 = vcmask 421248   ;;  %vm2954_vm1 = vcmask 454048  }
  0x11   : > { %643 = vrot.lane.b32.xlu2 %v607_v2, %s4462_s20  ;;  %v608_v5 = vld [vmem:[%s4550_s19 + $0x1c] sm:$0xf]  ;;  %v610_v6 = vld [vmem:[%s4550_s19 + $0x28] sm:$0xf]  ;;  %v609_v7 = vld [vmem:[%s4550_s19 + $0x24] sm:$0xf] }
  0x12   : > { %v611_v8 = vld [vmem:[%s4550_s19 + $0x30] sm:$0xf]  ;;  %v700_v9 = vld [vmem:[%s4571_s23] sm:$0xf]  ;;  %v613_v10 = vld [vmem:[%s4550_s19 + $0x3c] sm:$0xf] }
  0x13   : > { %v612_v11 = vld [vmem:[%s4550_s19 + $0x34] sm:$0xf]  ;;  %v728_v12 = vshrl.u32 %v700_v9, 16  ;;  %v731_v13 = vshll.u32 %v700_v9, 16  ;;  %v701_v14 = vld [vmem:[%s4571_s23 + $0x4] sm:$0xf] }
  0x14   : > { %v741_v15 = vshrl.u32 %v701_v14, 16  ;;  %v614_v16 = vld [vmem:[%s4550_s19 + $0x40] sm:$0xf]  ;;  %v737_v19 = vshll.u32 %v701_v14, 16  ;;  %v703_v20 = vld [vmem:[%s4571_s23 + $0xc] sm:$0xf] }
  0x15   : > { %v730_v17 = vrot.slane %v728_v12, 4  ;;  %v733_v18 = vrot.slane %v731_v13, 5  ;;  %v704_v21 = vld [vmem:[%s4571_s23 + $0x10] sm:$0xf]  ;;  %v616_v23 = vld [vmem:[%s4550_s19 + $0x4c] sm:$0xf] }
  0x16   : > { %v743_v22 = vrot.slane %v741_v15, 4  ;;  %v752_v24 = vshrl.u32 %v703_v20, 16  ;;  %v755_v25 = vshll.u32 %v703_v20, 16  ;;  %v702_v26 = vld [vmem:[%s4571_s23 + $0x8] sm:$0x1]  ;;  %v739_v29 = vrot.slane %v737_v19, 5 }
  0x17   : > { %v615_v27 = vld [vmem:[%s4550_s19 + $0x48] sm:$0xf]  ;;  %v734_v28 = vor.u32 %v733_v18, %v730_v17  ;;  %v761_v30 = vshll.u32 %v704_v21, 16  ;;  %v765_v31 = vshrl.u32 %v704_v21, 16  ;;  %v706_v32 = vld [vmem:[%s4571_s23 + $0x18] sm:$0xf] }
  0x18   : > { %641 = vrot.lane.b32.xlu1 %v606_v3, %s4462_s20  ;;  %637 = vrot.lane.b32.xlu0 %v604_v4, %s4462_s20  ;;  %v617_v33 = vld [vmem:[%s4550_s19 + $0x54] sm:$0xf]  ;;  %v707_v34 = vld [vmem:[%s4571_s23 + $0x1c] sm:$0xf]  ;;  %v744_v35 = vor.u32 %v743_v22, %v739_v29  ;;  %v747_v36 = vshll.u32 %v702_v26, 16  ;;  %v754_v37 = vrot.slane %v752_v24, 4 }
  0x19   : > { %645 = vrot.lane.b32.xlu2 %v608_v5, %s4462_s20  ;;  %v757_v38 = vrot.slane %v755_v25, 5  ;;  %v776_v39 = vshrl.u32 %v706_v32, 16  ;;  %v779_v40 = vshll.u32 %v706_v32, 16  ;;  %v735_v41 = vrot.slane %v734_v28, 4  ;;  %v705_v43 = vld [vmem:[%s4571_s23 + $0x14] sm:$0x1] }
  0x1a   : > { %v763_v42 = vrot.slane %v761_v30, 5  ;;  %v767_v44 = vrot.slane %v765_v31, 4  ;;  %v785_v46 = vshll.u32 %v707_v34, 16  ;;  %v789_v47 = vshrl.u32 %v707_v34, 16  ;;  %v709_v48 = vld [vmem:[%s4571_s23 + $0x24] sm:$0xf] }
  0x1b   : > { %v745_v49 = vrot.slane %v744_v35, 4  ;;  %v749_v50 = vrot.slane %v747_v36, 5  ;;  %v778_v51 = vrot.slane %v776_v39, 4  ;;  %v781_v52 = vrot.slane %v779_v40, 5  ;;  %v618_v55 = vld [vmem:[%s4550_s19 + $0x58] sm:$0xf] }
  0x1c   : > { %v758_v53 = vor.u32 %v757_v38, %v754_v37  ;;  %v771_v54 = vshll.u32 %v705_v43, 16  ;;  %v740_v56 = vsel %vm4597_vm2, %v735_v41, %v739_v29  ;;  %v768_v57 = vor.u32 %v767_v44, %v763_v42  ;;  %v710_v62 = vld [vmem:[%s4571_s23 + $0x28] sm:$0xf]  ;;  %v708_v63 = vld [vmem:[%s4571_s23 + $0x20] sm:$0x1] }
  0x1d   : > { %v800_v58 = vshrl.u32 %v709_v48, 16  ;;  %v803_v59 = vshll.u32 %v709_v48, 16  ;;  %v787_v60 = vrot.slane %v785_v46, 5  ;;  %v791_v61 = vrot.slane %v789_v47, 4  ;;  %v712_v1 = vld [vmem:[%s4571_s23 + $0x30] sm:$0xf] }
  0x1e   : > { %v813_v0 = vshrl.u32 %v710_v62, 16  ;;  %v750_v2 = vsel %vm4597_vm2, %v745_v49, %v749_v50  ;;  %v782_v3 = vor.u32 %v781_v52, %v778_v51  ;;  %v759_v4 = vrot.slane %v758_v53, 4  ;;  %v711_v19 = vld [vmem:[%s4571_s23 + $0x2c] sm:$0x1]  ;;  %v714_v37 = vld [vmem:[%s4571_s23 + $0x38] sm:$0x1] }
  0x1f   : > { %v773_v5 = vrot.slane %v771_v54, 5  ;;  %v809_v9 = vshll.u32 %v710_v62, 16  ;;  %v795_v12 = vshll.u32 %v708_v63, 16  ;;  %v824_v13 = vshrl.u32 %v712_v1, 16  ;;  %v716_v38 = vld [vmem:[%s4571_s23 + $0x40] sm:$0xf] }
  0x20   : > { %649 = vrot.lane.b32.xlu1 %v610_v6, %s4462_s20  ;;  %647 = vrot.lane.b32.xlu0 %v609_v7, %s4462_s20  ;;  %v769_v6 = vrot.slane %v768_v57, 4  ;;  %v802_v7 = vrot.slane %v800_v58, 4  ;;  %v827_v14 = vshll.u32 %v712_v1, 16  ;;  %v783_v15 = vrot.slane %v782_v3, 4  ;;  %v718_v40 = vld [vmem:[%s4571_s23 + $0x48] sm:$0xf] }
  0x21   : > { %651 = vrot.lane.b32.xlu2 %v611_v8, %s4462_s20  ;;  %v805_v8 = vrot.slane %v803_v59, 5  ;;  %v764_v20 = vsel %vm4597_vm2, %v759_v4, %v763_v42  ;;  %v797_v25 = vrot.slane %v795_v12, 5  ;;  %v826_v26 = vrot.slane %v824_v13, 4  ;;  %v719_v54 = vld [vmem:[%s4571_s23 + $0x4c] sm:$0xf] }
  0x22   : > { %v774_v21 = vsel %vm4597_vm2, %v769_v6, %v773_v5  ;;  %v829_v28 = vrot.slane %v827_v14, 5  ;;  %v788_v29 = vsel %vm4597_vm2, %v783_v15, %v787_v60  ;;  %v819_v31 = vshll.u32 %v711_v19, 16  ;;  %v722_v57 = vld [vmem:[%s4571_s23 + $0x58] sm:$0xf]  ;;  %v720_v13 = vld [vmem:[%s4571_s23 + $0x50] sm:$0x1] }
  0x23   : > { %v806_v22 = vor.u32 %v805_v8, %v802_v7  ;;  %v843_v48 = vshll.u32 %v714_v37, 16  ;;  %v857_v49 = vshll.u32 %v716_v38, 16  ;;  %v861_v51 = vshrl.u32 %v716_v38, 16 }
  0x24   : > { %v821_v42 = vrot.slane %v819_v31, 5  ;;  %v830_v46 = vor.u32 %v829_v28, %v826_v26  ;;  %v872_v52 = vshrl.u32 %v718_v40, 16  ;;  %v875_v53 = vshll.u32 %v718_v40, 16 }
  0x25   : > { %v807_v36 = vrot.slane %v806_v22, 4  ;;  %v845_v62 = vrot.slane %v843_v48, 5  ;;  %v859_v63 = vrot.slane %v857_v49, 5  ;;  %v863_v1 = vrot.slane %v861_v51, 4  ;;  %v984_v22 = vld [vmem:[%s4550_s19] sm:$0xf] }
  0x26   : > { %v877_v3 = vrot.slane %v875_v53, 5  ;;  %v881_v4 = vshll.u32 %v719_v54, 16  ;;  %v905_v7 = vshll.u32 %v722_v57, 16  ;;  %v909_v8 = vshrl.u32 %v722_v57, 16  ;;  %v988_v51 = vld [vmem:[%s4550_s19 + $0x10] sm:$0xf] }
  0x27   : > { %v864_v15 = vor.u32 %v863_v1, %v859_v63  ;;  %v891_v26 = vshll.u32 %v720_v13, 16  ;;  %v1009_v28 = vshrl.u32 %v984_v22, 16 }
  0x28   : > { %655 = vrot.lane.b32.xlu1 %v613_v10, %s4462_s20  ;;  %653 = vrot.lane.b32.xlu0 %v612_v11, %s4462_s20  ;;  %v713_v10 = vld [vmem:[%s4571_s23 + $0x34] sm:$0xf]  ;;  %v792_v11 = vor.u32 %v791_v61, %v787_v60  ;;  %v831_v60 = vrot.slane %v830_v46, 4 }
  0x29   : > { %657 = vrot.lane.b32.xlu2 %v614_v16, %s4462_s20  ;;  %v815_v16 = vrot.slane %v813_v0, 4  ;;  %v833_v17 = vshll.u32 %v713_v10, 16  ;;  %v837_v18 = vshrl.u32 %v713_v10, 16  ;;  %v717_v0 = vld [vmem:[%s4571_s23 + $0x44] sm:$0x1]  ;;  %v893_v38 = vrot.slane %v891_v26, 5 }
  0x2a   : > { %v793_v24 = vrot.slane %v792_v11, 4  ;;  %v867_v12 = vshll.u32 %v717_v0, 16 }
  0x2b   : > { %v835_v32 = vrot.slane %v833_v17, 5  ;;  %v883_v17 = vrot.slane %v881_v4, 5 }
  0x2c   : > { %v798_v39 = vsel %vm4597_vm2, %v793_v24, %v797_v25 }
  0x2d   : > { %v836_v11 = vsel %vm4597_vm2, %v831_v60, %v835_v32 }
  0x30   : > { %661 = vrot.lane.b32.xlu1 %v616_v23, %s4462_s20  ;;  %659 = vrot.lane.b32.xlu0 %v615_v27, %s4462_s20  ;;  %v811_v23 = vrot.slane %v809_v9, 5  ;;  %v715_v27 = vld [vmem:[%s4571_s23 + $0x3c] sm:$0xf] }
  0x31   : > { %663 = vrot.lane.b32.xlu2 %v617_v33, %s4462_s20  ;;  %v839_v33 = vrot.slane %v837_v18, 4  ;;  %v848_v34 = vshrl.u32 %v715_v27, 16  ;;  %v851_v35 = vshll.u32 %v715_v27, 16  ;;  %v869_v27 = vrot.slane %v867_v12, 5 }
  0x32   : > { %v816_v30 = vor.u32 %v815_v16, %v811_v23  ;;  %v812_v50 = vsel %vm4597_vm2, %v807_v36, %v811_v23  ;;  %v723_v23 = vld [vmem:[%s4571_s23 + $0x5c] sm:$0x1] }
  0x33   : > { %v850_v43 = vrot.slane %v848_v34, 4  ;;  %v853_v44 = vrot.slane %v851_v35, 5  ;;  %v840_v47 = vor.u32 %v839_v33, %v835_v32  ;;  %v985_v32 = vld [vmem:[%s4550_s19 + $0x4] sm:$0xf]  ;;  %v987_v33 = vld [vmem:[%s4550_s19 + $0xc] sm:$0xf] }
  0x34   : > { %v817_v41 = vrot.slane %v816_v30, 4  ;;  %v865_v30 = vrot.slane %v864_v15, 4  ;;  %v915_v36 = vshll.u32 %v723_v23, 16  ;;  %v1036_v48 = vshll.u32 %v987_v33, 16 }
  0x35   : > { %v854_v59 = vor.u32 %v853_v44, %v850_v43  ;;  %v841_v61 = vrot.slane %v840_v47, 4  ;;  %v1033_v43 = vshrl.u32 %v987_v33, 16  ;;  %v986_v47 = vld [vmem:[%s4550_s19 + $0x8] sm:$0x1] }
  0x36   : > { %v822_v58 = vsel %vm4597_vm2, %v817_v41, %v821_v42  ;;  %v1018_v41 = vshll.u32 %v985_v32, 16  ;;  %v1022_v42 = vshrl.u32 %v985_v32, 16  ;;  %v870_v44 = vsel %vm4597_vm2, %v865_v30, %v869_v27  ;;  %v574_v27 = vld [vmem:[%s4571_s23 + $0x18] sm:$0xf] }
  0x37   : > { %v855_v9 = vrot.slane %v854_v59, 4  ;;  %v846_v14 = vsel %vm4597_vm2, %v841_v61, %v845_v62  ;;  %v1028_v60 = vshll.u32 %v986_v47, 16  ;;  %v1035_v61 = vrot.slane %v1033_v43, 4 }
  0x38   : > { %665 = vrot.lane.b32.xlu0 %v618_v55, %s4462_s20  ;;  %919 = vrot.lane.b32.xlu1 %v740_v56, %s4463_s24  ;;  %v885_v55 = vshrl.u32 %v719_v54, 16  ;;  %v721_v56 = vld [vmem:[%s4571_s23 + $0x54] sm:$0xf]  ;;  %v1046_v54 = vshrl.u32 %v988_v51, 16  ;;  %v1024_v59 = vrot.slane %v1022_v42, 4  ;;  %v1038_v62 = vrot.slane %v1036_v48, 5 }
  0x39   : > { %921 = vrot.lane.b32.xlu2 %v750_v2, %s4463_s24  ;;  %v874_v2 = vrot.slane %v872_v52, 4  ;;  %v896_v5 = vshrl.u32 %v721_v56, 16  ;;  %v899_v6 = vshll.u32 %v721_v56, 16  ;;  %v860_v24 = vsel %vm4597_vm2, %v855_v9, %v859_v63  ;;  %v990_v52 = vld [vmem:[%s4550_s19 + $0x18] sm:$0xf]  ;;  %s4477_s20 = smov 60  }
  0x3a   : > { %v887_v10 = vrot.slane %v885_v55, 4  ;;  %v991_v55 = vld [vmem:[%s4550_s19 + $0x1c] sm:$0xf]  ;;  %v1042_v63 = vshll.u32 %v988_v51, 16  ;;  %v1057_v0 = vshrl.u32 %v990_v52, 16  ;;  %v1060_v1 = vshll.u32 %v990_v52, 16 }
  0x3b   : > { %v878_v16 = vor.u32 %v877_v3, %v874_v2  ;;  %v898_v18 = vrot.slane %v896_v5, 4  ;;  %v901_v19 = vrot.slane %v899_v6, 5  ;;  %v1066_v2 = vshll.u32 %v991_v55, 16 }
  0x3c   : > { %v888_v25 = vor.u32 %v887_v10, %v883_v17  ;;  %v1070_v3 = vshrl.u32 %v991_v55, 16  ;;  %v1048_v5 = vrot.slane %v1046_v54, 4  ;;  %v1030_v9 = vrot.slane %v1028_v60, 5  ;;  %v994_v10 = vld [vmem:[%s4550_s19 + $0x28] sm:$0xf] }
  0x3d   : > { %v879_v31 = vrot.slane %v878_v16, 4  ;;  %v902_v34 = vor.u32 %v901_v19, %v898_v18  ;;  %v1039_v12 = vor.u32 %v1038_v62, %v1035_v61  ;;  %v1044_v13 = vrot.slane %v1042_v63, 5  ;;  %v996_v19 = vld [vmem:[%s4550_s19 + $0x30] sm:$0xf]  ;;  %v1000_v54 = vld [vmem:[%s4550_s19 + $0x40] sm:$0xf] }
  0x3e   : > { %v889_v37 = vrot.slane %v888_v25, 4  ;;  %v1062_v15 = vrot.slane %v1060_v1, 5  ;;  %v4679_v16 = vrot.slane %v1066_v2, 5  ;;  %v1072_v18 = vrot.slane %v1070_v3, 4  ;;  %v993_v25 = vld [vmem:[%s4550_s19 + $0x24] sm:$0xf] }
  0x3f   : > { %v884_v46 = vsel %vm4597_vm2, %v879_v31, %v883_v17  ;;  %v903_v49 = vrot.slane %v902_v34, 4  ;;  %v992_v17 = vld [vmem:[%s4550_s19 + $0x20] sm:$0x1]  ;;  %v1049_v23 = vor.u32 %v1048_v5, %v1044_v13  ;;  %v1094_v26 = vshrl.u32 %v994_v10, 16  ;;  %v1001_v5 = vld [vmem:[%s4550_s19 + $0x44] sm:$0x1] }
  0x40   : > { %923 = vrot.lane.b32.xlu0 %v764_v20, %s4463_s24  ;;  %925 = vrot.lane.b32.xlu1 %v774_v21, %s4463_s24  ;;  %v4647_v20 = vrot.slane %v905_v7, 5  ;;  %v911_v21 = vrot.slane %v909_v8, 4  ;;  %v894_v56 = vsel %vm4597_vm2, %v889_v37, %v893_v38  ;;  %v1105_v31 = vshrl.u32 %v996_v19, 16  ;;  %v995_v37 = vld [vmem:[%s4550_s19 + $0x2c] sm:$0x1] }
  0x41   : > { %927 = vrot.lane.b32.xlu2 %v788_v29, %s4463_s24  ;;  %v1012_v29 = vshll.u32 %v984_v22, 16  ;;  %v999_v22 = vld [vmem:[%s4550_s19 + $0x3c] sm:$0xf]  ;;  %v4464_v32 = vmov 0   ;;  %v1076_v33 = vshll.u32 %v992_v17, 16  ;;  %v1108_v34 = vshll.u32 %v996_v19, 16 }
  0x42   : > { %v912_v35 = vor.u32 %v911_v21, %v4647_v20  ;;  %v908_v6 = vsel %vm4597_vm2, %v903_v49, %v4647_v20  ;;  %v1090_v20 = vshll.u32 %v994_v10, 16  ;;  %558 = vst.msk [vmem:[#allocation2 + $0x10] sm:$0xf] %vm553_vm3, %v4464_v32  ;;  %v1132_v38 = vshll.u32 %v999_v22, 16  ;;  %v997_v49 = vld [vmem:[%s4550_s19 + $0x34] sm:$0xf] }
  0x43   : > { %v1014_v40 = vrot.slane %v1012_v29, 5  ;;  %v1040_v29 = vrot.slane %v1039_v12, 4  ;;  %591 = vst.msk [vmem:[#allocation2 + $0x10] sm:$0xf] %vm586_vm4, %v574_v27  ;;  %v1073_v42 = vor.u32 %v1072_v18, %v4679_v16  ;;  %v1110_v52 = vrot.slane %v1108_v34, 5 }
  0x44   : > { %v913_v53 = vrot.slane %v912_v35, 4  ;;  %v1129_v35 = vshrl.u32 %v999_v22, 16  ;;  %554 = vst.msk [vmem:[#allocation2] sm:$0xf] %vm553_vm3, %v4464_v32  ;;  %v4698_v43 = vrot.slane %v1090_v20, 5  ;;  %v1078_v61 = vrot.slane %v1076_v33, 5 }
  0x45   : > { %555 = vst.msk [vmem:[#allocation2 + $0x4] sm:$0xf] %vm553_vm3, %v4464_v32  ;;  %v1045_v48 = vsel %vm4597_vm2, %v1040_v29, %v1044_v13  ;;  %v1074_v60 = vrot.slane %v1073_v42, 4  ;;  %v1100_v62 = vshll.u32 %v995_v37, 16  ;;  %v1138_v1 = vshll.u32 %v1000_v54, 16 }
  0x46   : > { %556 = vst.msk [vmem:[#allocation2 + $0x8] sm:$0xf] %vm553_vm3, %v4464_v32  ;;  %v1131_v55 = vrot.slane %v1129_v35, 4  ;;  %v1142_v2 = vshrl.u32 %v1000_v54, 16  ;;  %v998_v12 = vld [vmem:[%s4550_s19 + $0x38] sm:$0x1] }
  0x47   : > { %557 = vst.msk [vmem:[#allocation2 + $0xc] sm:$0xf] %vm553_vm3, %v4464_v32  ;;  %v1102_v10 = vrot.slane %v1100_v62, 5  ;;  %v1148_v18 = vshll.u32 %v1001_v5, 16  ;;  %v1003_v19 = vld [vmem:[%s4550_s19 + $0x4c] sm:$0xf] }
  0x48   : > { %929 = vrot.lane.b32.xlu0 %v798_v39, %s4463_s24  ;;  %931 = vrot.lane.b32.xlu1 %v812_v50, %s4463_s24  ;;  %v1011_v39 = vrot.slane %v1009_v28, 4  ;;  %v917_v50 = vrot.slane %v915_v36, 5  ;;  %v1081_v36 = vshrl.u32 %v993_v25, 16  ;;  %559 = vst.msk [vmem:[#allocation2 + $0x14] sm:$0xf] %vm553_vm3, %v4464_v32  ;;  %v1144_v17 = vrot.slane %v1142_v2, 4 }
  0x49   : > { %933 = vrot.lane.b32.xlu2 %v822_v58, %s4463_s24  ;;  %v1020_v58 = vrot.slane %v1018_v41, 5  ;;  %v1084_v41 = vshll.u32 %v993_v25, 16  ;;  %560 = vst.msk [vmem:[#allocation2 + $0x18] sm:$0xf] %vm553_vm3, %v4464_v32  ;;  %v572_v25 = vld [vmem:[%s4571_s23 + $0xc] sm:$0xf] }
  0x4a   : > { %v1015_v57 = vor.u32 %v1014_v40, %v1011_v39  ;;  %v918_v7 = vsel %vm4597_vm2, %v913_v53, %v917_v50  ;;  %v1050_v39 = vrot.slane %v1049_v23, 4  ;;  %v1107_v50 = vrot.slane %v1105_v31, 4  ;;  %561 = vst.msk [vmem:[#allocation2 + $0x1c] sm:$0xf] %vm553_vm3, %v4464_v32  ;;  %v575_v34 = vld [vmem:[%s4571_s23 + $0x1c] sm:$0xf] }
  0x4b   : > { %v1025_v8 = vor.u32 %v1024_v59, %v1020_v58  ;;  %v1086_v51 = vrot.slane %v1084_v41, 5  ;;  %v1118_v53 = vshrl.u32 %v997_v49, 16  ;;  %562 = vst.msk [vmem:[#allocation2 + $0x20] sm:$0xf] %vm553_vm3, %v4464_v32  ;;  %v1124_v23 = vshll.u32 %v998_v12, 16 }
  0x4c   : > { %v1016_v4 = vrot.slane %v1015_v57, 4  ;;  %v1111_v3 = vor.u32 %v1110_v52, %v1107_v50  ;;  %563 = vst.msk [vmem:[#allocation2 + $0x24] sm:$0xf] %vm553_vm3, %v4464_v32  ;;  %v4761_v31 = vrot.slane %v1148_v18, 5  ;;  %v1162_v33 = vshll.u32 %v1003_v19, 16 }
  0x4d   : > { %v1026_v28 = vrot.slane %v1025_v8, 4  ;;  %564 = vst.msk [vmem:[#allocation2 + $0x28] sm:$0xf] %vm553_vm3, %v4464_v32  ;;  %v1007_v5 = vld [vmem:[%s4550_s19 + $0x5c] sm:$0x1] }
  0x4e   : > { %v1021_v21 = vsel %vm4597_vm2, %v1016_v4, %v1020_v58  ;;  %565 = vst.msk [vmem:[#allocation2 + $0x2c] sm:$0xf] %vm553_vm3, %v4464_v32  ;;  %v1164_v50 = vrot.slane %v1162_v33, 5  ;;  %v1196_v12 = vshll.u32 %v1007_v5, 16  ;;  %v1266_v33 = vld [vmem:[%s4833_s28 + $0x4] sm:$0xf] }
  0x4f   : > { %v1031_v47 = vsel %vm4597_vm2, %v1026_v28, %v1030_v9  ;;  %v1079_v9 = vsel %vm4597_vm2, %v1074_v60, %v1078_v61  ;;  %566 = vst.msk [vmem:[#allocation2 + $0x30] sm:$0xf] %vm553_vm3, %v4464_v32  ;;  %v570_v28 = vld [vmem:[%s4571_s23] sm:$0xf]  ;;  %v1004_v61 = vld [vmem:[%s4550_s19 + $0x50] sm:$0x1] }
  0x50   : > { %935 = vrot.lane.b32.xlu0 %v836_v11, %s4463_s24  ;;  %937 = vrot.lane.b32.xlu1 %v846_v14, %s4463_s24  ;;  %v989_v11 = vld [vmem:[%s4550_s19 + $0x14] sm:$0x1]  ;;  %v1059_v14 = vrot.slane %v1057_v0, 4  ;;  %v1114_v0 = vshll.u32 %v997_v49, 16  ;;  %567 = vst.msk [vmem:[#allocation2 + $0x34] sm:$0xf] %vm553_vm3, %v4464_v32 }
  0x51   : > { %939 = vrot.lane.b32.xlu2 %v860_v24, %s4463_s24  ;;  %v1052_v24 = vshll.u32 %v989_v11, 16  ;;  %568 = vst.msk [vmem:[#allocation2 + $0x38] sm:$0xf] %vm553_vm3, %v4464_v32  ;;  %v578_v49 = vld [vmem:[%s4571_s23 + $0x30] sm:$0xf] }
  0x52   : > { %v1063_v30 = vor.u32 %v1062_v15, %v1059_v14  ;;  %v1116_v14 = vrot.slane %v1114_v0, 5  ;;  %v4737_v15 = vrot.slane %v1138_v1, 5  ;;  %569 = vst.msk [vmem:[#allocation2 + $0x3c] sm:$0xf] %vm553_vm3, %v4464_v32  ;;  %v573_v32 = vld [vmem:[%s4571_s23 + $0x10] sm:$0xf] }
  0x53   : > { %v1054_v40 = vrot.slane %v1052_v24, 5  ;;  %v1002_v24 = vld [vmem:[%s4550_s19 + $0x48] sm:$0xf]  ;;  %589 = vst.msk [vmem:[#allocation2 + $0x8] sm:$0xf] %vm586_vm4, %v572_v25  ;;  %vm3235_vm3 = vcmask 486848  }
  0x54   : > { %v1064_v59 = vrot.slane %v1063_v30, 4  ;;  %v1145_v27 = vor.u32 %v1144_v17, %v4737_v15  ;;  %v1153_v29 = vshrl.u32 %v1002_v24, 16  ;;  %v1156_v30 = vshll.u32 %v1002_v24, 16  ;;  %587 = vst.msk [vmem:[#allocation2] sm:$0xf] %vm586_vm4, %v570_v28 }
  0x55   : > { %v1055_v57 = vsel %vm4597_vm2, %v1050_v39, %v1054_v40  ;;  %v1166_v39 = vshrl.u32 %v1003_v19, 16  ;;  %592 = vst.msk [vmem:[#allocation2 + $0x14] sm:$0xf] %vm586_vm4, %v575_v34  ;;  %v581_v60 = vld [vmem:[%s4571_s23 + $0x40] sm:$0xf] }
  0x56   : > { %v1069_v8 = vsel %vm4597_vm2, %v1064_v59, %v4679_v16  ;;  %v1112_v16 = vrot.slane %v1111_v3, 4  ;;  %v1155_v37 = vrot.slane %v1153_v29, 4  ;;  %590 = vst.msk [vmem:[#allocation2 + $0xc] sm:$0xf] %vm586_vm4, %v573_v32  ;;  %v585_v29 = vld [vmem:[%s4571_s23 + $0x58] sm:$0xf] }
  0x57   : > { %595 = vst.msk [vmem:[#allocation2 + $0x20] sm:$0xf] %vm586_vm4, %v578_v49  ;;  %v1267_v34 = vld [vmem:[%s4833_s28 + $0xc] sm:$0xf]  ;;  %v1365_v5 = vld [vmem:[%s4886_s12 + $0x10] sm:$0xf] }
  0x58   : > { %941 = vrot.lane.b32.xlu0 %v870_v44, %s4463_s24  ;;  %943 = vrot.lane.b32.xlu1 %v884_v46, %s4463_s24  ;;  %v1096_v44 = vrot.slane %v1094_v26, 4  ;;  %v1083_v46 = vrot.slane %v1081_v36, 4  ;;  %v1005_v26 = vld [vmem:[%s4550_s19 + $0x54] sm:$0xf]  ;;  %v1126_v36 = vrot.slane %v1124_v23, 5 }
  0x59   : > { %945 = vrot.lane.b32.xlu2 %v894_v56, %s4463_s24  ;;  %v1134_v56 = vrot.slane %v1132_v38, 5  ;;  %v1158_v38 = vrot.slane %v1156_v30, 5  ;;  %v1177_v40 = vshrl.u32 %v1005_v26, 16  ;;  %598 = vst.msk [vmem:[#allocation2 + $0x2c] sm:$0xf] %vm586_vm4, %v581_v60 }
  0x5a   : > { %v1087_v58 = vor.u32 %v1086_v51, %v1083_v46  ;;  %v1097_v63 = vor.u32 %v1096_v44, %v4698_v43  ;;  %v1146_v44 = vrot.slane %v1145_v27, 4  ;;  %v1180_v46 = vshll.u32 %v1005_v26, 16  ;;  %v582_v23 = vld [vmem:[%s4571_s23 + $0x48] sm:$0xf]  ;;  %602 = vst.msk [vmem:[#allocation2 + $0x3c] sm:$0xf] %vm586_vm4, %v585_v29 }
  0x5b   : > { %v1135_v4 = vor.u32 %v1134_v56, %v1131_v55  ;;  %v1159_v54 = vor.u32 %v1158_v38, %v1155_v37  ;;  %v1168_v55 = vrot.slane %v1166_v39, 4  ;;  %v1179_v56 = vrot.slane %v1177_v40, 4  ;;  %599 = vst.msk [vmem:[#allocation2 + $0x30] sm:$0xf] %vm586_vm4, %v582_v23  ;;  %v1268_v38 = vld [vmem:[%s4833_s28 + $0x10] sm:$0xf] }
  0x5c   : > { %v1098_v13 = vrot.slane %v1097_v63, 4  ;;  %v580_v63 = vld [vmem:[%s4571_s23 + $0x3c] sm:$0xf]  ;;  %v1151_v2 = vsel %vm4597_vm2, %v1146_v44, %v4761_v31  ;;  %v1265_v31 = vld [vmem:[%s4833_s28] sm:$0xf] }
  0x5d   : > { %v4743_v20 = vrot.slane %v1135_v4, 4  ;;  %v1160_v62 = vrot.slane %v1159_v54, 4  ;;  %v579_v4 = vld [vmem:[%s4571_s23 + $0x34] sm:$0xf]  ;;  %597 = vst.msk [vmem:[#allocation2 + $0x28] sm:$0xf] %vm586_vm4, %v580_v63 }
  0x5e   : > { %v1103_v42 = vsel %vm4597_vm2, %v1098_v13, %v1102_v10  ;;  %596 = vst.msk [vmem:[#allocation2 + $0x24] sm:$0xf] %vm586_vm4, %v579_v4  ;;  %v584_v13 = vld [vmem:[%s4571_s23 + $0x54] sm:$0xf]  ;;  %v1269_v39 = vld [vmem:[%s4833_s28 + $0x18] sm:$0xf] }
  0x5f   : > { %v1141_v1 = vsel %vm4597_vm2, %v4743_v20, %v4737_v15  ;;  %v1165_v10 = vsel %vm4597_vm2, %v1160_v62, %v1164_v50  ;;  %601 = vst.msk [vmem:[#allocation2 + $0x38] sm:$0xf] %vm586_vm4, %v584_v13  ;;  %v1198_v20 = vrot.slane %v1196_v12, 5  ;;  %v1270_v40 = vld [vmem:[%s4833_s28 + $0x1c] sm:$0xf] }
  0x60   : > { %947 = vrot.lane.b32.xlu0 %v908_v6, %s4463_s24  ;;  %949 = vrot.lane.b32.xlu1 %v918_v7, %s4463_s24  ;;  %v1088_v6 = vrot.slane %v1087_v58, 4  ;;  %v1120_v7 = vrot.slane %v1118_v53, 4  ;;  %v577_v53 = vld [vmem:[%s4571_s23 + $0x28] sm:$0xf]  ;;  %v1182_v58 = vrot.slane %v1180_v46, 5 }
  0x61   : > { %1200 = vrot.lane.b32.xlu2 %v1021_v21, %s4465_s25  ;;  %594 = vst.msk [vmem:[#allocation2 + $0x1c] sm:$0xf] %vm586_vm4, %v577_v53  ;;  %v1272_v44 = vld [vmem:[%s4833_s28 + $0x28] sm:$0xf]  ;;  %v1273_v46 = vld [vmem:[%s4833_s28 + $0x30] sm:$0xf] }
  0x62   : > { %v1093_v21 = vsel %vm4597_vm2, %v1088_v6, %v4698_v43  ;;  %v1121_v22 = vor.u32 %v1120_v7, %v1116_v14  ;;  %v1117_v43 = vsel %vm4597_vm2, %v1112_v16, %v1116_v14  ;;  %v1169_v6 = vor.u32 %v1168_v55, %v1164_v50  ;;  %v1274_v50 = vld [vmem:[%s4833_s28 + $0x34] sm:$0xf]  ;;  %v1280_v62 = vld [vmem:[%s4833_s28 + $0x58] sm:$0xf]  ;;  %v1362_v63 = vld [vmem:[%s4886_s12] sm:$0xf] }
  0x63   : > { %v1172_v7 = vshll.u32 %v1004_v61, 16  ;;  %v1364_v4 = vld [vmem:[%s4886_s12 + $0xc] sm:$0xf]  ;;  %v1369_v12 = vld [vmem:[%s4886_s12 + $0x28] sm:$0xf] }
  0x64   : > { %v1122_v35 = vrot.slane %v1121_v22, 4  ;;  %v1170_v14 = vrot.slane %v1169_v6, 4  ;;  %v1366_v6 = vld [vmem:[%s4886_s12 + $0x18] sm:$0xf] }
  0x65   : > { %v1174_v15 = vrot.slane %v1172_v7, 5 }
  0x66   : > { %v1127_v52 = vsel %vm4597_vm2, %v1122_v35, %v1126_v36 }
  0x67   : > { %v1175_v24 = vsel %vm4597_vm2, %v1170_v14, %v1174_v15 }
  0x68   : > { %1202 = vrot.lane.b32.xlu0 %v1031_v47, %s4465_s25  ;;  %1204 = vrot.lane.b32.xlu1 %v1045_v48, %s4465_s25  ;;  %v571_v47 = vld [vmem:[%s4571_s23 + $0x4] sm:$0xf]  ;;  %v1006_v48 = vld [vmem:[%s4550_s19 + $0x58] sm:$0xf]  ;;  %s4476_s19 = smov 56  }
  0x69   : > { %1206 = vrot.lane.b32.xlu2 %v1055_v57, %s4465_s25  ;;  %v1190_v51 = vshrl.u32 %v1006_v48, 16  ;;  %588 = vst.msk [vmem:[#allocation2 + $0x4] sm:$0xf] %vm586_vm4, %v571_v47  ;;  %v576_v57 = vld [vmem:[%s4571_s23 + $0x24] sm:$0xf]  ;;  %v1186_v59 = vshll.u32 %v1006_v48, 16 }
  0x6a   : > { %593 = vst.msk [vmem:[#allocation2 + $0x18] sm:$0xf] %vm586_vm4, %v576_v57  ;;  %v1278_v57 = vld [vmem:[%s4833_s28 + $0x4c] sm:$0xf] }
  0x6b   : > { %v644_v11 = vpop.permute.xlu2 %643  ;;  %v1192_v0 = vrot.slane %v1190_v51, 4  ;;  %v1275_v51 = vld [vmem:[%s4833_s28 + $0x3c] sm:$0xf] }
  0x6c   : > { %688 = vst.msk [vmem:[#allocation2 + $0x10] sm:$0xf] %vm683_vm5, %v644_v11 }
  0x70   : > { %1208 = vrot.lane.b32.xlu0 %v1069_v8, %s4465_s25  ;;  %1210 = vrot.lane.b32.xlu1 %v1079_v9, %s4465_s25  ;;  %v1183_v8 = vor.u32 %v1182_v58, %v1179_v56  ;;  %v1188_v9 = vrot.slane %v1186_v59, 5  ;;  %v1277_v56 = vld [vmem:[%s4833_s28 + $0x48] sm:$0xf]  ;;  %v1279_v58 = vld [vmem:[%s4833_s28 + $0x54] sm:$0xf] }
  0x71   : > { %1212 = vrot.lane.b32.xlu2 %v1093_v21, %s4465_s25  ;;  %v583_v21 = vld [vmem:[%s4571_s23 + $0x4c] sm:$0xf] }
  0x72   : > { %v1193_v11 = vor.u32 %v1192_v0, %v1188_v9  ;;  %v1184_v17 = vrot.slane %v1183_v8, 4  ;;  %600 = vst.msk [vmem:[#allocation2 + $0x34] sm:$0xf] %vm586_vm4, %v583_v21  ;;  %v1363_v0 = vld [vmem:[%s4886_s12 + $0x4] sm:$0xf]  ;;  %vm3516_vm4 = vcmask 519648  }
  0x73   : > { %v646_v41 = vpop.permute.xlu2 %645 }
  0x74   : > { %689 = vst.msk [vmem:[#allocation2 + $0x14] sm:$0xf] %vm683_vm5, %v646_v41  ;;  %v1194_v19 = vrot.slane %v1193_v11, 4  ;;  %v1189_v25 = vsel %vm4597_vm2, %v1184_v17, %v1188_v9  ;;  %v1368_v11 = vld [vmem:[%s4886_s12 + $0x24] sm:$0xf] }
  0x75   : > { %v1370_v17 = vld [vmem:[%s4886_s12 + $0x30] sm:$0xf] }
  0x76   : > { %v1199_v26 = vsel %vm4597_vm2, %v1194_v19, %v1198_v20  ;;  %v1459_v19 = vld [vmem:[%s4833_s28] sm:$0xf]  ;;  %v1460_v20 = vld [vmem:[%s4833_s28 + $0x4] sm:$0xf] }
  0x77   : > { %v1484_v21 = vshrl.u32 %v1459_v19, 16  ;;  %v1487_v23 = vshll.u32 %v1459_v19, 16 }
  0x78   : > { %1214 = vrot.lane.b32.xlu0 %v1103_v42, %s4465_s25  ;;  %1216 = vrot.lane.b32.xlu1 %v1117_v43, %s4465_s25  ;;  %v1271_v43 = vld [vmem:[%s4833_s28 + $0x24] sm:$0xf] }
  0x79   : > { %1218 = vrot.lane.b32.xlu2 %v1127_v52, %s4465_s25  ;;  %v1276_v52 = vld [vmem:[%s4833_s28 + $0x40] sm:$0xf]  ;;  %v1489_v29 = vrot.slane %v1487_v23, 5 }
  0x7b   : > { %v652_v3 = vpop.permute.xlu2 %651 }
  0x7c   : > { %692 = vst.msk [vmem:[#allocation2 + $0x20] sm:$0xf] %vm683_vm5, %v652_v3 }
  0x80   : > { %1220 = vrot.lane.b32.xlu0 %v1141_v1, %s4465_s25  ;;  %1222 = vrot.lane.b32.xlu1 %v1151_v2, %s4465_s25 }
  0x81   : > { %1224 = vrot.lane.b32.xlu2 %v1165_v10, %s4465_s25  ;;  %v1367_v10 = vld [vmem:[%s4886_s12 + $0x1c] sm:$0xf] }
  0x82   : > { %v640_v16 = vpop.permute.xlu1 %639  ;;  %v636_v18 = vpop.permute.xlu0 %635 }
  0x83   : > { %686 = vst.msk [vmem:[#allocation2 + $0x8] sm:$0xf] %vm683_vm5, %v640_v16  ;;  %v658_v22 = vpop.permute.xlu2 %657  ;;  %v1371_v16 = vld [vmem:[%s4886_s12 + $0x34] sm:$0xf] }
  0x84   : > { %684 = vst.msk [vmem:[#allocation2] sm:$0xf] %vm683_vm5, %v636_v18  ;;  %v1372_v18 = vld [vmem:[%s4886_s12 + $0x3c] sm:$0xf] }
  0x85   : > { %695 = vst.msk [vmem:[#allocation2 + $0x2c] sm:$0xf] %vm683_vm5, %v658_v22  ;;  %v1462_v22 = vld [vmem:[%s4833_s28 + $0xc] sm:$0xf] }
  0x88   : > { %1226 = vrot.lane.b32.xlu0 %v1175_v24, %s4465_s25  ;;  %1228 = vrot.lane.b32.xlu1 %v1189_v25, %s4465_s25 }
  0x89   : > { %1230 = vrot.lane.b32.xlu2 %v1199_v26, %s4465_s25  ;;  %v1493_v26 = vshll.u32 %v1460_v20, 16  ;;  %s5189_s25 = scalar_lea.vmem %s5887_s5, %s4544_s16 }
  0x8a   : > { %v642_v27 = vpop.permute.xlu1 %641  ;;  %v638_v28 = vpop.permute.xlu0 %637 }
  0x8b   : > { %687 = vst.msk [vmem:[#allocation2 + $0xc] sm:$0xf] %vm683_vm5, %v642_v27  ;;  %v664_v30 = vpop.permute.xlu2 %663  ;;  %v1497_v27 = vshrl.u32 %v1460_v20, 16 }
  0x8c   : > { %685 = vst.msk [vmem:[#allocation2 + $0x4] sm:$0xf] %vm683_vm5, %v638_v28  ;;  %v1486_v28 = vrot.slane %v1484_v21, 4 }
  0x8d   : > { %698 = vst.msk [vmem:[#allocation2 + $0x38] sm:$0xf] %vm683_vm5, %v664_v30  ;;  %v1508_v30 = vshrl.u32 %v1462_v22, 16 }
  0x90   : > { %1297 = vrot.lane.b32.xlu0 %v1265_v31, %s4466_s29  ;;  %1299 = vrot.lane.b32.xlu1 %v1266_v33, %s4466_s29  ;;  %v1511_v31 = vshll.u32 %v1462_v22, 16 }
  0x91   : > { %1301 = vrot.lane.b32.xlu2 %v1267_v34, %s4466_s29  ;;  %v1373_v34 = vld [vmem:[%s4886_s12 + $0x40] sm:$0xf] }
  0x92   : > { %v650_v35 = vpop.permute.xlu1 %649  ;;  %v648_v36 = vpop.permute.xlu0 %647 }
  0x93   : > { %691 = vst.msk [vmem:[#allocation2 + $0x1c] sm:$0xf] %vm683_vm5, %v650_v35  ;;  %v922_v37 = vpop.permute.xlu2 %921  ;;  %v1374_v35 = vld [vmem:[%s4886_s12 + $0x48] sm:$0xf] }
  0x94   : > { %690 = vst.msk [vmem:[#allocation2 + $0x18] sm:$0xf] %vm683_vm5, %v648_v36  ;;  %v1463_v36 = vld [vmem:[%s4833_s28 + $0x10] sm:$0xf] }
  0x95   : > { %969 = vst.msk [vmem:[#allocation2 + $0x4] sm:$0xf] %vm967_vm6, %v922_v37  ;;  %v1495_v37 = vrot.slane %v1493_v26, 5 }
  0x98   : > { %1303 = vrot.lane.b32.xlu0 %v1268_v38, %s4466_s29  ;;  %1305 = vrot.lane.b32.xlu1 %v1269_v39, %s4466_s29  ;;  %v1499_v38 = vrot.slane %v1497_v27, 4  ;;  %v1521_v39 = vshrl.u32 %v1463_v36, 16 }
  0x99   : > { %1307 = vrot.lane.b32.xlu2 %v1270_v40, %s4466_s29  ;;  %v1375_v40 = vld [vmem:[%s4886_s12 + $0x4c] sm:$0xf] }
  0x9a   : > { %v656_v41 = vpop.permute.xlu1 %655  ;;  %v654_v32 = vpop.permute.xlu0 %653 }
  0x9b   : > { %694 = vst.msk [vmem:[#allocation2 + $0x28] sm:$0xf] %vm683_vm5, %v656_v41  ;;  %v928_v42 = vpop.permute.xlu2 %927  ;;  %v1490_v41 = vor.u32 %v1489_v29, %v1486_v28 }
  0x9c   : > { %693 = vst.msk [vmem:[#allocation2 + $0x24] sm:$0xf] %vm683_vm5, %v654_v32  ;;  %v1461_v32 = vld [vmem:[%s4833_s28 + $0x8] sm:$0x1] }
  0x9d   : > { %972 = vst.msk [vmem:[#allocation2 + $0x10] sm:$0xf] %vm967_vm6, %v928_v42  ;;  %v1510_v42 = vrot.slane %v1508_v30, 4 }
  0xa0   : > { %1309 = vrot.lane.b32.xlu0 %v1271_v43, %s4466_s29  ;;  %1311 = vrot.lane.b32.xlu1 %v1272_v44, %s4466_s29  ;;  %v1513_v43 = vrot.slane %v1511_v31, 5  ;;  %v1517_v44 = vshll.u32 %v1463_v36, 16 }
  0xa1   : > { %1313 = vrot.lane.b32.xlu2 %v1273_v46, %s4466_s29  ;;  %v1465_v46 = vld [vmem:[%s4833_s28 + $0x18] sm:$0xf] }
  0xa2   : > { %v662_v47 = vpop.permute.xlu1 %661  ;;  %v660_v48 = vpop.permute.xlu0 %659 }
  0xa3   : > { %697 = vst.msk [vmem:[#allocation2 + $0x34] sm:$0xf] %vm683_vm5, %v662_v47  ;;  %v934_v49 = vpop.permute.xlu2 %933 }
  0xa4   : > { %696 = vst.msk [vmem:[#allocation2 + $0x30] sm:$0xf] %vm683_vm5, %v660_v48 }
  0xa5   : > { %975 = vst.msk [vmem:[#allocation2 + $0x1c] sm:$0xf] %vm967_vm6, %v934_v49  ;;  %v1466_v49 = vld [vmem:[%s4833_s28 + $0x1c] sm:$0xf] }
  0xa8   : > { %1315 = vrot.lane.b32.xlu0 %v1274_v50, %s4466_s29  ;;  %1317 = vrot.lane.b32.xlu1 %v1275_v51, %s4466_s29  ;;  %v1376_v50 = vld [vmem:[%s4886_s12 + $0x54] sm:$0xf]  ;;  %v1377_v51 = vld [vmem:[%s4886_s12 + $0x58] sm:$0xf] }
  0xa9   : > { %1319 = vrot.lane.b32.xlu2 %v1276_v52, %s4466_s29  ;;  %v1500_v52 = vor.u32 %v1499_v38, %v1495_v37 }
  0xaa   : > { %v666_v53 = vpop.permute.xlu0 %665  ;;  %v920_v54 = vpop.permute.xlu1 %919 }
  0xab   : > { %699 = vst.msk [vmem:[#allocation2 + $0x3c] sm:$0xf] %vm683_vm5, %v666_v53  ;;  %v940_v55 = vpop.permute.xlu2 %939  ;;  %v1503_v53 = vshll.u32 %v1461_v32, 16  ;;  %vm3726_vm5 = vcmask 60416  }
  0xac   : > { %968 = vst.msk [vmem:[#allocation2] sm:$0xf] %vm967_vm6, %v920_v54  ;;  %v1491_v54 = vrot.slane %v1490_v41, 4 }
  0xad   : > { %978 = vst.msk [vmem:[#allocation2 + $0x28] sm:$0xf] %vm967_vm6, %v940_v55  ;;  %v1523_v55 = vrot.slane %v1521_v39, 4 }
  0xb0   : > { %1321 = vrot.lane.b32.xlu0 %v1277_v56, %s4466_s29  ;;  %1323 = vrot.lane.b32.xlu1 %v1278_v57, %s4466_s29  ;;  %v1514_v56 = vor.u32 %v1513_v43, %v1510_v42  ;;  %v1532_v57 = vshrl.u32 %v1465_v46, 16 }
  0xb1   : > { %1325 = vrot.lane.b32.xlu2 %v1279_v58, %s4466_s29  ;;  %v1535_v58 = vshll.u32 %v1465_v46, 16 }
  0xb2   : > { %v924_v59 = vpop.permute.xlu0 %923  ;;  %v926_v60 = vpop.permute.xlu1 %925 }
  0xb3   : > { %970 = vst.msk [vmem:[#allocation2 + $0x8] sm:$0xf] %vm967_vm6, %v924_v59  ;;  %v946_v61 = vpop.permute.xlu2 %945 }
  0xb4   : > { %971 = vst.msk [vmem:[#allocation2 + $0xc] sm:$0xf] %vm967_vm6, %v926_v60  ;;  %v1464_v60 = vld [vmem:[%s4833_s28 + $0x14] sm:$0x1] }
  0xb5   : > { %981 = vst.msk [vmem:[#allocation2 + $0x34] sm:$0xf] %vm967_vm6, %v946_v61  ;;  %v1519_v61 = vrot.slane %v1517_v44, 5 }
  0xb8   : > { %1327 = vrot.lane.b32.xlu0 %v1280_v62, %s4466_s29  ;;  %1394 = vrot.lane.b32.xlu1 %v1362_v63, %s4467_s15  ;;  %v1541_v62 = vshll.u32 %v1466_v49, 16  ;;  %v1545_v63 = vshrl.u32 %v1466_v49, 16 }
  0xb9   : > { %1396 = vrot.lane.b32.xlu2 %v1363_v0, %s4467_s15  ;;  %v1501_v0 = vrot.slane %v1500_v52, 4 }
  0xba   : > { %v930_v1 = vpop.permute.xlu0 %929  ;;  %v932_v2 = vpop.permute.xlu1 %931 }
  0xbb   : > { %973 = vst.msk [vmem:[#allocation2 + $0x14] sm:$0xf] %vm967_vm6, %v930_v1  ;;  %v1201_v3 = vpop.permute.xlu2 %1200  ;;  %v1469_v1 = vld [vmem:[%s4833_s28 + $0x28] sm:$0xf] }
  0xbc   : > { %974 = vst.msk [vmem:[#allocation2 + $0x18] sm:$0xf] %vm967_vm6, %v932_v2  ;;  %v1496_v2 = vsel %vm4597_vm2, %v1491_v54, %v1495_v37  ;;  %v1569_v19 = vshrl.u32 %v1469_v1, 16  ;;  %v1474_v37 = vld [vmem:[%s4833_s28 + $0x3c] sm:$0xf] }
  0xbd   : > { %1249 = vst.msk [vmem:[#allocation2] sm:$0xf] %vm1248_vm7, %v1201_v3  ;;  %v1524_v3 = vor.u32 %v1523_v55, %v1519_v61 }
  0xbf   : > { %v1525_v20 = vrot.slane %v1524_v3, 4 }
  0xc0   : > { %1398 = vrot.lane.b32.xlu0 %v1364_v4, %s4467_s15  ;;  %1400 = vrot.lane.b32.xlu1 %v1365_v5, %s4467_s15  ;;  %v1527_v4 = vshll.u32 %v1464_v60, 16  ;;  %v1468_v5 = vld [vmem:[%s4833_s28 + $0x24] sm:$0xf]  ;;  %v1473_v60 = vld [vmem:[%s4833_s28 + $0x38] sm:$0x1] }
  0xc1   : > { %1402 = vrot.lane.b32.xlu2 %v1366_v6, %s4467_s15  ;;  %v1505_v6 = vrot.slane %v1503_v53, 5 }
  0xc2   : > { %v936_v7 = vpop.permute.xlu0 %935  ;;  %v938_v8 = vpop.permute.xlu1 %937  ;;  %v1529_v21 = vrot.slane %v1527_v4, 5 }
  0xc3   : > { %976 = vst.msk [vmem:[#allocation2 + $0x20] sm:$0xf] %vm967_vm6, %v936_v7  ;;  %v1207_v9 = vpop.permute.xlu2 %1206  ;;  %v1515_v7 = vrot.slane %v1514_v56, 4  ;;  %v1506_v23 = vsel %vm4597_vm2, %v1501_v0, %v1505_v6  ;;  %v1477_v6 = vld [vmem:[%s4833_s28 + $0x48] sm:$0xf] }
  0xc4   : > { %977 = vst.msk [vmem:[#allocation2 + $0x24] sm:$0xf] %vm967_vm6, %v938_v8  ;;  %v1534_v8 = vrot.slane %v1532_v57, 4  ;;  %v1530_v38 = vsel %vm4597_vm2, %v1525_v20, %v1529_v21 }
  0xc5   : > { %1252 = vst.msk [vmem:[#allocation2 + $0xc] sm:$0xf] %vm1248_vm7, %v1207_v9  ;;  %v1537_v9 = vrot.slane %v1535_v58, 5  ;;  %v1520_v28 = vsel %vm4597_vm2, %v1515_v7, %v1519_v61 }
  0xc7   : > { %v1538_v29 = vor.u32 %v1537_v9, %v1534_v8 }
  0xc8   : > { %1404 = vrot.lane.b32.xlu0 %v1367_v10, %s4467_s15  ;;  %1406 = vrot.lane.b32.xlu1 %v1368_v11, %s4467_s15  ;;  %v4953_v10 = vrot.slane %v1541_v62, 5  ;;  %v1547_v11 = vrot.slane %v1545_v63, 4 }
  0xc9   : > { %1408 = vrot.lane.b32.xlu2 %v1369_v12, %s4467_s15  ;;  %v1471_v12 = vld [vmem:[%s4833_s28 + $0x30] sm:$0xf]  ;;  %v1539_v42 = vrot.slane %v1538_v29, 4 }
  0xca   : > { %v942_v13 = vpop.permute.xlu0 %941  ;;  %v944_v14 = vpop.permute.xlu1 %943  ;;  %v1548_v30 = vor.u32 %v1547_v11, %v4953_v10  ;;  %v1478_v11 = vld [vmem:[%s4833_s28 + $0x4c] sm:$0xf] }
  0xcb   : > { %979 = vst.msk [vmem:[#allocation2 + $0x2c] sm:$0xf] %vm967_vm6, %v942_v13  ;;  %v1213_v15 = vpop.permute.xlu2 %1212  ;;  %v1556_v13 = vshrl.u32 %v1468_v5, 16  ;;  %v1544_v61 = vsel %vm4597_vm2, %v1539_v42, %v4953_v10 }
  0xcc   : > { %980 = vst.msk [vmem:[#allocation2 + $0x30] sm:$0xf] %vm967_vm6, %v944_v14  ;;  %v1559_v14 = vshll.u32 %v1468_v5, 16  ;;  %v1549_v43 = vrot.slane %v1548_v30, 4  ;;  %v1599_v5 = vshll.u32 %v1473_v60, 16 }
  0xcd   : > { %1255 = vst.msk [vmem:[#allocation2 + $0x18] sm:$0xf] %vm1248_vm7, %v1213_v15  ;;  %v1558_v22 = vrot.slane %v1556_v13, 4  ;;  %v1628_v13 = vshrl.u32 %v1477_v6, 16 }
  0xce   : > { %v1561_v27 = vrot.slane %v1559_v14, 5  ;;  %v1631_v14 = vshll.u32 %v1477_v6, 16  ;;  %v1601_v20 = vrot.slane %v1599_v5, 5  ;;  %v1743_v5 = vld [vmem:[%s4886_s12 + $0xc] sm:$0xf] }
  0xcf   : > { %v1630_v21 = vrot.slane %v1628_v13, 4  ;;  %v1789_v13 = vshrl.u32 %v1743_v5, 16 }
  0xd0   : > { %1410 = vrot.lane.b32.xlu0 %v1370_v17, %s4467_s15  ;;  %1412 = vrot.lane.b32.xlu1 %v1371_v16, %s4467_s15  ;;  %v1467_v16 = vld [vmem:[%s4833_s28 + $0x20] sm:$0x1]  ;;  %v1562_v39 = vor.u32 %v1561_v27, %v1558_v22  ;;  %v1633_v22 = vrot.slane %v1631_v14, 5  ;;  %v1792_v14 = vshll.u32 %v1743_v5, 16 }
  0xd1   : > { %1414 = vrot.lane.b32.xlu2 %v1372_v18, %s4467_s15  ;;  %v1565_v18 = vshll.u32 %v1469_v1, 16  ;;  %v1551_v31 = vshll.u32 %v1467_v16, 16 }
  0xd2   : > { %v948_v24 = vpop.permute.xlu0 %947  ;;  %v950_v25 = vpop.permute.xlu1 %949  ;;  %v1563_v54 = vrot.slane %v1562_v39, 4 }
  0xd3   : > { %982 = vst.msk [vmem:[#allocation2 + $0x38] sm:$0xf] %vm967_vm6, %v948_v24  ;;  %v1219_v33 = vpop.permute.xlu2 %1218  ;;  %v1580_v24 = vshrl.u32 %v1471_v12, 16  ;;  %v1553_v44 = vrot.slane %v1551_v31, 5 }
  0xd4   : > { %983 = vst.msk [vmem:[#allocation2 + $0x3c] sm:$0xf] %vm967_vm6, %v950_v25  ;;  %v1583_v25 = vshll.u32 %v1471_v12, 16  ;;  %v1480_v12 = vld [vmem:[%s4833_s28 + $0x54] sm:$0xf]  ;;  %vm4033_vm6 = vcmask 64512  }
  0xd5   : > { %1258 = vst.msk [vmem:[#allocation2 + $0x24] sm:$0xf] %vm1248_vm7, %v1219_v33  ;;  %v1567_v33 = vrot.slane %v1565_v18, 5  ;;  %v1582_v41 = vrot.slane %v1580_v24, 4  ;;  %v1554_v62 = vsel %vm4597_vm2, %v1549_v43, %v1553_v44  ;;  %v1476_v18 = vld [vmem:[%s4833_s28 + $0x44] sm:$0x1] }
  0xd6   : > { %v1585_v32 = vrot.slane %v1583_v25, 5  ;;  %v1641_v24 = vshrl.u32 %v1478_v11, 16  ;;  %v1652_v25 = vshrl.u32 %v1480_v12, 16  ;;  %v1623_v31 = vshll.u32 %v1476_v18, 16 }
  0xd7   : > { %v1568_v3 = vsel %vm4597_vm2, %v1563_v54, %v1567_v33 }
  0xd8   : > { %1416 = vrot.lane.b32.xlu0 %v1373_v34, %s4467_s15  ;;  %1418 = vrot.lane.b32.xlu1 %v1374_v35, %s4467_s15  ;;  %v1472_v34 = vld [vmem:[%s4833_s28 + $0x34] sm:$0xf]  ;;  %v1571_v35 = vrot.slane %v1569_v19, 4  ;;  %v1586_v56 = vor.u32 %v1585_v32, %v1582_v41  ;;  %v1654_v41 = vrot.slane %v1652_v25, 4  ;;  %v1625_v43 = vrot.slane %v1623_v31, 5 }
  0xd9   : > { %1420 = vrot.lane.b32.xlu2 %v1375_v40, %s4467_s15  ;;  %v1593_v36 = vshrl.u32 %v1472_v34, 16  ;;  %v1470_v40 = vld [vmem:[%s4833_s28 + $0x2c] sm:$0x1]  ;;  %v1589_v46 = vshll.u32 %v1472_v34, 16 }
  0xda   : > { %v1203_v47 = vpop.permute.xlu0 %1202  ;;  %v1205_v48 = vpop.permute.xlu1 %1204  ;;  %v1572_v52 = vor.u32 %v1571_v35, %v1567_v33  ;;  %v1575_v53 = vshll.u32 %v1470_v40, 16  ;;  %v1587_v8 = vrot.slane %v1586_v56, 4  ;;  %v1481_v33 = vld [vmem:[%s4833_s28 + $0x58] sm:$0xf]  ;;  %v1643_v40 = vrot.slane %v1641_v24, 4 }
  0xdb   : > { %1250 = vst.msk [vmem:[#allocation2 + $0x4] sm:$0xf] %vm1248_vm7, %v1203_v47  ;;  %v1225_v59 = vpop.permute.xlu2 %1224  ;;  %v1475_v47 = vld [vmem:[%s4833_s28 + $0x40] sm:$0xf]  ;;  %v1595_v55 = vrot.slane %v1593_v36, 4  ;;  %v1591_v63 = vrot.slane %v1589_v46, 5 }
  0xdc   : > { %1251 = vst.msk [vmem:[#allocation2 + $0x8] sm:$0xf] %vm1248_vm7, %v1205_v48  ;;  %v1613_v57 = vshll.u32 %v1475_v47, 16  ;;  %v1617_v58 = vshrl.u32 %v1475_v47, 16  ;;  %v1577_v7 = vrot.slane %v1575_v53, 5  ;;  %v1665_v35 = vshrl.u32 %v1481_v33, 16 }
  0xdd   : > { %1261 = vst.msk [vmem:[#allocation2 + $0x30] sm:$0xf] %vm1248_vm7, %v1225_v59  ;;  %v1596_v4 = vor.u32 %v1595_v55, %v1591_v63  ;;  %v1592_v29 = vsel %vm4597_vm2, %v1587_v8, %v1591_v63  ;;  %v1661_v44 = vshll.u32 %v1481_v33, 16  ;;  %v1740_v46 = vld [vmem:[%s4886_s12] sm:$0xf] }
  0xde   : > { %v4989_v9 = vrot.slane %v1613_v57, 5  ;;  %v1619_v10 = vrot.slane %v1617_v58, 4  ;;  %v1667_v53 = vrot.slane %v1665_v35, 4  ;;  %v1765_v56 = vshrl.u32 %v1740_v46, 16 }
  0xdf   : > { %v1597_v19 = vrot.slane %v1596_v4, 4  ;;  %v1768_v57 = vshll.u32 %v1740_v46, 16  ;;  %v1749_v46 = vld [vmem:[%s4886_s12 + $0x24] sm:$0xf] }
  0xe0   : > { %1422 = vrot.lane.b32.xlu0 %v1376_v50, %s4467_s15  ;;  %1424 = vrot.lane.b32.xlu1 %v1377_v51, %s4467_s15  ;;  %v1604_v50 = vshrl.u32 %v1474_v37, 16  ;;  %v1607_v51 = vshll.u32 %v1474_v37, 16  ;;  %v1620_v30 = vor.u32 %v1619_v10, %v4989_v9  ;;  %v1634_v37 = vor.u32 %v1633_v22, %v1630_v21 }
  0xe1   : > { %1675 = vrot.lane.b32.xlu2 %v1496_v2, %s4468_s17  ;;  %v1573_v2 = vrot.slane %v1572_v52, 4  ;;  %v1602_v36 = vsel %vm4597_vm2, %v1597_v19, %v1601_v20  ;;  %v1767_v8 = vrot.slane %v1765_v56, 4  ;;  %v1791_v22 = vrot.slane %v1789_v13, 4 }
  0xe2   : > { %v1209_v15 = vpop.permute.xlu0 %1208  ;;  %v1211_v17 = vpop.permute.xlu1 %1210  ;;  %v1606_v0 = vrot.slane %v1604_v50, 4  ;;  %v1609_v1 = vrot.slane %v1607_v51, 5  ;;  %v1621_v42 = vrot.slane %v1620_v30, 4  ;;  %v1635_v52 = vrot.slane %v1634_v37, 4 }
  0xe3   : > { %1253 = vst.msk [vmem:[#allocation2 + $0x10] sm:$0xf] %vm1248_vm7, %v1209_v15  ;;  %v1231_v26 = vpop.permute.xlu2 %1230  ;;  %v1837_v56 = vshrl.u32 %v1749_v46, 16 }
  0xe4   : > { %1254 = vst.msk [vmem:[#allocation2 + $0x14] sm:$0xf] %vm1248_vm7, %v1211_v17  ;;  %v1610_v16 = vor.u32 %v1609_v1, %v1606_v0  ;;  %v1626_v60 = vsel %vm4597_vm2, %v1621_v42, %v1625_v43  ;;  %v1744_v1 = vld [vmem:[%s4886_s12 + $0x10] sm:$0xf] }
  0xe5   : > { %1264 = vst.msk [vmem:[#allocation2 + $0x3c] sm:$0xf] %vm1248_vm7, %v1231_v26  ;;  %v1655_v26 = vshll.u32 %v1480_v12, 16  ;;  %v1746_v12 = vld [vmem:[%s4886_s12 + $0x18] sm:$0xf]  ;;  %v1798_v18 = vshll.u32 %v1744_v1, 16 }
  0xe6   : > { %v1611_v34 = vrot.slane %v1610_v16, 4  ;;  %v1742_v16 = vld [vmem:[%s4886_s12 + $0x8] sm:$0x1]  ;;  %v1802_v19 = vshrl.u32 %v1744_v1, 16  ;;  %v1813_v25 = vshrl.u32 %v1746_v12, 16 }
  0xe7   : > { %v1657_v32 = vrot.slane %v1655_v26, 5  ;;  %v1816_v26 = vshll.u32 %v1746_v12, 16  ;;  %v1784_v31 = vshll.u32 %v1742_v16, 16  ;;  %v1800_v33 = vrot.slane %v1798_v18, 5  ;;  %v1751_v16 = vld [vmem:[%s4886_s12 + $0x2c] sm:$0x1] }
  0xe8   : > { %1677 = vrot.lane.b32.xlu0 %v1506_v23, %s4468_s17  ;;  %1679 = vrot.lane.b32.xlu1 %v1520_v28, %s4468_s17  ;;  %v1637_v23 = vshll.u32 %v1478_v11, 16  ;;  %v1578_v28 = vsel %vm4597_vm2, %v1573_v2, %v1577_v7  ;;  %v1616_v50 = vsel %vm4597_vm2, %v1611_v34, %v4989_v9  ;;  %v1770_v9 = vrot.slane %v1768_v57, 5  ;;  %v1747_v34 = vld [vmem:[%s4886_s12 + $0x1c] sm:$0xf] }
  0xe9   : > { %1681 = vrot.lane.b32.xlu2 %v1530_v38, %s4468_s17  ;;  %v1479_v38 = vld [vmem:[%s4833_s28 + $0x50] sm:$0x1]  ;;  %v1658_v55 = vor.u32 %v1657_v32, %v1654_v41  ;;  %v1804_v35 = vrot.slane %v1802_v19, 4  ;;  %v1815_v41 = vrot.slane %v1813_v25, 4  ;;  %v1818_v32 = vrot.slane %v1816_v26, 5 }
  0xea   : > { %v1215_v48 = vpop.permute.xlu0 %1214  ;;  %v1217_v49 = vpop.permute.xlu1 %1216  ;;  %v1639_v39 = vrot.slane %v1637_v23, 5  ;;  %v1647_v51 = vshll.u32 %v1479_v38, 16  ;;  %v1794_v23 = vrot.slane %v1792_v14, 5  ;;  %v1771_v24 = vor.u32 %v1770_v9, %v1767_v8 }
  0xeb   : > { %1256 = vst.msk [vmem:[#allocation2 + $0x1c] sm:$0xf] %vm1248_vm7, %v1215_v48  ;;  %v1302_v59 = vpop.permute.xlu2 %1301  ;;  %v1659_v7 = vrot.slane %v1658_v55, 4  ;;  %v1786_v43 = vrot.slane %v1784_v31, 5  ;;  %v1819_v55 = vor.u32 %v1818_v32, %v1815_v41  ;;  %v1840_v57 = vshll.u32 %v1749_v46, 16 }
  0xec   : > { %1257 = vst.msk [vmem:[#allocation2 + $0x20] sm:$0xf] %vm1248_vm7, %v1217_v49  ;;  %v1741_v49 = vld [vmem:[%s4886_s12 + $0x4] sm:$0xf]  ;;  %v1644_v54 = vor.u32 %v1643_v40, %v1639_v39  ;;  %v1649_v0 = vrot.slane %v1647_v51, 5  ;;  %v1640_v2 = vsel %vm4597_vm2, %v1635_v52, %v1639_v39  ;;  %v1795_v38 = vor.u32 %v1794_v23, %v1791_v22 }
  0xed   : > { %1348 = vst.msk [vmem:[#allocation2 + $0x8] sm:$0xf] %vm1345_vm8, %v1302_v59  ;;  %v1482_v59 = vld [vmem:[%s4833_s28 + $0x5c] sm:$0x1]  ;;  %v1778_v63 = vshrl.u32 %v1741_v49, 16  ;;  %v1772_v39 = vrot.slane %v1771_v24, 4 }
  0xee   : > { %v1671_v4 = vshll.u32 %v1482_v59, 16  ;;  %v1645_v6 = vrot.slane %v1644_v54, 4  ;;  %v1745_v40 = vld [vmem:[%s4886_s12 + $0x14] sm:$0x1]  ;;  %v1796_v52 = vrot.slane %v1795_v38, 4  ;;  %v1820_v8 = vrot.slane %v1819_v55, 4 }
  0xef   : > { %v1780_v11 = vrot.slane %v1778_v63, 4  ;;  %v1808_v51 = vshll.u32 %v1745_v40, 16  ;;  %v1748_v59 = vld [vmem:[%s4886_s12 + $0x20] sm:$0x1]  ;;  %v1839_v9 = vrot.slane %v1837_v56, 4  ;;  %v1856_v31 = vshll.u32 %v1751_v16, 16 }
  0xf0   : > { %1683 = vrot.lane.b32.xlu0 %v1544_v61, %s4468_s17  ;;  %1685 = vrot.lane.b32.xlu1 %v1554_v62, %s4468_s17  ;;  %v1663_v61 = vrot.slane %v1661_v44, 5  ;;  %v1774_v62 = vshll.u32 %v1741_v49, 16  ;;  %v1673_v21 = vrot.slane %v1671_v4, 5  ;;  %v1822_v44 = vshll.u32 %v1747_v34, 16  ;;  %v1750_v49 = vld [vmem:[%s4886_s12 + $0x28] sm:$0xf] }
  0xf1   : > { %1687 = vrot.lane.b32.xlu2 %v1568_v3, %s4468_s17  ;;  %v1850_v63 = vshrl.u32 %v1750_v49, 16  ;;  %v1832_v5 = vshll.u32 %v1748_v59, 16  ;;  %v1758_v46 = vld [vmem:[%s4886_s12 + $0x48] sm:$0xf]  ;;  %v1757_v59 = vld [vmem:[%s4886_s12 + $0x44] sm:$0x1] }
  0xf2   : > { %v1221_v15 = vpop.permute.xlu0 %1220  ;;  %v1223_v17 = vpop.permute.xlu1 %1222  ;;  %v1668_v3 = vor.u32 %v1667_v53, %v1663_v61  ;;  %v5027_v10 = vrot.slane %v1774_v62, 5  ;;  %v1846_v62 = vshll.u32 %v1750_v49, 16  ;;  %v1909_v56 = vshrl.u32 %v1758_v46, 16  ;;  %s4473_s28 = smov 44  }
  0xf3   : > { %1259 = vst.msk [vmem:[#allocation2 + $0x28] sm:$0xf] %vm1248_vm7, %v1221_v15  ;;  %v1308_v27 = vpop.permute.xlu2 %1307  ;;  %v1852_v12 = vrot.slane %v1850_v63, 4  ;;  %v1834_v23 = vrot.slane %v1832_v5, 5  ;;  %v1904_v5 = vshll.u32 %v1757_v59, 16 }
  0xf4   : > { %1260 = vst.msk [vmem:[#allocation2 + $0x2c] sm:$0xf] %vm1248_vm7, %v1223_v17  ;;  %v1669_v20 = vrot.slane %v1668_v3, 4  ;;  %v1781_v30 = vor.u32 %v1780_v11, %v5027_v10  ;;  %v1777_v54 = vsel %vm4597_vm2, %v1772_v39, %v5027_v10  ;;  %v1755_v3 = vld [vmem:[%s4886_s12 + $0x3c] sm:$0xf]  ;;  %v1842_v10 = vrot.slane %v1840_v57, 5 }
  0xf5   : > { %1351 = vst.msk [vmem:[#allocation2 + $0x14] sm:$0xf] %vm1345_vm8, %v1308_v27  ;;  %v5065_v11 = vrot.slane %v1846_v62, 5  ;;  %v1912_v57 = vshll.u32 %v1758_v46, 16  ;;  %v2024_v59 = vld [vmem:[%s5131_s21 + $0x10] sm:$0xf] }
  0xf6   : > { %v1674_v37 = vsel %vm4597_vm2, %v1669_v20, %v1673_v21  ;;  %v1782_v42 = vrot.slane %v1781_v30, 4  ;;  %v1885_v20 = vshrl.u32 %v1755_v3, 16  ;;  %v1888_v21 = vshll.u32 %v1755_v3, 16 }
  0xf7   : > { %v1843_v25 = vor.u32 %v1842_v10, %v1839_v9  ;;  %v1853_v30 = vor.u32 %v1852_v12, %v5065_v11 }
  0xf8   : > { %1689 = vrot.lane.b32.xlu0 %v1578_v28, %s4468_s17  ;;  %1691 = vrot.lane.b32.xlu1 %v1592_v29, %s4468_s17  ;;  %v1650_v28 = vsel %vm4597_vm2, %v1645_v6, %v1649_v0  ;;  %v1664_v29 = vsel %vm4597_vm2, %v1659_v7, %v1663_v61  ;;  %v1824_v61 = vrot.slane %v1822_v44, 5  ;;  %v1753_v0 = vld [vmem:[%s4886_s12 + $0x34] sm:$0xf]  ;;  %v1752_v6 = vld [vmem:[%s4886_s12 + $0x30] sm:$0xf]  ;;  %v1810_v7 = vrot.slane %v1808_v51, 5 }
  0xf9   : > { %1693 = vrot.lane.b32.xlu2 %v1602_v36, %s4468_s17  ;;  %v1826_v36 = vshrl.u32 %v1747_v34, 16  ;;  %v1861_v13 = vshrl.u32 %v1752_v6, 16  ;;  %v1864_v14 = vshll.u32 %v1752_v6, 16  ;;  %v1870_v18 = vshll.u32 %v1753_v0, 16  ;;  %v1759_v51 = vld [vmem:[%s4886_s12 + $0x4c] sm:$0xf] }
  0xfa   : > { %v1227_v47 = vpop.permute.xlu0 %1226  ;;  %v1229_v48 = vpop.permute.xlu1 %1228  ;;  %v1874_v19 = vshrl.u32 %v1753_v0, 16  ;;  %v1890_v38 = vrot.slane %v1888_v21, 5  ;;  %v1844_v32 = vrot.slane %v1843_v25, 4  ;;  %v1918_v62 = vshll.u32 %v1759_v51, 16  ;;  %v1761_v6 = vld [vmem:[%s4886_s12 + $0x54] sm:$0xf] }
  0xfb   : > { %1262 = vst.msk [vmem:[#allocation2 + $0x34] sm:$0xf] %vm1248_vm7, %v1227_v47  ;;  %v1314_v58 = vpop.permute.xlu2 %1313  ;;  %v1828_v53 = vrot.slane %v1826_v36, 4  ;;  %v1863_v24 = vrot.slane %v1861_v13, 4  ;;  %v1887_v36 = vrot.slane %v1885_v20, 4  ;;  %v1922_v63 = vshrl.u32 %v1759_v51, 16 }
  0xfc   : > { %1263 = vst.msk [vmem:[#allocation2 + $0x38] sm:$0xf] %vm1248_vm7, %v1229_v48  ;;  %v1876_v34 = vrot.slane %v1874_v19, 4  ;;  %v1849_v55 = vsel %vm4597_vm2, %v1844_v32, %v5065_v11  ;;  %v1933_v9 = vshrl.u32 %v1761_v6, 16  ;;  %v1936_v10 = vshll.u32 %v1761_v6, 16 }
  0xfd   : > { %1354 = vst.msk [vmem:[#allocation2 + $0x20] sm:$0xf] %vm1345_vm8, %v1314_v58  ;;  %v1829_v4 = vor.u32 %v1828_v53, %v1824_v61  ;;  %v1920_v11 = vrot.slane %v1918_v62, 5  ;;  %v1924_v12 = vrot.slane %v1922_v63, 4  ;;  %v2029_v6 = vld [vmem:[%s5131_s21 + $0x30] sm:$0xf] }
  0xfe   : > { %v1935_v19 = vrot.slane %v1933_v9, 4  ;;  %v1938_v20 = vrot.slane %v1936_v10, 5 }
  0xff   : > { %v1830_v22 = vrot.slane %v1829_v4, 4  ;;  %v1925_v25 = vor.u32 %v1924_v12, %v1920_v11  ;;  %v2032_v12 = vld [vmem:[%s5131_s21 + $0x40] sm:$0xf] }
 0x100   : > { %1695 = vrot.lane.b32.xlu0 %v1616_v50, %s4468_s17  ;;  %1697 = vrot.lane.b32.xlu1 %v1626_v60, %s4468_s17  ;;  %v1805_v50 = vor.u32 %v1804_v35, %v1800_v33  ;;  %v1787_v60 = vsel %vm4597_vm2, %v1782_v42, %v1786_v43  ;;  %v1756_v35 = vld [vmem:[%s4886_s12 + $0x40] sm:$0xf]  ;;  %v1854_v42 = vrot.slane %v1853_v30, 4  ;;  %v1858_v43 = vrot.slane %v1856_v31, 5 }
 0x101   : > { %1699 = vrot.lane.b32.xlu2 %v1640_v2, %s4468_s17  ;;  %v1801_v2 = vsel %vm4597_vm2, %v1796_v52, %v1800_v33  ;;  %v1872_v33 = vrot.slane %v1870_v18, 5  ;;  %v1898_v39 = vshrl.u32 %v1756_v35, 16  ;;  %v1835_v40 = vsel %vm4597_vm2, %v1830_v22, %v1834_v23 }
 0x102   : > { %v1298_v15 = vpop.permute.xlu0 %1297  ;;  %v1300_v17 = vpop.permute.xlu1 %1299  ;;  %v1806_v1 = vrot.slane %v1805_v50, 4  ;;  %v1894_v44 = vshll.u32 %v1756_v35, 16  ;;  %v1891_v52 = vor.u32 %v1890_v38, %v1887_v36  ;;  %v1906_v18 = vrot.slane %v1904_v5, 5 }
 0x103   : > { %1346 = vst.msk [vmem:[#allocation2] sm:$0xf] %vm1345_vm8, %v1298_v15  ;;  %v1320_v27 = vpop.permute.xlu2 %1319  ;;  %v1877_v49 = vor.u32 %v1876_v34, %v1872_v33  ;;  %v1939_v30 = vor.u32 %v1938_v20, %v1935_v19  ;;  %v2036_v19 = vld [vmem:[%s5131_s21 + $0x58] sm:$0xf]  ;;  %v2118_v20 = vld [vmem:[%s5189_s25] sm:$0xf] }
 0x104   : > { %1347 = vst.msk [vmem:[#allocation2 + $0x4] sm:$0xf] %vm1345_vm8, %v1300_v17 }
 0x105   : > { %1357 = vst.msk [vmem:[#allocation2 + $0x2c] sm:$0xf] %vm1345_vm8, %v1320_v27  ;;  %v1866_v27 = vrot.slane %v1864_v14, 5  ;;  %v1878_v0 = vrot.slane %v1877_v49, 4 }
 0x107   : > { %v1867_v41 = vor.u32 %v1866_v27, %v1863_v24 }
 0x108   : > { %1701 = vrot.lane.b32.xlu0 %v1650_v28, %s4468_s17  ;;  %1703 = vrot.lane.b32.xlu1 %v1664_v29, %s4468_s17  ;;  %v1811_v28 = vsel %vm4597_vm2, %v1806_v1, %v1810_v7  ;;  %v1825_v29 = vsel %vm4597_vm2, %v1820_v8, %v1824_v61  ;;  %v1896_v61 = vrot.slane %v1894_v44, 5  ;;  %v1911_v7 = vrot.slane %v1909_v56, 4 }
 0x109   : > { %1705 = vrot.lane.b32.xlu2 %v1674_v37, %s4468_s17  ;;  %v1754_v37 = vld [vmem:[%s4886_s12 + $0x38] sm:$0x1]  ;;  %v1868_v53 = vrot.slane %v1867_v41, 4  ;;  %v1914_v8 = vrot.slane %v1912_v57, 5 }
 0x10a   : > { %v1304_v47 = vpop.permute.xlu0 %1303  ;;  %v1306_v48 = vpop.permute.xlu1 %1305  ;;  %v1880_v50 = vshll.u32 %v1754_v37, 16 }
 0x10b   : > { %1349 = vst.msk [vmem:[#allocation2 + $0xc] sm:$0xf] %vm1345_vm8, %v1304_v47  ;;  %v1326_v58 = vpop.permute.xlu2 %1325  ;;  %v1873_v3 = vsel %vm4597_vm2, %v1868_v53, %v1872_v33  ;;  %v1915_v23 = vor.u32 %v1914_v8, %v1911_v7  ;;  %v1926_v33 = vrot.slane %v1925_v25, 4  ;;  %v2021_v53 = vld [vmem:[%s5131_s21] sm:$0xf] }
 0x10c   : > { %1350 = vst.msk [vmem:[#allocation2 + $0x10] sm:$0xf] %vm1345_vm8, %v1306_v48  ;;  %v1882_v1 = vrot.slane %v1880_v50, 5  ;;  %v2030_v7 = vld [vmem:[%s5131_s21 + $0x34] sm:$0xf] }
 0x10d   : > { %1360 = vst.msk [vmem:[#allocation2 + $0x38] sm:$0xf] %vm1345_vm8, %v1326_v58  ;;  %v1916_v31 = vrot.slane %v1915_v23, 4  ;;  %v2031_v8 = vld [vmem:[%s5131_s21 + $0x3c] sm:$0xf] }
 0x10e   : > { %v1883_v21 = vsel %vm4597_vm2, %v1878_v0, %v1882_v1  ;;  %v2026_v0 = vld [vmem:[%s5131_s21 + $0x1c] sm:$0xf]  ;;  %v2027_v1 = vld [vmem:[%s5131_s21 + $0x24] sm:$0xf]  ;;  %v2120_v25 = vld [vmem:[%s5189_s25 + $0xc] sm:$0xf] }
 0x10f   : > { %v1921_v32 = vsel %vm4597_vm2, %v1916_v31, %v1920_v11  ;;  %v2123_v31 = vld [vmem:[%s5189_s25 + $0x1c] sm:$0xf] }
 0x110   : > { %1956 = vrot.lane.b32.xlu0 %v1777_v54, %s4469_s18  ;;  %1958 = vrot.lane.b32.xlu1 %v1787_v60, %s4469_s18  ;;  %v1900_v54 = vrot.slane %v1898_v39, 4  ;;  %v1859_v60 = vsel %vm4597_vm2, %v1854_v42, %v1858_v43  ;;  %v1763_v39 = vld [vmem:[%s4886_s12 + $0x5c] sm:$0x1] }
 0x111   : > { %1960 = vrot.lane.b32.xlu2 %v1801_v2, %s4469_s18  ;;  %v1892_v2 = vrot.slane %v1891_v52, 4  ;;  %v1952_v44 = vshll.u32 %v1763_v39, 16  ;;  %v2127_v39 = vld [vmem:[%s5189_s25 + $0x34] sm:$0xf] }
 0x112   : > { %v1310_v15 = vpop.permute.xlu0 %1309  ;;  %v1312_v17 = vpop.permute.xlu1 %1311  ;;  %v1901_v4 = vor.u32 %v1900_v54, %v1896_v61  ;;  %v2022_v54 = vld [vmem:[%s5131_s21 + $0x4] sm:$0xf] }
 0x113   : > { %1352 = vst.msk [vmem:[#allocation2 + $0x18] sm:$0xf] %vm1345_vm8, %v1310_v15  ;;  %v1397_v26 = vpop.permute.xlu2 %1396  ;;  %v1760_v15 = vld [vmem:[%s4886_s12 + $0x50] sm:$0x1]  ;;  %v1897_v22 = vsel %vm4597_vm2, %v1892_v2, %v1896_v61  ;;  %v2028_v2 = vld [vmem:[%s5131_s21 + $0x28] sm:$0xf] }
 0x114   : > { %1353 = vst.msk [vmem:[#allocation2 + $0x1c] sm:$0xf] %vm1345_vm8, %v1312_v17  ;;  %v1762_v17 = vld [vmem:[%s4886_s12 + $0x58] sm:$0xf]  ;;  %v1902_v16 = vrot.slane %v1901_v4, 4  ;;  %s4474_s12 = smov 48  }
 0x115   : > { %1444 = vst.msk [vmem:[#allocation2 + $0x4] sm:$0xf] %vm1442_vm9, %v1397_v26  ;;  %v1928_v26 = vshll.u32 %v1760_v15, 16  ;;  %v1942_v27 = vshll.u32 %v1762_v17, 16 }
 0x117   : > { %v1930_v34 = vrot.slane %v1928_v26, 5  ;;  %v1944_v35 = vrot.slane %v1942_v27, 5  ;;  %v2121_v26 = vld [vmem:[%s5189_s25 + $0x10] sm:$0xf] }
 0x118   : > { %1962 = vrot.lane.b32.xlu0 %v1811_v28, %s4469_s18  ;;  %1964 = vrot.lane.b32.xlu1 %v1825_v29, %s4469_s18  ;;  %v1946_v28 = vshrl.u32 %v1762_v17, 16  ;;  %v1907_v29 = vsel %vm4597_vm2, %v1902_v16, %v1906_v18  ;;  %v2035_v18 = vld [vmem:[%s5131_s21 + $0x54] sm:$0xf] }
 0x119   : > { %1966 = vrot.lane.b32.xlu2 %v1835_v40, %s4469_s18  ;;  %v1940_v40 = vrot.slane %v1939_v30, 4  ;;  %v1931_v42 = vsel %vm4597_vm2, %v1926_v33, %v1930_v34  ;;  %v2122_v30 = vld [vmem:[%s5189_s25 + $0x18] sm:$0xf]  ;;  %v2124_v33 = vld [vmem:[%s5189_s25 + $0x24] sm:$0xf] }
 0x11a   : > { %v1316_v47 = vpop.permute.xlu0 %1315  ;;  %v1318_v48 = vpop.permute.xlu1 %1317  ;;  %v1948_v36 = vrot.slane %v1946_v28, 4 }
 0x11b   : > { %1355 = vst.msk [vmem:[#allocation2 + $0x24] sm:$0xf] %vm1345_vm8, %v1316_v47  ;;  %v1403_v58 = vpop.permute.xlu2 %1402  ;;  %v1945_v46 = vsel %vm4597_vm2, %v1940_v40, %v1944_v35  ;;  %v2215_v40 = vld [vmem:[%s5131_s21] sm:$0xf] }
 0x11c   : > { %1356 = vst.msk [vmem:[#allocation2 + $0x28] sm:$0xf] %vm1345_vm8, %v1318_v48  ;;  %v1949_v43 = vor.u32 %v1948_v36, %v1944_v35  ;;  %v1954_v48 = vrot.slane %v1952_v44, 5  ;;  %v2240_v44 = vshrl.u32 %v2215_v40, 16 }
 0x11d   : > { %1447 = vst.msk [vmem:[#allocation2 + $0x10] sm:$0xf] %vm1442_vm9, %v1403_v58  ;;  %v2023_v58 = vld [vmem:[%s5131_s21 + $0xc] sm:$0xf] }
 0x11e   : > { %v1950_v47 = vrot.slane %v1949_v43, 4  ;;  %v2128_v43 = vld [vmem:[%s5189_s25 + $0x3c] sm:$0xf] }
 0x120   : > { %1968 = vrot.lane.b32.xlu0 %v1849_v55, %s4469_s18  ;;  %1970 = vrot.lane.b32.xlu1 %v1859_v60, %s4469_s18  ;;  %v1955_v52 = vsel %vm4597_vm2, %v1950_v47, %v1954_v48  ;;  %v2025_v60 = vld [vmem:[%s5131_s21 + $0x18] sm:$0xf]  ;;  %v2129_v48 = vld [vmem:[%s5189_s25 + $0x40] sm:$0xf] }
 0x121   : > { %1972 = vrot.lane.b32.xlu2 %v1873_v3, %s4469_s18 }
 0x122   : > { %v1322_v13 = vpop.permute.xlu0 %1321  ;;  %v1324_v14 = vpop.permute.xlu1 %1323 }
 0x123   : > { %1358 = vst.msk [vmem:[#allocation2 + $0x30] sm:$0xf] %vm1345_vm8, %v1322_v13  ;;  %v1409_v24 = vpop.permute.xlu2 %1408  ;;  %v2033_v13 = vld [vmem:[%s5131_s21 + $0x48] sm:$0xf] }
 0x124   : > { %1359 = vst.msk [vmem:[#allocation2 + $0x34] sm:$0xf] %vm1345_vm8, %v1324_v14  ;;  %v2034_v14 = vld [vmem:[%s5131_s21 + $0x4c] sm:$0xf] }
 0x125   : > { %1450 = vst.msk [vmem:[#allocation2 + $0x1c] sm:$0xf] %vm1442_vm9, %v1409_v24  ;;  %v2119_v24 = vld [vmem:[%s5189_s25 + $0x4] sm:$0xf] }
 0x128   : > { %1974 = vrot.lane.b32.xlu0 %v1883_v21, %s4469_s18  ;;  %1976 = vrot.lane.b32.xlu1 %v1897_v22, %s4469_s18 }
 0x129   : > { %1978 = vrot.lane.b32.xlu2 %v1907_v29, %s4469_s18 }
 0x12a   : > { %v1328_v37 = vpop.permute.xlu0 %1327  ;;  %v1395_v38 = vpop.permute.xlu1 %1394 }
 0x12b   : > { %1361 = vst.msk [vmem:[#allocation2 + $0x3c] sm:$0xf] %vm1345_vm8, %v1328_v37  ;;  %v1415_v41 = vpop.permute.xlu2 %1414  ;;  %v2125_v37 = vld [vmem:[%s5189_s25 + $0x28] sm:$0xf] }
 0x12c   : > { %1443 = vst.msk [vmem:[#allocation2] sm:$0xf] %vm1442_vm9, %v1395_v38  ;;  %v2126_v38 = vld [vmem:[%s5189_s25 + $0x30] sm:$0xf] }
 0x12d   : > { %1453 = vst.msk [vmem:[#allocation2 + $0x28] sm:$0xf] %vm1442_vm9, %v1415_v41 }
 0x130   : > { %1980 = vrot.lane.b32.xlu0 %v1921_v32, %s4469_s18  ;;  %1982 = vrot.lane.b32.xlu1 %v1931_v42, %s4469_s18  ;;  %v2216_v42 = vld [vmem:[%s5131_s21 + $0x4] sm:$0xf] }
 0x131   : > { %1984 = vrot.lane.b32.xlu2 %v1945_v46, %s4469_s18  ;;  %v2243_v46 = vshll.u32 %v2215_v40, 16 }
 0x132   : > { %v1399_v49 = vpop.permute.xlu0 %1398  ;;  %v1401_v50 = vpop.permute.xlu1 %1400 }
 0x133   : > { %1445 = vst.msk [vmem:[#allocation2 + $0x8] sm:$0xf] %vm1442_vm9, %v1399_v49  ;;  %v1421_v51 = vpop.permute.xlu2 %1420  ;;  %v2249_v49 = vshll.u32 %v2216_v42, 16 }
 0x134   : > { %1446 = vst.msk [vmem:[#allocation2 + $0xc] sm:$0xf] %vm1442_vm9, %v1401_v50  ;;  %v2253_v50 = vshrl.u32 %v2216_v42, 16 }
 0x135   : > { %1456 = vst.msk [vmem:[#allocation2 + $0x34] sm:$0xf] %vm1442_vm9, %v1421_v51  ;;  %v2219_v51 = vld [vmem:[%s5131_s21 + $0x10] sm:$0xf] }
 0x138   : > { %1986 = vrot.lane.b32.xlu0 %v1955_v52, %s4469_s18  ;;  %2053 = vrot.lane.b32.xlu1 %v2021_v53, %s4470_s22  ;;  %v2130_v52 = vld [vmem:[%s5189_s25 + $0x48] sm:$0xf]  ;;  %v2218_v53 = vld [vmem:[%s5131_s21 + $0xc] sm:$0xf]  ;;  %s5398_s18 = scalar_lea.vmem %s5889_s7, %s4544_s16  ;;  %s4475_s16 = smov 52  }
 0x139   : > { %2055 = vrot.lane.b32.xlu2 %v2022_v54, %s4470_s22  ;;  %v2242_v54 = vrot.slane %v2240_v44, 4 }
 0x13a   : > { %v1405_v55 = vpop.permute.xlu0 %1404  ;;  %v1407_v56 = vpop.permute.xlu1 %1406 }
 0x13b   : > { %1448 = vst.msk [vmem:[#allocation2 + $0x14] sm:$0xf] %vm1442_vm9, %v1405_v55  ;;  %v1676_v57 = vpop.permute.xlu2 %1675  ;;  %v2245_v55 = vrot.slane %v2243_v46, 5 }
 0x13c   : > { %1449 = vst.msk [vmem:[#allocation2 + $0x18] sm:$0xf] %vm1442_vm9, %v1407_v56  ;;  %v2264_v56 = vshrl.u32 %v2218_v53, 16 }
 0x13d   : > { %1724 = vst.msk [vmem:[#allocation2] sm:$0xf] %vm1723_vm10, %v1676_v57  ;;  %v5234_v57 = vrot.slane %v2249_v49, 5 }
 0x140   : > { %2057 = vrot.lane.b32.xlu0 %v2023_v58, %s4470_s22  ;;  %2059 = vrot.lane.b32.xlu1 %v2024_v59, %s4470_s22  ;;  %v2217_v58 = vld [vmem:[%s5131_s21 + $0x8] sm:$0x1]  ;;  %v2255_v59 = vrot.slane %v2253_v50, 4 }
 0x141   : > { %2061 = vrot.lane.b32.xlu2 %v2025_v60, %s4470_s22  ;;  %v2267_v60 = vshll.u32 %v2218_v53, 16 }
 0x142   : > { %v1411_v61 = vpop.permute.xlu0 %1410  ;;  %v1413_v62 = vpop.permute.xlu1 %1412 }
 0x143   : > { %1451 = vst.msk [vmem:[#allocation2 + $0x20] sm:$0xf] %vm1442_vm9, %v1411_v61  ;;  %v1682_v63 = vpop.permute.xlu2 %1681 }
 0x144   : > { %1452 = vst.msk [vmem:[#allocation2 + $0x24] sm:$0xf] %vm1442_vm9, %v1413_v62 }
 0x145   : > { %1727 = vst.msk [vmem:[#allocation2 + $0xc] sm:$0xf] %vm1723_vm10, %v1682_v63  ;;  %v2273_v63 = vshll.u32 %v2219_v51, 16 }
 0x148   : > { %2063 = vrot.lane.b32.xlu0 %v2026_v0, %s4470_s22  ;;  %2065 = vrot.lane.b32.xlu1 %v2027_v1, %s4470_s22  ;;  %v2277_v0 = vshrl.u32 %v2219_v51, 16  ;;  %v2221_v1 = vld [vmem:[%s5131_s21 + $0x18] sm:$0xf] }
 0x149   : > { %2067 = vrot.lane.b32.xlu2 %v2028_v2, %s4470_s22  ;;  %v2266_v2 = vrot.slane %v2264_v56, 4  ;;  %v2228_v56 = vld [vmem:[%s5131_s21 + $0x34] sm:$0xf] }
 0x14a   : > { %v1417_v3 = vpop.permute.xlu0 %1416  ;;  %v1419_v4 = vpop.permute.xlu1 %1418 }
 0x14b   : > { %1454 = vst.msk [vmem:[#allocation2 + $0x2c] sm:$0xf] %vm1442_vm9, %v1417_v3  ;;  %v1688_v5 = vpop.permute.xlu2 %1687  ;;  %v2269_v3 = vrot.slane %v2267_v60, 5 }
 0x14c   : > { %1455 = vst.msk [vmem:[#allocation2 + $0x30] sm:$0xf] %vm1442_vm9, %v1419_v4  ;;  %v2131_v4 = vld [vmem:[%s5189_s25 + $0x4c] sm:$0xf] }
 0x14d   : > { %1730 = vst.msk [vmem:[#allocation2 + $0x18] sm:$0xf] %vm1723_vm10, %v1688_v5  ;;  %v2246_v5 = vor.u32 %v2245_v55, %v2242_v54  ;;  %v2227_v54 = vld [vmem:[%s5131_s21 + $0x30] sm:$0xf] }
 0x150   : > { %2069 = vrot.lane.b32.xlu0 %v2029_v6, %s4470_s22  ;;  %2071 = vrot.lane.b32.xlu1 %v2030_v7, %s4470_s22  ;;  %v2259_v6 = vshll.u32 %v2217_v58, 16 }
 0x151   : > { %2073 = vrot.lane.b32.xlu2 %v2031_v8, %s4470_s22  ;;  %v2132_v8 = vld [vmem:[%s5189_s25 + $0x54] sm:$0xf] }
 0x152   : > { %v1423_v9 = vpop.permute.xlu0 %1422  ;;  %v1425_v10 = vpop.permute.xlu1 %1424 }
 0x153   : > { %1457 = vst.msk [vmem:[#allocation2 + $0x38] sm:$0xf] %vm1442_vm9, %v1423_v9  ;;  %v1694_v11 = vpop.permute.xlu2 %1693  ;;  %v2256_v9 = vor.u32 %v2255_v59, %v5234_v57 }
 0x154   : > { %1458 = vst.msk [vmem:[#allocation2 + $0x3c] sm:$0xf] %vm1442_vm9, %v1425_v10  ;;  %v2288_v10 = vshrl.u32 %v2221_v1, 16 }
 0x155   : > { %1733 = vst.msk [vmem:[#allocation2 + $0x24] sm:$0xf] %vm1723_vm10, %v1694_v11  ;;  %v2291_v11 = vshll.u32 %v2221_v1, 16 }
 0x158   : > { %2075 = vrot.lane.b32.xlu0 %v2032_v12, %s4470_s22  ;;  %2077 = vrot.lane.b32.xlu1 %v2033_v13, %s4470_s22  ;;  %v2220_v12 = vld [vmem:[%s5131_s21 + $0x14] sm:$0x1]  ;;  %v2275_v13 = vrot.slane %v2273_v63, 5 }
 0x159   : > { %2079 = vrot.lane.b32.xlu2 %v2034_v14, %s4470_s22  ;;  %v2279_v14 = vrot.slane %v2277_v0, 4 }
 0x15a   : > { %v1678_v15 = vpop.permute.xlu0 %1677  ;;  %v1680_v17 = vpop.permute.xlu1 %1679 }
 0x15b   : > { %1725 = vst.msk [vmem:[#allocation2 + $0x4] sm:$0xf] %vm1723_vm10, %v1678_v15  ;;  %v1700_v16 = vpop.permute.xlu2 %1699  ;;  %v2222_v15 = vld [vmem:[%s5131_s21 + $0x1c] sm:$0xf] }
 0x15c   : > { %1726 = vst.msk [vmem:[#allocation2 + $0x8] sm:$0xf] %vm1723_vm10, %v1680_v17  ;;  %v2301_v17 = vshrl.u32 %v2222_v15, 16 }
 0x15d   : > { %1736 = vst.msk [vmem:[#allocation2 + $0x30] sm:$0xf] %vm1723_vm10, %v1700_v16  ;;  %v2224_v16 = vld [vmem:[%s5131_s21 + $0x24] sm:$0xf] }
 0x160   : > { %2081 = vrot.lane.b32.xlu0 %v2035_v18, %s4470_s22  ;;  %2083 = vrot.lane.b32.xlu1 %v2036_v19, %s4470_s22  ;;  %v2133_v18 = vld [vmem:[%s5189_s25 + $0x58] sm:$0xf]  ;;  %v2270_v19 = vor.u32 %v2269_v3, %v2266_v2 }
 0x161   : > { %2150 = vrot.lane.b32.xlu2 %v2118_v20, %s4471_s26  ;;  %v2247_v20 = vrot.slane %v2246_v5, 4  ;;  %v2345_v5 = vshll.u32 %v2228_v56, 16 }
 0x162   : > { %v1684_v21 = vpop.permute.xlu0 %1683  ;;  %v1686_v22 = vpop.permute.xlu1 %1685 }
 0x163   : > { %1728 = vst.msk [vmem:[#allocation2 + $0x10] sm:$0xf] %vm1723_vm10, %v1684_v21  ;;  %v1706_v23 = vpop.permute.xlu2 %1705  ;;  %v2261_v21 = vrot.slane %v2259_v6, 5  ;;  %v2252_v40 = vsel %vm4597_vm2, %v2247_v20, %v5234_v57  ;;  %v2336_v57 = vshrl.u32 %v2227_v54, 16  ;;  %v2347_v20 = vrot.slane %v2345_v5, 5 }
 0x164   : > { %1729 = vst.msk [vmem:[#allocation2 + $0x14] sm:$0xf] %vm1723_vm10, %v1686_v22  ;;  %v2257_v22 = vrot.slane %v2256_v9, 4  ;;  %v2349_v9 = vshrl.u32 %v2228_v56, 16 }
 0x165   : > { %1739 = vst.msk [vmem:[#allocation2 + $0x3c] sm:$0xf] %vm1723_vm10, %v1706_v23  ;;  %v2290_v23 = vrot.slane %v2288_v10, 4  ;;  %v2338_v2 = vrot.slane %v2336_v57, 4 }
 0x168   : > { %2152 = vrot.lane.b32.xlu0 %v2119_v24, %s4471_s26  ;;  %2154 = vrot.lane.b32.xlu1 %v2120_v25, %s4471_s26  ;;  %v2293_v24 = vrot.slane %v2291_v11, 5  ;;  %v2297_v25 = vshll.u32 %v2222_v15, 16 }
 0x169   : > { %2156 = vrot.lane.b32.xlu2 %v2121_v26, %s4471_s26  ;;  %v2225_v26 = vld [vmem:[%s5131_s21 + $0x28] sm:$0xf] }
 0x16a   : > { %v1690_v27 = vpop.permute.xlu0 %1689  ;;  %v1692_v28 = vpop.permute.xlu1 %1691  ;;  %v2299_v42 = vrot.slane %v2297_v25, 5  ;;  %v2234_v25 = vld [vmem:[%s5131_s21 + $0x4c] sm:$0xf] }
 0x16b   : > { %1731 = vst.msk [vmem:[#allocation2 + $0x1c] sm:$0xf] %vm1723_vm10, %v1690_v27  ;;  %v1961_v29 = vpop.permute.xlu2 %1960 }
 0x16c   : > { %1732 = vst.msk [vmem:[#allocation2 + $0x20] sm:$0xf] %vm1723_vm10, %v1692_v28 }
 0x16d   : > { %2007 = vst.msk [vmem:[#allocation2 + $0x8] sm:$0xf] %vm2004_vm11, %v1961_v29  ;;  %v2280_v29 = vor.u32 %v2279_v14, %v2275_v13  ;;  %v2233_v14 = vld [vmem:[%s5131_s21 + $0x48] sm:$0xf] }
 0x170   : > { %2158 = vrot.lane.b32.xlu0 %v2122_v30, %s4471_s26  ;;  %2160 = vrot.lane.b32.xlu1 %v2123_v31, %s4471_s26  ;;  %v2283_v30 = vshll.u32 %v2220_v12, 16  ;;  %v2312_v31 = vshrl.u32 %v2224_v16, 16  ;;  %v2231_v12 = vld [vmem:[%s5131_s21 + $0x40] sm:$0xf] }
 0x171   : > { %2162 = vrot.lane.b32.xlu2 %v2124_v33, %s4471_s26  ;;  %v2315_v33 = vshll.u32 %v2224_v16, 16 }
 0x172   : > { %v1696_v34 = vpop.permute.xlu0 %1695  ;;  %v1698_v35 = vpop.permute.xlu1 %1697  ;;  %v2285_v44 = vrot.slane %v2283_v30, 5  ;;  %v2314_v46 = vrot.slane %v2312_v31, 4  ;;  %v2387_v30 = vshll.u32 %v2233_v14, 16 }
 0x173   : > { %1734 = vst.msk [vmem:[#allocation2 + $0x28] sm:$0xf] %vm1723_vm10, %v1696_v34  ;;  %v1967_v36 = vpop.permute.xlu2 %1966  ;;  %v2271_v34 = vrot.slane %v2270_v19, 4 }
 0x174   : > { %1735 = vst.msk [vmem:[#allocation2 + $0x2c] sm:$0xf] %vm1723_vm10, %v1698_v35  ;;  %v2303_v35 = vrot.slane %v2301_v17, 4 }
 0x175   : > { %2010 = vst.msk [vmem:[#allocation2 + $0x14] sm:$0xf] %vm2004_vm11, %v1967_v36  ;;  %v2321_v36 = vshll.u32 %v2225_v26, 16 }
 0x176   : > { %v2304_v49 = vor.u32 %v2303_v35, %v2299_v42 }
 0x177   : > { %v5266_v51 = vrot.slane %v2321_v36, 5  ;;  %v2393_v36 = vshll.u32 %v2234_v25, 16 }
 0x178   : > { %2164 = vrot.lane.b32.xlu0 %v2125_v37, %s4471_s26  ;;  %2166 = vrot.lane.b32.xlu1 %v2126_v38, %s4471_s26  ;;  %v2325_v37 = vshrl.u32 %v2225_v26, 16  ;;  %v2305_v0 = vrot.slane %v2304_v49, 4 }
 0x179   : > { %2168 = vrot.lane.b32.xlu2 %v2127_v39, %s4471_s26  ;;  %v2223_v39 = vld [vmem:[%s5131_s21 + $0x20] sm:$0x1] }
 0x17a   : > { %v1702_v41 = vpop.permute.xlu0 %1701  ;;  %v1704_v32 = vpop.permute.xlu1 %1703  ;;  %v2307_v50 = vshll.u32 %v2223_v39, 16  ;;  %v2327_v53 = vrot.slane %v2325_v37, 4  ;;  %v2397_v37 = vshrl.u32 %v2234_v25, 16  ;;  %v2232_v39 = vld [vmem:[%s5131_s21 + $0x44] sm:$0x1] }
 0x17b   : > { %1737 = vst.msk [vmem:[#allocation2 + $0x34] sm:$0xf] %vm1723_vm10, %v1702_v41  ;;  %v1973_v47 = vpop.permute.xlu2 %1972  ;;  %v2262_v41 = vsel %vm4597_vm2, %v2257_v22, %v2261_v21  ;;  %v2351_v21 = vrot.slane %v2349_v9, 4  ;;  %v2379_v49 = vshll.u32 %v2232_v39, 16  ;;  %v2499_v25 = vld [vmem:[%s5189_s25 + $0xc] sm:$0xf] }
 0x17c   : > { %1738 = vst.msk [vmem:[#allocation2 + $0x38] sm:$0xf] %vm1723_vm10, %v1704_v32  ;;  %v2294_v32 = vor.u32 %v2293_v24, %v2290_v23  ;;  %v2309_v1 = vrot.slane %v2307_v50, 5  ;;  %v2369_v24 = vshll.u32 %v2231_v12, 16  ;;  %v2236_v50 = vld [vmem:[%s5131_s21 + $0x54] sm:$0xf] }
 0x17d   : > { %2013 = vst.msk [vmem:[#allocation2 + $0x20] sm:$0xf] %vm2004_vm11, %v1973_v47  ;;  %v2317_v47 = vrot.slane %v2315_v33, 5  ;;  %v2498_v39 = vld [vmem:[%s5189_s25 + $0x8] sm:$0x1] }
 0x17e   : > { %v2295_v55 = vrot.slane %v2294_v32, 4  ;;  %v2310_v15 = vsel %vm4597_vm2, %v2305_v0, %v2309_v1  ;;  %v2381_v1 = vrot.slane %v2379_v49, 5 }
 0x17f   : > { %v2318_v3 = vor.u32 %v2317_v47, %v2314_v46  ;;  %v2237_v46 = vld [vmem:[%s5131_s21 + $0x58] sm:$0xf] }
 0x180   : > { %2170 = vrot.lane.b32.xlu0 %v2128_v43, %s4471_s26  ;;  %2172 = vrot.lane.b32.xlu1 %v2129_v48, %s4471_s26  ;;  %v2281_v43 = vrot.slane %v2280_v29, 4  ;;  %v2276_v48 = vsel %vm4597_vm2, %v2271_v34, %v2275_v13  ;;  %v2373_v13 = vshrl.u32 %v2231_v12, 16  ;;  %v2384_v29 = vshrl.u32 %v2233_v14, 16 }
 0x181   : > { %2174 = vrot.lane.b32.xlu2 %v2130_v52, %s4471_s26  ;;  %v2226_v52 = vld [vmem:[%s5131_s21 + $0x2c] sm:$0x1]  ;;  %v2319_v16 = vrot.slane %v2318_v3, 4 }
 0x182   : > { %v1957_v61 = vpop.permute.xlu0 %1956  ;;  %v1959_v62 = vpop.permute.xlu1 %1958  ;;  %v2286_v60 = vsel %vm4597_vm2, %v2281_v43, %v2285_v44  ;;  %v2331_v63 = vshll.u32 %v2226_v52, 16  ;;  %v2375_v33 = vrot.slane %v2373_v13, 4  ;;  %v2386_v43 = vrot.slane %v2384_v29, 4  ;;  %v2497_v13 = vld [vmem:[%s5189_s25 + $0x4] sm:$0xf] }
 0x183   : > { %2005 = vst.msk [vmem:[#allocation2] sm:$0xf] %vm2004_vm11, %v1957_v61  ;;  %v1979_v7 = vpop.permute.xlu2 %1978  ;;  %v2230_v61 = vld [vmem:[%s5131_s21 + $0x3c] sm:$0xf]  ;;  %v2324_v34 = vsel %vm4597_vm2, %v2319_v16, %v5266_v51  ;;  %v2389_v44 = vrot.slane %v2387_v30, 5  ;;  %v2399_v52 = vrot.slane %v2397_v37, 4 }
 0x184   : > { %2006 = vst.msk [vmem:[#allocation2 + $0x4] sm:$0xf] %vm2004_vm11, %v1959_v62  ;;  %v2339_v62 = vshll.u32 %v2227_v54, 16  ;;  %v2360_v10 = vshrl.u32 %v2230_v61, 16  ;;  %v2363_v11 = vshll.u32 %v2230_v61, 16  ;;  %v2333_v19 = vrot.slane %v2331_v63, 5 }
 0x185   : > { %2016 = vst.msk [vmem:[#allocation2 + $0x2c] sm:$0xf] %vm2004_vm11, %v1979_v7  ;;  %v2411_v54 = vshll.u32 %v2236_v50, 16  ;;  %v2417_v61 = vshll.u32 %v2237_v46, 16  ;;  %v2496_v63 = vld [vmem:[%s5189_s25] sm:$0xf] }
 0x186   : > { %v2341_v7 = vrot.slane %v2339_v62, 5  ;;  %v2362_v22 = vrot.slane %v2360_v10, 4  ;;  %v2365_v23 = vrot.slane %v2363_v11, 5  ;;  %v2421_v62 = vshrl.u32 %v2237_v46, 16 }
 0x187   : > { %v2413_v3 = vrot.slane %v2411_v54, 5  ;;  %v2521_v10 = vshrl.u32 %v2496_v63, 16  ;;  %v2524_v11 = vshll.u32 %v2496_v63, 16  ;;  %v2419_v12 = vrot.slane %v2417_v61, 5 }
 0x188   : > { %2176 = vrot.lane.b32.xlu0 %v2131_v4, %s4471_s26  ;;  %2178 = vrot.lane.b32.xlu1 %v2132_v8, %s4471_s26  ;;  %v2328_v4 = vor.u32 %v2327_v53, %v5266_v51  ;;  %v2300_v8 = vsel %vm4597_vm2, %v2295_v55, %v2299_v42  ;;  %v2342_v17 = vor.u32 %v2341_v7, %v2338_v2  ;;  %v2371_v42 = vrot.slane %v2369_v24, 5 }
 0x189   : > { %2180 = vrot.lane.b32.xlu2 %v2133_v18, %s4471_s26  ;;  %v2366_v32 = vor.u32 %v2365_v23, %v2362_v22  ;;  %v5305_v51 = vrot.slane %v2393_v36, 5  ;;  %v2408_v53 = vshrl.u32 %v2236_v50, 16  ;;  %v2423_v14 = vrot.slane %v2421_v62, 4 }
 0x18a   : > { %v1963_v27 = vpop.permute.xlu0 %1962  ;;  %v1965_v28 = vpop.permute.xlu1 %1964  ;;  %v2329_v18 = vrot.slane %v2328_v4, 4  ;;  %v2343_v31 = vrot.slane %v2342_v17, 4  ;;  %v2390_v4 = vor.u32 %v2389_v44, %v2386_v43  ;;  %v2523_v22 = vrot.slane %v2521_v10, 4  ;;  %v2508_v10 = vld [vmem:[%s5189_s25 + $0x30] sm:$0xf] }
 0x18b   : > { %2008 = vst.msk [vmem:[#allocation2 + $0xc] sm:$0xf] %vm2004_vm11, %v1963_v27  ;;  %v1985_v38 = vpop.permute.xlu2 %1984  ;;  %v2367_v57 = vrot.slane %v2366_v32, 4  ;;  %v2410_v2 = vrot.slane %v2408_v53, 4  ;;  %v2400_v5 = vor.u32 %v2399_v52, %v5305_v51  ;;  %v2526_v23 = vrot.slane %v2524_v11, 5 }
 0x18c   : > { %2009 = vst.msk [vmem:[#allocation2 + $0x10] sm:$0xf] %vm2004_vm11, %v1965_v28  ;;  %v2229_v28 = vld [vmem:[%s5131_s21 + $0x38] sm:$0x1]  ;;  %v2334_v35 = vsel %vm4597_vm2, %v2329_v18, %v2333_v19  ;;  %v2348_v47 = vsel %vm4597_vm2, %v2343_v31, %v2347_v20  ;;  %v2391_v18 = vrot.slane %v2390_v4, 4  ;;  %v2530_v24 = vshll.u32 %v2497_v13, 16 }
 0x18d   : > { %2019 = vst.msk [vmem:[#allocation2 + $0x38] sm:$0xf] %vm2004_vm11, %v1985_v38  ;;  %v2372_v9 = vsel %vm4597_vm2, %v2367_v57, %v2371_v42  ;;  %v2414_v16 = vor.u32 %v2413_v3, %v2410_v2  ;;  %v2401_v19 = vrot.slane %v2400_v5, 4  ;;  %v2424_v29 = vor.u32 %v2423_v14, %v2419_v12  ;;  %v5346_v2 = vld [vmem:[%s5189_s25 + $0x1c] sm:$0xf] }
 0x18e   : > { %v2545_v36 = vshrl.u32 %v2499_v25, 16  ;;  %v2548_v37 = vshll.u32 %v2499_v25, 16  ;;  %v2617_v14 = vshrl.u32 %v2508_v10, 16 }
 0x18f   : > { %v2415_v31 = vrot.slane %v2414_v16, 4  ;;  %v2425_v43 = vrot.slane %v2424_v29, 4 }
 0x190   : > { %2431 = vrot.lane.b32.xlu0 %v2252_v40, %s4472_s27  ;;  %2433 = vrot.lane.b32.xlu1 %v2262_v41, %s4472_s27  ;;  %v2352_v40 = vor.u32 %v2351_v21, %v2347_v20  ;;  %v2355_v41 = vshll.u32 %v2229_v28, 16  ;;  %v2238_v21 = vld [vmem:[%s5131_s21 + $0x5c] sm:$0x1]  ;;  %v2500_v28 = vld [vmem:[%s5189_s25 + $0x10] sm:$0xf]  ;;  %v2547_v49 = vrot.slane %v2545_v36, 4 }
 0x191   : > { %2435 = vrot.lane.b32.xlu2 %v2276_v48, %s4472_s27  ;;  %v2376_v48 = vor.u32 %v2375_v33, %v2371_v42  ;;  %v2427_v30 = vshll.u32 %v2238_v21, 16  ;;  %v2554_v32 = vshll.u32 %v2500_v28, 16  ;;  %v2558_v42 = vshrl.u32 %v2500_v28, 16 }
 0x192   : > { %v1969_v58 = vpop.permute.xlu0 %1968  ;;  %v1971_v59 = vpop.permute.xlu1 %1970  ;;  %v2353_v55 = vrot.slane %v2352_v40, 4  ;;  %v2357_v56 = vrot.slane %v2355_v41, 5  ;;  %v2527_v40 = vor.u32 %v2526_v23, %v2523_v22  ;;  %v2532_v41 = vrot.slane %v2530_v24, 5 }
 0x193   : > { %2011 = vst.msk [vmem:[#allocation2 + $0x18] sm:$0xf] %vm2004_vm11, %v1969_v58  ;;  %v2056_v6 = vpop.permute.xlu2 %2055  ;;  %v2235_v58 = vld [vmem:[%s5131_s21 + $0x50] sm:$0x1]  ;;  %v2377_v0 = vrot.slane %v2376_v48, 4  ;;  %v2420_v44 = vsel %vm4597_vm2, %v2415_v31, %v2419_v12  ;;  %v2550_v50 = vrot.slane %v2548_v37, 5 }
 0x194   : > { %2012 = vst.msk [vmem:[#allocation2 + $0x1c] sm:$0xf] %vm2004_vm11, %v1971_v59  ;;  %v2502_v48 = vld [vmem:[%s5189_s25 + $0x18] sm:$0xf]  ;;  %v2429_v53 = vrot.slane %v2427_v30, 5  ;;  %v2528_v54 = vrot.slane %v2527_v40, 4 }
 0x195   : > { %2103 = vst.msk [vmem:[#allocation2 + $0x4] sm:$0xf] %vm2101_vm12, %v2056_v6  ;;  %v2403_v6 = vshll.u32 %v2235_v58, 16  ;;  %v2382_v17 = vsel %vm4597_vm2, %v2377_v0, %v2381_v1  ;;  %v2572_v52 = vshll.u32 %v2502_v48, 16  ;;  %v2551_v0 = vor.u32 %v2550_v50, %v2547_v49  ;;  %v2777_v37 = vld [vmem:[%s5379_s11] sm:$0xf] }
 0x196   : > { %v2430_v3 = vsel %vm4597_vm2, %v2425_v43, %v2429_v53  ;;  %v2533_v4 = vsel %vm4597_vm2, %v2528_v54, %v2532_v41  ;;  %v2619_v21 = vrot.slane %v2617_v14, 4  ;;  %v2582_v53 = vshrl.u32 %v5346_v2, 16 }
 0x197   : > { %v2405_v20 = vrot.slane %v2403_v6, 5  ;;  %v2574_v63 = vrot.slane %v2572_v52, 5  ;;  %v2552_v11 = vrot.slane %v2551_v0, 4  ;;  %v2973_v0 = vld [vmem:[%s5379_s11 + $0x8] sm:$0x1] }
 0x198   : > { %2437 = vrot.lane.b32.xlu0 %v2286_v60, %s4472_s27  ;;  %2439 = vrot.lane.b32.xlu1 %v2300_v8, %s4472_s27  ;;  %v2358_v8 = vsel %vm4597_vm2, %v2353_v55, %v2357_v56  ;;  %v2556_v55 = vrot.slane %v2554_v32, 5  ;;  %v2560_v56 = vrot.slane %v2558_v42, 4  ;;  %v2971_v42 = vld [vmem:[%s5379_s11] sm:$0xf] }
 0x199   : > { %2441 = vrot.lane.b32.xlu2 %v2310_v15, %s4472_s27  ;;  %v2534_v15 = vshrl.u32 %v2497_v13, 16  ;;  %v2996_v43 = vshrl.u32 %v2971_v42, 16 }
 0x19a   : > { %v1975_v26 = vpop.permute.xlu0 %1974  ;;  %v1977_v27 = vpop.permute.xlu1 %1976  ;;  %v2561_v5 = vor.u32 %v2560_v56, %v2556_v55  ;;  %v2557_v24 = vsel %vm4597_vm2, %v2552_v11, %v2556_v55 }
 0x19b   : > { %2014 = vst.msk [vmem:[#allocation2 + $0x24] sm:$0xf] %vm2004_vm11, %v1975_v26  ;;  %v2062_v38 = vpop.permute.xlu2 %2061  ;;  %v2536_v33 = vrot.slane %v2534_v15, 4  ;;  %v2620_v15 = vshll.u32 %v2508_v10, 16 }
 0x19c   : > { %2015 = vst.msk [vmem:[#allocation2 + $0x28] sm:$0xf] %vm2004_vm11, %v1977_v27  ;;  %v2562_v12 = vrot.slane %v2561_v5, 4  ;;  %v2785_v5 = vld [vmem:[%s5379_s11 + $0x30] sm:$0xf] }
 0x19d   : > { %2106 = vst.msk [vmem:[#allocation2 + $0x10] sm:$0xf] %vm2101_vm12, %v2062_v38  ;;  %v2537_v46 = vor.u32 %v2536_v33, %v2532_v41  ;;  %v2622_v22 = vrot.slane %v2620_v15, 5  ;;  %v3253_v15 = vld [vmem:[%s5398_s18 + $0x4] sm:$0xf] }
 0x19f   : > { %v2623_v29 = vor.u32 %v2622_v22, %v2619_v21 }
 0x1a0   : > { %2443 = vrot.lane.b32.xlu0 %v2324_v34, %s4472_s27  ;;  %2445 = vrot.lane.b32.xlu1 %v2334_v35, %s4472_s27  ;;  %v2396_v34 = vsel %vm4597_vm2, %v2391_v18, %v5305_v51  ;;  %v2406_v35 = vsel %vm4597_vm2, %v2401_v19, %v2405_v20  ;;  %v2569_v51 = vshrl.u32 %v2502_v48, 16  ;;  %v2509_v18 = vld [vmem:[%s5189_s25 + $0x34] sm:$0xf]  ;;  %v2972_v48 = vld [vmem:[%s5379_s11 + $0x4] sm:$0xf] }
 0x1a1   : > { %2447 = vrot.lane.b32.xlu2 %v2348_v47, %s4472_s27  ;;  %v2540_v47 = vshll.u32 %v2498_v39, 16  ;;  %v2624_v36 = vrot.slane %v2623_v29, 4  ;;  %v2778_v39 = vld [vmem:[%s5379_s11 + $0x4] sm:$0xf]  ;;  %v3005_v54 = vshll.u32 %v2972_v48, 16  ;;  %v3009_v55 = vshrl.u32 %v2972_v48, 16 }
 0x1a2   : > { %v1981_v59 = vpop.permute.xlu0 %1980  ;;  %v1983_v60 = vpop.permute.xlu1 %1982  ;;  %v2571_v62 = vrot.slane %v2569_v51, 4  ;;  %v2998_v51 = vrot.slane %v2996_v43, 4  ;;  %v3254_v29 = vld [vmem:[%s5398_s18 + $0x8] sm:$0x1] }
 0x1a3   : > { %2017 = vst.msk [vmem:[#allocation2 + $0x30] sm:$0xf] %vm2004_vm11, %v1981_v59  ;;  %v2068_v7 = vpop.permute.xlu2 %2067  ;;  %v2501_v59 = vld [vmem:[%s5189_s25 + $0x14] sm:$0x1]  ;;  %v2542_v61 = vrot.slane %v2540_v47, 5 }
 0x1a4   : > { %2018 = vst.msk [vmem:[#allocation2 + $0x34] sm:$0xf] %vm2004_vm11, %v1983_v60  ;;  %v2538_v60 = vrot.slane %v2537_v46, 4  ;;  %v2564_v6 = vshll.u32 %v2501_v59, 16  ;;  %v2875_v59 = vld [vmem:[%s5398_s18 + $0x4] sm:$0xf] }
 0x1a5   : > { %2109 = vst.msk [vmem:[#allocation2 + $0x1c] sm:$0xf] %vm2101_vm12, %v2068_v7 }
 0x1a6   : > { %v2543_v7 = vsel %vm4597_vm2, %v2538_v60, %v2542_v61  ;;  %v2566_v13 = vrot.slane %v2564_v6, 5  ;;  %v3007_v61 = vrot.slane %v3005_v54, 5 }
 0x1a8   : > { %2449 = vrot.lane.b32.xlu0 %v2358_v8, %s4472_s27  ;;  %2451 = vrot.lane.b32.xlu1 %v2372_v9, %s4472_s27  ;;  %v2575_v8 = vor.u32 %v2574_v63, %v2571_v62  ;;  %v2578_v9 = vshll.u32 %v5346_v2, 16  ;;  %v2567_v25 = vsel %vm4597_vm2, %v2562_v12, %v2566_v13  ;;  %v3011_v62 = vrot.slane %v3009_v55, 4 }
 0x1a9   : > { %2453 = vrot.lane.b32.xlu2 %v2382_v17, %s4472_s27  ;;  %v2584_v63 = vrot.slane %v2582_v53, 4 }
 0x1aa   : > { %v1987_v26 = vpop.permute.xlu0 %1986  ;;  %v2054_v27 = vpop.permute.xlu1 %2053  ;;  %v2576_v19 = vrot.slane %v2575_v8, 4  ;;  %v5362_v20 = vrot.slane %v2578_v9, 5  ;;  %v3012_v8 = vor.u32 %v3011_v62, %v3007_v61  ;;  %v3015_v9 = vshll.u32 %v2973_v0, 16 }
 0x1ab   : > { %2020 = vst.msk [vmem:[#allocation2 + $0x3c] sm:$0xf] %vm2004_vm11, %v1987_v26  ;;  %v2074_v38 = vpop.permute.xlu2 %2073  ;;  %v2626_v26 = vshll.u32 %v2509_v18, 16 }
 0x1ac   : > { %2102 = vst.msk [vmem:[#allocation2] sm:$0xf] %vm2101_vm12, %v2054_v27  ;;  %v2630_v27 = vshrl.u32 %v2509_v18, 16  ;;  %v2581_v28 = vsel %vm4597_vm2, %v2576_v19, %v5362_v20  ;;  %v2585_v10 = vor.u32 %v2584_v63, %v5362_v20  ;;  %v3013_v18 = vrot.slane %v3012_v8, 4 }
 0x1ad   : > { %2112 = vst.msk [vmem:[#allocation2 + $0x28] sm:$0xf] %vm2101_vm12, %v2074_v38  ;;  %v2628_v30 = vrot.slane %v2626_v26, 5  ;;  %v3017_v19 = vrot.slane %v3015_v9, 5  ;;  %v2516_v9 = vld [vmem:[%s5189_s25 + $0x50] sm:$0x1] }
 0x1ae   : > { %v2632_v31 = vrot.slane %v2630_v27, 4  ;;  %v2586_v21 = vrot.slane %v2585_v10, 4  ;;  %v2782_v10 = vld [vmem:[%s5379_s11 + $0x1c] sm:$0xf] }
 0x1af   : > { %v2629_v32 = vsel %vm4597_vm2, %v2624_v36, %v2628_v30 }
 0x1b0   : > { %2455 = vrot.lane.b32.xlu0 %v2396_v34, %s4472_s27  ;;  %2457 = vrot.lane.b32.xlu1 %v2406_v35, %s4472_s27  ;;  %v2510_v35 = vld [vmem:[%s5189_s25 + $0x38] sm:$0x1]  ;;  %v2633_v40 = vor.u32 %v2632_v31, %v2628_v30  ;;  %v3018_v30 = vsel %vm4597_vm2, %v3013_v18, %v3017_v19  ;;  %v3264_v18 = vld [vmem:[%s5398_s18 + $0x30] sm:$0xf] }
 0x1b1   : > { %2459 = vrot.lane.b32.xlu2 %v2420_v44, %s4472_s27  ;;  %v2636_v41 = vshll.u32 %v2510_v35, 16  ;;  %v2999_v44 = vshll.u32 %v2971_v42, 16  ;;  %v2882_v35 = vld [vmem:[%s5398_s18 + $0x30] sm:$0xf]  ;;  %v3373_v19 = vshrl.u32 %v3264_v18, 16 }
 0x1b2   : > { %v2058_v57 = vpop.permute.xlu0 %2057  ;;  %v2060_v58 = vpop.permute.xlu1 %2059  ;;  %v2634_v46 = vrot.slane %v2633_v40, 4  ;;  %v2984_v40 = vld [vmem:[%s5379_s11 + $0x34] sm:$0xf] }
 0x1b3   : > { %2104 = vst.msk [vmem:[#allocation2 + $0x8] sm:$0xf] %vm2101_vm12, %v2058_v57  ;;  %v2080_v1 = vpop.permute.xlu2 %2079  ;;  %v2638_v47 = vrot.slane %v2636_v41, 5  ;;  %v3001_v52 = vrot.slane %v2999_v44, 5  ;;  %v2514_v44 = vld [vmem:[%s5189_s25 + $0x48] sm:$0xf] }
 0x1b4   : > { %2105 = vst.msk [vmem:[#allocation2 + $0xc] sm:$0xf] %vm2101_vm12, %v2060_v58  ;;  %v2874_v58 = vld [vmem:[%s5398_s18] sm:$0xf]  ;;  %v3105_v54 = vshrl.u32 %v2984_v40, 16  ;;  %v2665_v55 = vshrl.u32 %v2514_v44, 16 }
 0x1b5   : > { %2115 = vst.msk [vmem:[#allocation2 + $0x34] sm:$0xf] %vm2101_vm12, %v2080_v1  ;;  %v2639_v57 = vsel %vm4597_vm2, %v2634_v46, %v2638_v47  ;;  %v3002_v60 = vor.u32 %v3001_v52, %v2998_v51  ;;  %v3101_v51 = vshll.u32 %v2984_v40, 16 }
 0x1b6   : > { %v3107_v62 = vrot.slane %v3105_v54, 4  ;;  %v2667_v63 = vrot.slane %v2665_v55, 4 }
 0x1b7   : > { %v3003_v6 = vrot.slane %v3002_v60, 4 }
 0x1b8   : > { %2461 = vrot.lane.b32.xlu0 %v2430_v3, %s4472_s27  ;;  %2712 = vrot.lane.b32.xlu1 %v2533_v4, %s4473_s28  ;;  %v2504_v3 = vld [vmem:[%s5189_s25 + $0x20] sm:$0x1] }
 0x1b9   : > { %2714 = vrot.lane.b32.xlu2 %v2543_v7, %s4473_s28  ;;  %v3252_v4 = vld [vmem:[%s5398_s18] sm:$0xf]  ;;  %v2786_v7 = vld [vmem:[%s5379_s11 + $0x34] sm:$0xf]  ;;  %v2588_v12 = vshll.u32 %v2504_v3, 16 }
 0x1ba   : > { %v2064_v17 = vpop.permute.xlu0 %2063  ;;  %v2066_v16 = vpop.permute.xlu1 %2065  ;;  %v3277_v13 = vshrl.u32 %v3252_v4, 16  ;;  %v3280_v14 = vshll.u32 %v3252_v4, 16  ;;  %v2985_v4 = vld [vmem:[%s5379_s11 + $0x38] sm:$0x1] }
 0x1bb   : > { %2107 = vst.msk [vmem:[#allocation2 + $0x14] sm:$0xf] %vm2101_vm12, %v2064_v17  ;;  %v2151_v23 = vpop.permute.xlu2 %2150  ;;  %v3290_v17 = vshrl.u32 %v3253_v15, 16  ;;  %v2590_v20 = vrot.slane %v2588_v12, 5  ;;  %v3111_v12 = vshll.u32 %v2985_v4, 16 }
 0x1bc   : > { %2108 = vst.msk [vmem:[#allocation2 + $0x18] sm:$0xf] %vm2101_vm12, %v2066_v16  ;;  %v3008_v16 = vsel %vm4597_vm2, %v3003_v6, %v3007_v61  ;;  %v3279_v22 = vrot.slane %v3277_v13, 4  ;;  %v3103_v61 = vrot.slane %v3101_v51, 5 }
 0x1bd   : > { %2199 = vst.msk [vmem:[#allocation2] sm:$0xf] %vm2198_vm13, %v2151_v23  ;;  %v3282_v23 = vrot.slane %v3280_v14, 5  ;;  %v3292_v27 = vrot.slane %v3290_v17, 4  ;;  %v2591_v31 = vsel %vm4597_vm2, %v2586_v21, %v2590_v20  ;;  %v3113_v20 = vrot.slane %v3111_v12, 5 }
 0x1c0   : > { %2716 = vrot.lane.b32.xlu0 %v2557_v24, %s4473_s28  ;;  %2718 = vrot.lane.b32.xlu1 %v2567_v25, %s4473_s28  ;;  %v3286_v24 = vshll.u32 %v3253_v15, 16 }
 0x1c1   : > { %2720 = vrot.lane.b32.xlu2 %v2581_v28, %s4473_s28 }
 0x1c2   : > { %v2070_v33 = vpop.permute.xlu0 %2069  ;;  %v2072_v34 = vpop.permute.xlu1 %2071 }
 0x1c3   : > { %2110 = vst.msk [vmem:[#allocation2 + $0x20] sm:$0xf] %vm2101_vm12, %v2070_v33  ;;  %v2157_v38 = vpop.permute.xlu2 %2156  ;;  %v3283_v33 = vor.u32 %v3282_v23, %v3279_v22  ;;  %v3376_v23 = vshll.u32 %v3264_v18, 16 }
 0x1c4   : > { %2111 = vst.msk [vmem:[#allocation2 + $0x24] sm:$0xf] %vm2101_vm12, %v2072_v34  ;;  %v3288_v34 = vrot.slane %v3286_v24, 5 }
 0x1c5   : > { %2202 = vst.msk [vmem:[#allocation2 + $0xc] sm:$0xf] %vm2198_vm13, %v2157_v38  ;;  %v2983_v38 = vld [vmem:[%s5379_s11 + $0x30] sm:$0xf] }
 0x1c6   : > { %v3293_v36 = vor.u32 %v3292_v27, %v3288_v34  ;;  %v3092_v41 = vshrl.u32 %v2983_v38, 16 }
 0x1c8   : > { %2809 = vrot.lane.b32.xlu0 %v2777_v37, %s4474_s12  ;;  %2811 = vrot.lane.b32.xlu1 %v2778_v39, %s4474_s12  ;;  %v3296_v37 = vshll.u32 %v3254_v29, 16  ;;  %v3284_v39 = vrot.slane %v3283_v33, 4  ;;  %v3294_v46 = vrot.slane %v3293_v36, 4  ;;  %v3094_v48 = vrot.slane %v3092_v41, 4  ;;  %v2977_v41 = vld [vmem:[%s5379_s11 + $0x18] sm:$0xf] }
 0x1c9   : > { %2728 = vrot.lane.b32.xlu2 %v2629_v32, %s4473_s28  ;;  %v3095_v32 = vshll.u32 %v2983_v38, 16  ;;  %v3375_v29 = vrot.slane %v3373_v19, 4 }
 0x1ca   : > { %v2076_v49 = vpop.permute.xlu0 %2075  ;;  %v2078_v50 = vpop.permute.xlu1 %2077  ;;  %v3298_v47 = vrot.slane %v3296_v37, 5  ;;  %v3289_v53 = vsel %vm4597_vm2, %v3284_v39, %v3288_v34 }
 0x1cb   : > { %2113 = vst.msk [vmem:[#allocation2 + $0x2c] sm:$0xf] %vm2101_vm12, %v2076_v49  ;;  %v2163_v56 = vpop.permute.xlu2 %2162  ;;  %v3097_v49 = vrot.slane %v3095_v32, 5 }
 0x1cc   : > { %2114 = vst.msk [vmem:[#allocation2 + $0x30] sm:$0xf] %vm2101_vm12, %v2078_v50  ;;  %v2883_v50 = vld [vmem:[%s5398_s18 + $0x34] sm:$0xf] }
 0x1cd   : > { %2205 = vst.msk [vmem:[#allocation2 + $0x18] sm:$0xf] %vm2198_vm13, %v2163_v56  ;;  %v2668_v56 = vshll.u32 %v2514_v44, 16  ;;  %v3098_v60 = vor.u32 %v3097_v49, %v3094_v48  ;;  %v2978_v44 = vld [vmem:[%s5379_s11 + $0x1c] sm:$0xf]  ;;  %v3044_v49 = vshrl.u32 %v2977_v41, 16 }
 0x1ce   : > { %v2879_v48 = vld [vmem:[%s5398_s18 + $0x1c] sm:$0xf]  ;;  %v3053_v54 = vshll.u32 %v2978_v44, 16  ;;  %v3057_v55 = vshrl.u32 %v2978_v44, 16 }
 0x1cf   : > { %v2670_v0 = vrot.slane %v2668_v56, 5 }
 0x1d0   : > { %2730 = vrot.lane.b32.xlu0 %v2639_v57, %s4473_s28  ;;  %2906 = vrot.lane.b32.xlu1 %v2874_v58, %s4475_s16  ;;  %v2515_v57 = vld [vmem:[%s5189_s25 + $0x4c] sm:$0xf] }
 0x1d1   : > { %2908 = vrot.lane.b32.xlu2 %v2875_v59, %s4475_s16  ;;  %v2678_v58 = vshrl.u32 %v2515_v57, 16  ;;  %v3299_v59 = vsel %vm4597_vm2, %v3294_v46, %v3298_v47  ;;  %v2671_v13 = vor.u32 %v2670_v0, %v2667_v63  ;;  %v2878_v46 = vld [vmem:[%s5398_s18 + $0x18] sm:$0xf]  ;;  %v3059_v63 = vrot.slane %v3057_v55, 4 }
 0x1d2   : > { %v2082_v1 = vpop.permute.xlu0 %2081  ;;  %v2084_v2 = vpop.permute.xlu1 %2083 }
 0x1d3   : > { %2116 = vst.msk [vmem:[#allocation2 + $0x38] sm:$0xf] %vm2101_vm12, %v2082_v1  ;;  %v2169_v11 = vpop.permute.xlu2 %2168  ;;  %v2674_v1 = vshll.u32 %v2515_v57, 16  ;;  %v2680_v6 = vrot.slane %v2678_v58, 4  ;;  %v2672_v22 = vrot.slane %v2671_v13, 4  ;;  %v3046_v57 = vrot.slane %v3044_v49, 4 }
 0x1d4   : > { %2117 = vst.msk [vmem:[#allocation2 + $0x3c] sm:$0xf] %vm2101_vm12, %v2084_v2  ;;  %v2989_v13 = vld [vmem:[%s5379_s11 + $0x48] sm:$0xf] }
 0x1d5   : > { %2208 = vst.msk [vmem:[#allocation2 + $0x24] sm:$0xf] %vm2198_vm13, %v2169_v11  ;;  %v3108_v11 = vor.u32 %v3107_v62, %v3103_v61  ;;  %v2676_v14 = vrot.slane %v2674_v1, 5  ;;  %v2979_v62 = vld [vmem:[%s5379_s11 + $0x20] sm:$0x1] }
 0x1d6   : > { %v3063_v4 = vshll.u32 %v2979_v62, 16 }
 0x1d7   : > { %v2681_v17 = vor.u32 %v2680_v6, %v2676_v14  ;;  %v3109_v21 = vrot.slane %v3108_v11, 4  ;;  %v2677_v34 = vsel %vm4597_vm2, %v2672_v22, %v2676_v14  ;;  %v3259_v11 = vld [vmem:[%s5398_s18 + $0x1c] sm:$0xf]  ;;  %v2790_v14 = vld [vmem:[%s5379_s11 + $0x4c] sm:$0xf] }
 0x1d8   : > { %2825 = vrot.lane.b32.xlu0 %v2785_v5, %s4474_s12  ;;  %2827 = vrot.lane.b32.xlu1 %v2786_v7, %s4474_s12  ;;  %v3099_v5 = vrot.slane %v3098_v60, 4  ;;  %v2781_v7 = vld [vmem:[%s5379_s11 + $0x18] sm:$0xf]  ;;  %v3338_v12 = vshrl.u32 %v3259_v11, 16 }
 0x1d9   : > { %3187 = vrot.lane.b32.xlu2 %v3008_v16, %s4476_s19  ;;  %v2684_v16 = vshll.u32 %v2516_v9, 16  ;;  %v2682_v27 = vrot.slane %v2681_v17, 4  ;;  %v3114_v33 = vsel %vm4597_vm2, %v3109_v21, %v3113_v20  ;;  %v3065_v17 = vrot.slane %v3063_v4, 5  ;;  %v2990_v20 = vld [vmem:[%s5379_s11 + $0x4c] sm:$0xf] }
 0x1da   : > { %v2153_v25 = vpop.permute.xlu0 %2152  ;;  %v2155_v26 = vpop.permute.xlu1 %2154  ;;  %v3104_v15 = vsel %vm4597_vm2, %v3099_v5, %v3103_v61  ;;  %v3055_v61 = vrot.slane %v3053_v54, 5  ;;  %v3334_v21 = vshll.u32 %v3259_v11, 16 }
 0x1db   : > { %2200 = vst.msk [vmem:[#allocation2 + $0x4] sm:$0xf] %vm2198_vm13, %v2153_v25  ;;  %v2175_v28 = vpop.permute.xlu2 %2174 }
 0x1dc   : > { %2201 = vst.msk [vmem:[#allocation2 + $0x8] sm:$0xf] %vm2198_vm13, %v2155_v26  ;;  %v3265_v26 = vld [vmem:[%s5398_s18 + $0x34] sm:$0xf] }
 0x1dd   : > { %2211 = vst.msk [vmem:[#allocation2 + $0x30] sm:$0xf] %vm2198_vm13, %v2175_v28  ;;  %v2686_v28 = vrot.slane %v2684_v16, 5  ;;  %v3386_v36 = vshrl.u32 %v3265_v26, 16 }
 0x1df   : > { %v2687_v37 = vsel %vm4597_vm2, %v2682_v27, %v2686_v28  ;;  %v3388_v40 = vrot.slane %v3386_v36, 4  ;;  %v3149_v27 = vshll.u32 %v2990_v20, 16  ;;  %v3153_v28 = vshrl.u32 %v2990_v20, 16 }
 0x1e0   : > { %3189 = vrot.lane.b32.xlu0 %v3018_v30, %s4476_s19  ;;  %2722 = vrot.lane.b32.xlu1 %v2591_v31, %s4473_s28  ;;  %v3378_v30 = vrot.slane %v3376_v23, 5 }
 0x1e1   : > { %2922 = vrot.lane.b32.xlu2 %v2882_v35, %s4475_s16  ;;  %v3382_v35 = vshll.u32 %v3265_v26, 16  ;;  %v3340_v26 = vrot.slane %v3338_v12, 4 }
 0x1e2   : > { %v2159_v42 = vpop.permute.xlu0 %2158  ;;  %v2161_v43 = vpop.permute.xlu1 %2160  ;;  %v3379_v38 = vor.u32 %v3378_v30, %v3375_v29  ;;  %v3260_v30 = vld [vmem:[%s5398_s18 + $0x20] sm:$0x1] }
 0x1e3   : > { %2203 = vst.msk [vmem:[#allocation2 + $0x10] sm:$0xf] %vm2198_vm13, %v2159_v42  ;;  %v2181_v52 = vpop.permute.xlu2 %2180  ;;  %v3384_v39 = vrot.slane %v3382_v35, 5  ;;  %v3336_v35 = vrot.slane %v3334_v21, 5 }
 0x1e4   : > { %2204 = vst.msk [vmem:[#allocation2 + $0x14] sm:$0xf] %vm2198_vm13, %v2161_v43  ;;  %v3266_v43 = vld [vmem:[%s5398_s18 + $0x38] sm:$0x1]  ;;  %v3380_v47 = vrot.slane %v3379_v38, 4 }
 0x1e5   : > { %2214 = vst.msk [vmem:[#allocation2 + $0x3c] sm:$0xf] %vm2198_vm13, %v2181_v52  ;;  %v3389_v52 = vor.u32 %v3388_v40, %v3384_v39  ;;  %v2886_v38 = vld [vmem:[%s5398_s18 + $0x48] sm:$0xf]  ;;  %v3344_v40 = vshll.u32 %v3260_v30, 16 }
 0x1e6   : > { %v3385_v56 = vsel %vm4597_vm2, %v3380_v47, %v3384_v39  ;;  %v3341_v39 = vor.u32 %v3340_v26, %v3336_v35  ;;  %v3271_v47 = vld [vmem:[%s5398_s18 + $0x4c] sm:$0xf]  ;;  %v2513_v30 = vld [vmem:[%s5189_s25 + $0x44] sm:$0x1] }
 0x1e8   : > { %2924 = vrot.lane.b32.xlu0 %v2883_v50, %s4475_s16  ;;  %3468 = vrot.lane.b32.xlu1 %v3289_v53, %s4477_s20  ;;  %v3047_v50 = vshll.u32 %v2977_v41, 16  ;;  %v3392_v53 = vshll.u32 %v3266_v43, 16  ;;  %v3270_v41 = vld [vmem:[%s5398_s18 + $0x48] sm:$0xf] }
 0x1e9   : > { %3470 = vrot.lane.b32.xlu2 %v3299_v59, %s4477_s20  ;;  %v3390_v59 = vrot.slane %v3389_v52, 4  ;;  %v3421_v43 = vshrl.u32 %v3270_v41, 16  ;;  %v3342_v52 = vrot.slane %v3341_v39, 4  ;;  %v2780_v39 = vld [vmem:[%s5379_s11 + $0x10] sm:$0xf] }
 0x1ea   : > { %v2165_v2 = vpop.permute.xlu0 %2164  ;;  %v2167_v3 = vpop.permute.xlu1 %2166  ;;  %v3049_v58 = vrot.slane %v3047_v50, 5  ;;  %v3394_v60 = vrot.slane %v3392_v53, 5  ;;  %v3346_v53 = vrot.slane %v3344_v40, 5 }
 0x1eb   : > { %2206 = vst.msk [vmem:[#allocation2 + $0x1c] sm:$0xf] %vm2198_vm13, %v2165_v2  ;;  %v2436_v8 = vpop.permute.xlu2 %2435  ;;  %v3258_v2 = vld [vmem:[%s5398_s18 + $0x18] sm:$0xf]  ;;  %v3423_v54 = vrot.slane %v3421_v43, 4  ;;  %v4403_v43 = vld [vmem:[%s5890_s8 + $0x30] sm:$0xff] }
 0x1ec   : > { %2207 = vst.msk [vmem:[#allocation2 + $0x20] sm:$0xf] %vm2198_vm13, %v2167_v3  ;;  %v3050_v3 = vor.u32 %v3049_v58, %v3046_v57  ;;  %v3395_v6 = vsel %vm4597_vm2, %v3390_v59, %v3394_v60  ;;  %v3325_v9 = vshrl.u32 %v3258_v2, 16  ;;  %v3430_v58 = vshll.u32 %v3271_v47, 16 }
 0x1ed   : > { %2482 = vst.msk [vmem:[#allocation2 + $0x8] sm:$0xf] %vm2479_vm14, %v2436_v8  ;;  %v3060_v8 = vor.u32 %v3059_v63, %v3055_v61  ;;  %v3434_v59 = vshrl.u32 %v3271_v47, 16  ;;  %v2975_v47 = vld [vmem:[%s5379_s11 + $0x10] sm:$0xf] }
 0x1ee   : > { %v3327_v18 = vrot.slane %v3325_v9, 4  ;;  %v3432_v4 = vrot.slane %v3430_v58, 5  ;;  %v2511_v9 = vld [vmem:[%s5189_s25 + $0x3c] sm:$0xf] }
 0x1ef   : > { %v3061_v16 = vrot.slane %v3060_v8, 4 }
 0x1f0   : > { %2817 = vrot.lane.b32.xlu0 %v2781_v7, %s4474_s12  ;;  %2819 = vrot.lane.b32.xlu1 %v2782_v10, %s4474_s12  ;;  %v2789_v7 = vld [vmem:[%s5379_s11 + $0x48] sm:$0xf]  ;;  %v3328_v10 = vshll.u32 %v3258_v2, 16 }
 0x1f1   : > { %3203 = vrot.lane.b32.xlu2 %v3104_v15, %s4476_s19  ;;  %v3051_v15 = vrot.slane %v3050_v3, 4 }
 0x1f2   : > { %v2171_v24 = vpop.permute.xlu0 %2170  ;;  %v2173_v25 = vpop.permute.xlu1 %2172  ;;  %v3330_v19 = vrot.slane %v3328_v10, 5  ;;  %v2512_v10 = vld [vmem:[%s5189_s25 + $0x40] sm:$0xf] }
 0x1f3   : > { %2209 = vst.msk [vmem:[#allocation2 + $0x28] sm:$0xf] %vm2198_vm13, %v2171_v24  ;;  %v2442_v31 = vpop.permute.xlu2 %2441  ;;  %v3140_v24 = vshrl.u32 %v2989_v13, 16  ;;  %v2654_v21 = vshrl.u32 %v2512_v10, 16 }
 0x1f4   : > { %2210 = vst.msk [vmem:[#allocation2 + $0x2c] sm:$0xf] %vm2198_vm13, %v2173_v25  ;;  %v3143_v25 = vshll.u32 %v2989_v13, 16 }
 0x1f5   : > { %2485 = vst.msk [vmem:[#allocation2 + $0x14] sm:$0xf] %vm2479_vm14, %v2442_v31  ;;  %v3056_v31 = vsel %vm4597_vm2, %v3051_v15, %v3055_v61  ;;  %v3142_v36 = vrot.slane %v3140_v24, 4  ;;  %v2887_v61 = vld [vmem:[%s5398_s18 + $0x4c] sm:$0xf] }
 0x1f8   : > { %3205 = vrot.lane.b32.xlu0 %v3114_v33, %s4476_s19  ;;  %2736 = vrot.lane.b32.xlu1 %v2677_v34, %s4473_s28  ;;  %v3066_v33 = vsel %vm4597_vm2, %v3061_v16, %v3065_v17  ;;  %v3331_v34 = vor.u32 %v3330_v19, %v3327_v18  ;;  %v2641_v16 = vshrl.u32 %v2511_v9, 16  ;;  %v2644_v18 = vshll.u32 %v2511_v9, 16 }
 0x1f9   : > { %2738 = vrot.lane.b32.xlu2 %v2687_v37, %s4473_s28  ;;  %v3145_v37 = vrot.slane %v3143_v25, 5  ;;  %v2650_v19 = vshll.u32 %v2512_v10, 16  ;;  %v4400_v10 = vld [vmem:[%s5890_s8 + $0x18] sm:$0xff] }
 0x1fa   : > { %v2177_v32 = vpop.permute.xlu0 %2176  ;;  %v2179_v42 = vpop.permute.xlu1 %2178  ;;  %v3332_v44 = vrot.slane %v3331_v34, 4  ;;  %v2643_v24 = vrot.slane %v2641_v16, 4  ;;  %v2646_v25 = vrot.slane %v2644_v18, 5 }
 0x1fb   : > { %2212 = vst.msk [vmem:[#allocation2 + $0x34] sm:$0xf] %vm2198_vm13, %v2177_v32  ;;  %v2448_v51 = vpop.permute.xlu2 %2447  ;;  %v3151_v32 = vrot.slane %v3149_v27, 5  ;;  %v2652_v26 = vrot.slane %v2650_v19, 5  ;;  %v2656_v27 = vrot.slane %v2654_v21, 4  ;;  %v4399_v21 = vld [vmem:[%s5890_s8 + $0x10] sm:$0xff] }
 0x1fc   : > { %2213 = vst.msk [vmem:[#allocation2 + $0x38] sm:$0xf] %vm2198_vm13, %v2179_v42  ;;  %v3155_v42 = vrot.slane %v3153_v28, 4  ;;  %v3337_v62 = vsel %vm4597_vm2, %v3332_v44, %v3336_v35  ;;  %v2779_v35 = vld [vmem:[%s5379_s11 + $0xc] sm:$0xf] }
 0x1fd   : > { %2488 = vst.msk [vmem:[#allocation2 + $0x20] sm:$0xf] %vm2479_vm14, %v2448_v51  ;;  %v3146_v51 = vor.u32 %v3145_v37, %v3142_v36  ;;  %v2647_v36 = vor.u32 %v2646_v25, %v2643_v24  ;;  %v2657_v37 = vor.u32 %v2656_v27, %v2652_v26  ;;  %v3255_v19 = vld [vmem:[%s5398_s18 + $0xc] sm:$0xf]  ;;  %v3256_v25 = vld [vmem:[%s5398_s18 + $0x10] sm:$0xf] }
 0x1ff   : > { %v3147_v63 = vrot.slane %v3146_v51, 4  ;;  %v2648_v40 = vrot.slane %v2647_v36, 4  ;;  %v4402_v51 = vld [vmem:[%s5890_s8 + $0x28] sm:$0xff] }
 0x200   : > { %2914 = vrot.lane.b32.xlu0 %v2878_v46, %s4475_s16  ;;  %2916 = vrot.lane.b32.xlu1 %v2879_v48, %s4475_s16  ;;  %v2991_v46 = vld [vmem:[%s5379_s11 + $0x50] sm:$0x1]  ;;  %v3424_v48 = vshll.u32 %v3270_v41, 16  ;;  %v2658_v41 = vrot.slane %v2657_v37, 4  ;;  %v4398_v37 = vld [vmem:[%s5890_s8 + $0x8] sm:$0xff] }
 0x201   : > { %3484 = vrot.lane.b32.xlu2 %v3385_v56, %s4477_s20  ;;  %v3156_v56 = vor.u32 %v3155_v42, %v3151_v32  ;;  %v3159_v57 = vshll.u32 %v2991_v46, 16  ;;  %v3152_v12 = vsel %vm4597_vm2, %v3147_v63, %v3151_v32  ;;  %v2974_v42 = vld [vmem:[%s5379_s11 + $0xc] sm:$0xf] }
 0x202   : > { %v2432_v0 = vpop.permute.xlu0 %2431  ;;  %v2434_v1 = vpop.permute.xlu1 %2433  ;;  %v3426_v55 = vrot.slane %v3424_v48, 5  ;;  %v3020_v48 = vshrl.u32 %v2974_v42, 16 }
 0x203   : > { %2480 = vst.msk [vmem:[#allocation2] sm:$0xf] %vm2479_vm14, %v2432_v0  ;;  %v2454_v5 = vpop.permute.xlu2 %2453  ;;  %v3347_v0 = vsel %vm4597_vm2, %v3342_v52, %v3346_v53  ;;  %v3157_v2 = vrot.slane %v3156_v56, 4  ;;  %v3161_v3 = vrot.slane %v3159_v57, 5  ;;  %v2653_v52 = vsel %vm4597_vm2, %v2648_v40, %v2652_v26  ;;  %v2876_v56 = vld [vmem:[%s5398_s18 + $0xc] sm:$0xf] }
 0x204   : > { %2481 = vst.msk [vmem:[#allocation2 + $0x4] sm:$0xf] %vm2479_vm14, %v2434_v1  ;;  %v3427_v1 = vor.u32 %v3426_v55, %v3423_v54  ;;  %v3029_v54 = vshll.u32 %v2975_v47, 16  ;;  %v3033_v55 = vshrl.u32 %v2975_v47, 16  ;;  %v2505_v57 = vld [vmem:[%s5189_s25 + $0x24] sm:$0xf] }
 0x205   : > { %2491 = vst.msk [vmem:[#allocation2 + $0x2c] sm:$0xf] %vm2479_vm14, %v2454_v5  ;;  %v3436_v5 = vrot.slane %v3434_v59, 4  ;;  %v3162_v13 = vsel %vm4597_vm2, %v3157_v2, %v3161_v3  ;;  %v3022_v58 = vrot.slane %v3020_v48, 4  ;;  %v2976_v3 = vld [vmem:[%s5379_s11 + $0x14] sm:$0x1] }
 0x206   : > { %v3428_v11 = vrot.slane %v3427_v1, 4  ;;  %v5586_v63 = vrot.slane %v3029_v54, 5 }
 0x208   : > { %3486 = vrot.lane.b32.xlu0 %v3395_v6, %s4477_s20  ;;  %2833 = vrot.lane.b32.xlu1 %v2789_v7, %s4474_s12  ;;  %v3272_v6 = vld [vmem:[%s5398_s18 + $0x50] sm:$0x1]  ;;  %v3433_v20 = vsel %vm4597_vm2, %v3428_v11, %v3432_v4  ;;  %v2787_v11 = vld [vmem:[%s5379_s11 + $0x3c] sm:$0xf] }
 0x209   : > { %2835 = vrot.lane.b32.xlu2 %v2790_v14, %s4474_s12  ;;  %v3437_v14 = vor.u32 %v3436_v5, %v3432_v4  ;;  %v3440_v15 = vshll.u32 %v3272_v6, 16  ;;  %v2506_v4 = vld [vmem:[%s5189_s25 + $0x28] sm:$0xf] }
 0x20a   : > { %v2438_v22 = vpop.permute.xlu0 %2437  ;;  %v2440_v23 = vpop.permute.xlu1 %2439 }
 0x20b   : > { %2483 = vst.msk [vmem:[#allocation2 + $0xc] sm:$0xf] %vm2479_vm14, %v2438_v22  ;;  %v2460_v29 = vpop.permute.xlu2 %2459  ;;  %v3438_v22 = vrot.slane %v3437_v14, 4  ;;  %v2602_v14 = vshll.u32 %v2506_v4, 16 }
 0x20c   : > { %2484 = vst.msk [vmem:[#allocation2 + $0x10] sm:$0xf] %vm2479_vm14, %v2440_v23  ;;  %v3442_v23 = vrot.slane %v3440_v15, 5  ;;  %v2606_v15 = vshrl.u32 %v2506_v4, 16 }
 0x20d   : > { %2494 = vst.msk [vmem:[#allocation2 + $0x38] sm:$0xf] %vm2479_vm14, %v2460_v29 }
 0x20e   : > { %v3443_v34 = vsel %vm4597_vm2, %v3438_v22, %v3442_v23  ;;  %v2604_v23 = vrot.slane %v2602_v14, 5  ;;  %v2608_v24 = vrot.slane %v2606_v15, 4 }
 0x210   : > { %3195 = vrot.lane.b32.xlu0 %v3056_v31, %s4476_s19  ;;  %3197 = vrot.lane.b32.xlu1 %v3066_v33, %s4476_s19  ;;  %v4404_v33 = vld [vmem:[%s5890_s8 + $0x38] sm:$0xff] }
 0x211   : > { %2930 = vrot.lane.b32.xlu2 %v2886_v38, %s4475_s16  ;;  %v2660_v38 = vshll.u32 %v2513_v30, 16  ;;  %3661 = vmatpush.bf16.msra.mxu0 %v4404_v33 }
 0x212   : > { %v2444_v49 = vpop.permute.xlu0 %2443  ;;  %v2446_v50 = vpop.permute.xlu1 %2445  ;;  %4406 = vmatpush.bf16.msra.mxu2 %v4404_v33  ;;  %4405 = vmatpush.bf16.msra.mxu1 %v4404_v33 }
 0x213   : > { %2486 = vst.msk [vmem:[#allocation2 + $0x18] sm:$0xf] %vm2479_vm14, %v2444_v49  ;;  %v2715_v60 = vpop.permute.xlu2 %2714  ;;  %4407 = vmatpush.bf16.msra.mxu3 %v4404_v33  ;;  %v2662_v32 = vrot.slane %v2660_v38, 5  ;;  %v3023_v49 = vshll.u32 %v2974_v42, 16  ;;  %v3304_v33 = vshll.u32 %v3255_v19, 16 }
 0x214   : > { %2487 = vst.msk [vmem:[#allocation2 + $0x1c] sm:$0xf] %vm2479_vm14, %v2446_v50 }
 0x215   : > { %2762 = vst.msk [vmem:[#allocation2 + $0x4] sm:$0xf] %vm2760_vm15, %v2715_v60  ;;  %3662 = vmatpush.bf16.msra.mxu0 %v4403_v43  ;;  %v2663_v53 = vsel %vm4597_vm2, %v2658_v41, %v2662_v32  ;;  %v3025_v59 = vrot.slane %v3023_v49, 5  ;;  %v4401_v60 = vld [vmem:[%s5890_s8 + $0x20] sm:$0xff]  ;;  %v3306_v42 = vrot.slane %v3304_v33, 5 }
 0x216   : > { %4409 = vmatpush.bf16.msra.mxu2 %v4403_v43  ;;  %4408 = vmatpush.bf16.msra.mxu1 %v4403_v43  ;;  %v3257_v49 = vld [vmem:[%s5398_s18 + $0x14] sm:$0x1]  ;;  %v3267_v33 = vld [vmem:[%s5398_s18 + $0x3c] sm:$0xf] }
 0x217   : > { %4410 = vmatpush.bf16.msra.mxu3 %v4403_v43 }
 0x218   : > { %2932 = vrot.lane.b32.xlu0 %v2887_v61, %s4475_s16  ;;  %3476 = vrot.lane.b32.xlu1 %v3337_v62, %s4477_s20  ;;  %v2593_v61 = vshrl.u32 %v2505_v57, 16  ;;  %v2596_v62 = vshll.u32 %v2505_v57, 16 }
 0x219   : > { %3478 = vrot.lane.b32.xlu2 %v3347_v0, %s4477_s20  ;;  %3663 = vmatpush.bf16.msra.mxu0 %v4402_v51  ;;  %v3035_v0 = vrot.slane %v3033_v55, 4  ;;  %v3320_v55 = vshll.u32 %v3257_v49, 16 }
 0x21a   : > { %v2450_v7 = vpop.permute.xlu0 %2449  ;;  %v2452_v8 = vpop.permute.xlu1 %2451  ;;  %4412 = vmatpush.bf16.msra.mxu2 %v4402_v51  ;;  %4411 = vmatpush.bf16.msra.mxu1 %v4402_v51  ;;  %v2595_v5 = vrot.slane %v2593_v61, 4  ;;  %v2598_v6 = vrot.slane %v2596_v62, 5  ;;  %v2987_v61 = vld [vmem:[%s5379_s11 + $0x40] sm:$0xf] }
 0x21b   : > { %2489 = vst.msk [vmem:[#allocation2 + $0x24] sm:$0xf] %vm2479_vm14, %v2450_v7  ;;  %v2721_v17 = vpop.permute.xlu2 %2720  ;;  %4413 = vmatpush.bf16.msra.mxu3 %v4402_v51  ;;  %v2877_v7 = vld [vmem:[%s5398_s18 + $0x10] sm:$0xf]  ;;  %v3129_v62 = vshrl.u32 %v2987_v61, 16 }
 0x21c   : > { %2490 = vst.msk [vmem:[#allocation2 + $0x28] sm:$0xf] %vm2479_vm14, %v2452_v8  ;;  %v3026_v8 = vor.u32 %v3025_v59, %v3022_v58  ;;  %v2599_v16 = vor.u32 %v2598_v6, %v2595_v5  ;;  %v2884_v58 = vld [vmem:[%s5398_s18 + $0x3c] sm:$0xf]  ;;  %v3125_v5 = vshll.u32 %v2987_v61, 16 }
 0x21d   : > { %2765 = vst.msk [vmem:[#allocation2 + $0x10] sm:$0xf] %vm2760_vm15, %v2721_v17  ;;  %3664 = vmatpush.bf16.msra.mxu0 %v4401_v60  ;;  %v2788_v17 = vld [vmem:[%s5379_s11 + $0x40] sm:$0xf]  ;;  %v2517_v6 = vld [vmem:[%s5189_s25 + $0x54] sm:$0xf] }
 0x21e   : > { %4415 = vmatpush.bf16.msra.mxu2 %v4401_v60  ;;  %4414 = vmatpush.bf16.msra.mxu1 %v4401_v60  ;;  %v3027_v18 = vrot.slane %v3026_v8, 4  ;;  %v2600_v30 = vrot.slane %v2599_v16, 4  ;;  %v2692_v14 = vshll.u32 %v2517_v6, 16 }
 0x21f   : > { %4416 = vmatpush.bf16.msra.mxu3 %v4401_v60 }
 0x220   : > { %3211 = vrot.lane.b32.xlu0 %v3152_v12, %s4476_s19  ;;  %3213 = vrot.lane.b32.xlu1 %v3162_v13, %s4476_s19  ;;  %v3036_v12 = vor.u32 %v3035_v0, %v5586_v63  ;;  %v3039_v13 = vshll.u32 %v2976_v3, 16  ;;  %v2605_v41 = vsel %vm4597_vm2, %v2600_v30, %v2604_v23 }
 0x221   : > { %3492 = vrot.lane.b32.xlu2 %v3433_v20, %s4477_s20  ;;  %3665 = vmatpush.bf16.msra.mxu0 %v4400_v10 }
 0x222   : > { %v2456_v28 = vpop.permute.xlu0 %2455  ;;  %v2458_v29 = vpop.permute.xlu1 %2457  ;;  %4418 = vmatpush.bf16.msra.mxu2 %v4400_v10  ;;  %v3037_v20 = vrot.slane %v3036_v12, 4  ;;  %v3041_v22 = vrot.slane %v3039_v13, 5  ;;  %4417 = vmatpush.bf16.msra.mxu1 %v4400_v10  ;;  %v2689_v13 = vshrl.u32 %v2517_v6, 16 }
 0x223   : > { %2492 = vst.msk [vmem:[#allocation2 + $0x30] sm:$0xf] %vm2479_vm14, %v2456_v28  ;;  %v2729_v31 = vpop.permute.xlu2 %2728  ;;  %4419 = vmatpush.bf16.msra.mxu3 %v4400_v10  ;;  %v2507_v28 = vld [vmem:[%s5189_s25 + $0x2c] sm:$0x1]  ;;  %v3131_v10 = vrot.slane %v3129_v62, 4 }
 0x224   : > { %2493 = vst.msk [vmem:[#allocation2 + $0x34] sm:$0xf] %vm2479_vm14, %v2458_v29  ;;  %v3301_v29 = vshrl.u32 %v3255_v19, 16  ;;  %v3042_v38 = vsel %vm4597_vm2, %v3037_v20, %v3041_v22  ;;  %v2612_v40 = vshll.u32 %v2507_v28, 16  ;;  %v2783_v20 = vld [vmem:[%s5379_s11 + $0x24] sm:$0xf] }
 0x225   : > { %2769 = vst.msk [vmem:[#allocation2 + $0x20] sm:$0xf] %vm2760_vm15, %v2729_v31  ;;  %3666 = vmatpush.bf16.msra.mxu0 %v4399_v21  ;;  %v3032_v31 = vsel %vm4597_vm2, %v3027_v18, %v5586_v63  ;;  %v2885_v63 = vld [vmem:[%s5398_s18 + $0x40] sm:$0xf]  ;;  %v3127_v18 = vrot.slane %v3125_v5, 5 }
 0x226   : > { %4421 = vmatpush.bf16.msra.mxu2 %v4399_v21  ;;  %4420 = vmatpush.bf16.msra.mxu1 %v4399_v21  ;;  %v3303_v32 = vrot.slane %v3301_v29, 4  ;;  %v2614_v48 = vrot.slane %v2612_v40, 5  ;;  %v2519_v28 = vld [vmem:[%s5189_s25 + $0x5c] sm:$0x1]  ;;  %v2981_v62 = vld [vmem:[%s5379_s11 + $0x28] sm:$0xf] }
 0x227   : > { %4422 = vmatpush.bf16.msra.mxu3 %v4399_v21  ;;  %v3132_v22 = vor.u32 %v3131_v10, %v3127_v18 }
 0x228   : > { %3494 = vrot.lane.b32.xlu0 %v3443_v34, %s4477_s20  ;;  %2813 = vrot.lane.b32.xlu1 %v2779_v35, %s4474_s12  ;;  %v3310_v34 = vshll.u32 %v3256_v25, 16  ;;  %v3314_v35 = vshrl.u32 %v3256_v25, 16  ;;  %v2694_v25 = vrot.slane %v2692_v14, 5 }
 0x229   : > { %2815 = vrot.lane.b32.xlu2 %v2780_v39, %s4474_s12  ;;  %v2609_v39 = vor.u32 %v2608_v24, %v2604_v23  ;;  %3667 = vmatpush.bf16.msra.mxu0 %v4398_v37  ;;  %v2691_v24 = vrot.slane %v2689_v13, 4 }
 0x22a   : > { %v2462_v44 = vpop.permute.xlu0 %2461  ;;  %v2713_v46 = vpop.permute.xlu1 %2712  ;;  %4424 = vmatpush.bf16.msra.mxu2 %v4398_v37  ;;  %v3312_v43 = vrot.slane %v3310_v34, 5  ;;  %4423 = vmatpush.bf16.msra.mxu1 %v4398_v37  ;;  %v3133_v34 = vrot.slane %v3132_v22, 4  ;;  %v2982_v22 = vld [vmem:[%s5379_s11 + $0x2c] sm:$0x1] }
 0x22b   : > { %2495 = vst.msk [vmem:[#allocation2 + $0x3c] sm:$0xf] %vm2479_vm14, %v2462_v44  ;;  %v5570_v50 = vpop.permute.xlu2 %2908  ;;  %v3316_v44 = vrot.slane %v3314_v35, 4  ;;  %v2610_v47 = vrot.slane %v2609_v39, 4  ;;  %4425 = vmatpush.bf16.msra.mxu3 %v4398_v37  ;;  %v2708_v37 = vshll.u32 %v2519_v28, 16  ;;  %v3087_v28 = vshll.u32 %v2982_v22, 16 }
 0x22c   : > { %2761 = vst.msk [vmem:[#allocation2] sm:$0xf] %vm2760_vm15, %v2713_v46  ;;  %v4397_v46 = vld [vmem:[%s5890_s8] sm:$0xff]  ;;  %v2784_v39 = vld [vmem:[%s5379_s11 + $0x28] sm:$0xf] }
 0x22d   : > { %3668 = vmatpush.bf16.msra.mxu0 %v4397_v46  ;;  %v3317_v54 = vor.u32 %v3316_v44, %v3312_v43  ;;  %v2615_v57 = vsel %vm4597_vm2, %v2610_v47, %v2614_v48  ;;  %v2710_v48 = vrot.slane %v2708_v37, 5  ;;  %v2792_v37 = vld [vmem:[%s5379_s11 + $0x58] sm:$0xf] }
 0x22e   : > { %4427 = vmatpush.bf16.msra.mxu2 %v4397_v46  ;;  %4426 = vmatpush.bf16.msra.mxu1 %v4397_v46 }
 0x22f   : > { %4428 = vmatpush.bf16.msra.mxu3 %v4397_v46 }
 0x230   : > { %2732 = vrot.lane.b32.xlu0 %v2653_v52, %s4473_s28  ;;  %2734 = vrot.lane.b32.xlu1 %v2663_v53, %s4473_s28  ;;  %v2986_v52 = vld [vmem:[%s5379_s11 + $0x3c] sm:$0xf]  ;;  %v3307_v53 = vor.u32 %v3306_v42, %v3303_v32  ;;  %v3397_v32 = vshrl.u32 %v3267_v33, 16  ;;  %v3400_v42 = vshll.u32 %v3267_v33, 16 }
 0x231   : > { %2910 = vrot.lane.b32.xlu2 %v2876_v56, %s4475_s16  ;;  %v3116_v59 = vshrl.u32 %v2986_v52, 16  ;;  %v3119_v60 = vshll.u32 %v2986_v52, 16 }
 0x232   : > { %v2717_v1 = vpop.permute.xlu0 %2716  ;;  %v2719_v2 = vpop.permute.xlu1 %2718  ;;  %v3308_v0 = vrot.slane %v3307_v53, 4 }
 0x233   : > { %2763 = vst.msk [vmem:[#allocation2 + $0x8] sm:$0xf] %vm2760_vm15, %v2717_v1  ;;  %v5594_v9 = vpop.permute.xlu2 %3187  ;;  %v3318_v1 = vrot.slane %v3317_v54, 4  ;;  %v3118_v3 = vrot.slane %v3116_v59, 4  ;;  %v3121_v4 = vrot.slane %v3119_v60, 5 }
 0x234   : > { %2764 = vst.msk [vmem:[#allocation2 + $0xc] sm:$0xf] %vm2760_vm15, %v2719_v2  ;;  %v3322_v2 = vrot.slane %v3320_v55, 5 }
 0x235   : > { %v3122_v16 = vor.u32 %v3121_v4, %v3118_v3 }
 0x236   : > { %v3323_v12 = vsel %vm4597_vm2, %v3318_v1, %v3322_v2  ;;  %v2980_v2 = vld [vmem:[%s5379_s11 + $0x24] sm:$0xf] }
 0x237   : > { %v3068_v4 = vshrl.u32 %v2980_v2, 16  ;;  %v3071_v5 = vshll.u32 %v2980_v2, 16 }
 0x238   : > { %2912 = vrot.lane.b32.xlu0 %v2877_v7, %s4475_s16  ;;  %2829 = vrot.lane.b32.xlu1 %v2787_v11, %s4474_s12  ;;  %v3313_v11 = vsel %vm4597_vm2, %v3308_v0, %v3312_v43  ;;  %v3268_v43 = vld [vmem:[%s5398_s18 + $0x40] sm:$0xf] }
 0x239   : > { %2831 = vrot.lane.b32.xlu2 %v2788_v17, %s4474_s12  ;;  %v2988_v17 = vld [vmem:[%s5379_s11 + $0x44] sm:$0x1]  ;;  %v3410_v44 = vshrl.u32 %v3268_v43, 16  ;;  %v3406_v52 = vshll.u32 %v3268_v43, 16  ;;  %v3070_v13 = vrot.slane %v3068_v4, 4 }
 0x23a   : > { %v2810_v26 = vpop.permute.xlu0 %2809  ;;  %v2812_v27 = vpop.permute.xlu1 %2811  ;;  %v3135_v23 = vshll.u32 %v2988_v17, 16  ;;  %v2881_v17 = vld [vmem:[%s5398_s18 + $0x28] sm:$0xf] }
 0x23b   : > { %2858 = vst.msk [vmem:[#allocation2] sm:$0xf] %vm2857_vm0, %v2810_v26  ;;  %v5616_v36 = vpop.permute.xlu2 %2922  ;;  %v3123_v26 = vrot.slane %v3122_v16, 4  ;;  %v3412_v55 = vrot.slane %v3410_v44, 4  ;;  %v3408_v61 = vrot.slane %v3406_v52, 5 }
 0x23c   : > { %2859 = vst.msk [vmem:[#allocation2 + $0x4] sm:$0xf] %vm2857_vm0, %v2812_v27  ;;  %v3137_v35 = vrot.slane %v3135_v23, 5  ;;  %v3261_v23 = vld [vmem:[%s5398_s18 + $0x24] sm:$0xf] }
 0x23d   : > { %2956 = vst.msk [vmem:[#allocation2 + $0x4] sm:$0xf] %vm2954_vm1, %v5570_v50  ;;  %v3128_v40 = vsel %vm4597_vm2, %v3123_v26, %v3127_v18  ;;  %v3413_v0 = vor.u32 %v3412_v55, %v3408_v61  ;;  %v2992_v44 = vld [vmem:[%s5379_s11 + $0x54] sm:$0xf] }
 0x23e   : > { %v3138_v46 = vsel %vm4597_vm2, %v3133_v34, %v3137_v35  ;;  %v3273_v52 = vld [vmem:[%s5398_s18 + $0x54] sm:$0xf] }
 0x240   : > { %3191 = vrot.lane.b32.xlu0 %v3032_v31, %s4476_s19  ;;  %3193 = vrot.lane.b32.xlu1 %v3042_v38, %s4476_s19 }
 0x241   : > { %2724 = vrot.lane.b32.xlu2 %v2605_v41, %s4473_s28 }
 0x242   : > { %v2731_v50 = vpop.permute.xlu0 %2730  ;;  %v2907_v51 = vpop.permute.xlu1 %2906 }
 0x243   : > { %2770 = vst.msk [vmem:[#allocation2 + $0x24] sm:$0xf] %vm2760_vm15, %v2731_v50  ;;  %v5637_v56 = vpop.permute.xlu2 %3470  ;;  %v3399_v50 = vrot.slane %v3397_v32, 4 }
 0x244   : > { %2955 = vst.msk [vmem:[#allocation2] sm:$0xf] %vm2954_vm1, %v2907_v51  ;;  %v3402_v51 = vrot.slane %v3400_v42, 5 }
 0x245   : > { %3236 = vst.msk [vmem:[#allocation2] sm:$0xf] %vm3235_vm3, %v5594_v9  ;;  %v2518_v9 = vld [vmem:[%s5189_s25 + $0x58] sm:$0xf]  ;;  %s4320_s25 = sshll.u32 %s4539_s14, 4  ;;  %s5898_s14 = smov (!%p548_p4, %s4539_s14), 1 }
 0x246   : > { %v2698_v19 = vshll.u32 %v2518_v9, 16  ;;  %v2702_v21 = vshrl.u32 %v2518_v9, 16  ;;  %v3403_v60 = vor.u32 %v3402_v51, %v3399_v50  ;;  %v3081_v9 = vshrl.u32 %v2981_v62, 16  ;;  %p543_p5 = scmp.lt.s32.totalorder %s4320_s25, 31 }
 0x248   : > { %2726 = vrot.lane.b32.xlu0 %v2615_v57, %s4473_s28  ;;  %2926 = vrot.lane.b32.xlu1 %v2884_v58, %s4475_s16  ;;  %v2700_v27 = vrot.slane %v2698_v19, 5  ;;  %v2704_v29 = vrot.slane %v2702_v21, 4  ;;  %v3269_v57 = vld [vmem:[%s5398_s18 + $0x44] sm:$0x1]  ;;  %v3404_v3 = vrot.slane %v3403_v60, 4  ;;  %v3083_v19 = vrot.slane %v3081_v9, 4 }
 0x249   : > { %2928 = vrot.lane.b32.xlu2 %v2885_v63, %s4475_s16  ;;  %v2880_v63 = vld [vmem:[%s5398_s18 + $0x24] sm:$0xf]  ;;  %v3416_v1 = vshll.u32 %v3269_v57, 16  ;;  %s5900_s25 = smov (!%p543_p5, %s4320_s25), 31 }
 0x24a   : > { %v2826_v7 = vpop.permute.xlu0 %2825  ;;  %v2828_v8 = vpop.permute.xlu1 %2827  ;;  %v2705_v41 = vor.u32 %v2704_v29, %v2700_v27  ;;  %v3409_v16 = vsel %vm4597_vm2, %v3404_v3, %v3408_v61  ;;  %v2888_v61 = vld [vmem:[%s5398_s18 + $0x54] sm:$0xf]  ;;  %v2889_v3 = vld [vmem:[%s5398_s18 + $0x58] sm:$0xf] }
 0x24b   : > { %2866 = vst.msk [vmem:[#allocation2 + $0x20] sm:$0xf] %vm2857_vm0, %v2826_v7  ;;  %v3204_v15 = vpop.permute.xlu2 %3203 }
 0x24c   : > { %2867 = vst.msk [vmem:[#allocation2 + $0x24] sm:$0xf] %vm2857_vm0, %v2828_v8  ;;  %v2706_v49 = vrot.slane %v2705_v41, 4  ;;  %v3077_v8 = vshll.u32 %v2981_v62, 16 }
 0x24d   : > { %2963 = vst.msk [vmem:[#allocation2 + $0x20] sm:$0xf] %vm2954_vm1, %v5616_v36  ;;  %v2695_v36 = vor.u32 %v2694_v25, %v2691_v24  ;;  %v3262_v24 = vld [vmem:[%s5398_s18 + $0x28] sm:$0xf] }
 0x24e   : > { %3244 = vst.msk [vmem:[#allocation2 + $0x20] sm:$0xf] %vm3235_vm3, %v3204_v15  ;;  %v2711_v59 = vsel %vm4597_vm2, %v2706_v49, %v2710_v48  ;;  %v3073_v15 = vrot.slane %v3071_v5, 5  ;;  %v3079_v18 = vrot.slane %v3077_v8, 5  ;;  %v3358_v33 = vshll.u32 %v3262_v24, 16 }
 0x24f   : > { %v2696_v47 = vrot.slane %v2695_v36, 4  ;;  %v3362_v34 = vshrl.u32 %v3262_v24, 16  ;;  %v2791_v36 = vld [vmem:[%s5379_s11 + $0x54] sm:$0xf]  ;;  %v3164_v48 = vshrl.u32 %v2992_v44, 16  ;;  %v3167_v49 = vshll.u32 %v2992_v44, 16 }
 0x250   : > { %3472 = vrot.lane.b32.xlu0 %v3313_v11, %s4477_s20  ;;  %3474 = vrot.lane.b32.xlu1 %v3323_v12, %s4477_s20  ;;  %v3414_v11 = vrot.slane %v3413_v0, 4  ;;  %v3418_v12 = vrot.slane %v3416_v1, 5  ;;  %v3360_v42 = vrot.slane %v3358_v33, 5  ;;  %v3448_v0 = vshll.u32 %v3273_v52, 16  ;;  %v3274_v1 = vld [vmem:[%s5398_s18 + $0x58] sm:$0xf] }
 0x251   : > { %2821 = vrot.lane.b32.xlu2 %v2783_v20, %s4474_s12  ;;  %v2701_v58 = vsel %vm4597_vm2, %v2696_v47, %v2700_v27  ;;  %v3074_v20 = vor.u32 %v3073_v15, %v3070_v13  ;;  %v3084_v27 = vor.u32 %v3083_v19, %v3079_v18  ;;  %v3364_v43 = vrot.slane %v3362_v34, 4  ;;  %v2993_v47 = vld [vmem:[%s5379_s11 + $0x58] sm:$0xf]  ;;  %v2994_v15 = vld [vmem:[%s5379_s11 + $0x5c] sm:$0x1]  ;;  %s4321_s11 = sshll.u32 %s5900_s25, 2 }
 0x252   : > { %v3190_v30 = vpop.permute.xlu0 %3189  ;;  %v2723_v31 = vpop.permute.xlu1 %2722  ;;  %v3419_v21 = vsel %vm4597_vm2, %v3414_v11, %v3418_v12  ;;  %v3177_v62 = vshrl.u32 %v2993_v47, 16  ;;  %v3458_v2 = vshrl.u32 %v3274_v1, 16  ;;  %v3450_v11 = vrot.slane %v3448_v0, 5  ;;  %s5803_s29 = scalar_lea.vmem %s5891_s9, %s4321_s11 }
 0x253   : > { %3237 = vst.msk [vmem:[#allocation2 + $0x4] sm:$0xf] %vm3235_vm3, %v3190_v30  ;;  %v2739_v38 = vpop.permute.xlu2 %2738  ;;  %v3075_v29 = vrot.slane %v3074_v20, 4  ;;  %v3349_v30 = vshrl.u32 %v3261_v23, 16  ;;  %v3454_v12 = vshll.u32 %v3274_v1, 16 }
 0x254   : > { %2766 = vst.msk [vmem:[#allocation2 + $0x14] sm:$0xf] %vm2760_vm15, %v2723_v31  ;;  %v3352_v31 = vshll.u32 %v3261_v23, 16  ;;  %v3179_v9 = vrot.slane %v3177_v62, 4  ;;  %v3275_v20 = vld [vmem:[%s5398_s18 + $0x5c] sm:$0x1] }
 0x255   : > { %3518 = vst.msk [vmem:[#allocation2 + $0x4] sm:$0xf] %vm3516_vm4, %v5637_v56  ;;  %v3351_v41 = vrot.slane %v3349_v30, 4  ;;  %v3183_v23 = vshll.u32 %v2994_v15, 16 }
 0x256   : > { %2774 = vst.msk [vmem:[#allocation2 + $0x34] sm:$0xf] %vm2760_vm15, %v2739_v38  ;;  %v3085_v38 = vrot.slane %v3084_v27, 4  ;;  %v3354_v32 = vrot.slane %v3352_v31, 5 }
 0x257   : > { %v3185_v30 = vrot.slane %v3183_v23, 5 }
 0x258   : > { %2823 = vrot.lane.b32.xlu0 %v2784_v39, %s4474_s12  ;;  %3207 = vrot.lane.b32.xlu1 %v3128_v40, %s4476_s19  ;;  %v3089_v39 = vrot.slane %v3087_v28, 5  ;;  %v3080_v40 = vsel %vm4597_vm2, %v3075_v29, %v3079_v18  ;;  %v3355_v55 = vor.u32 %v3354_v32, %v3351_v41  ;;  %v3464_v28 = vshll.u32 %v3275_v20, 16 }
 0x259   : > { %3209 = vrot.lane.b32.xlu2 %v3138_v46, %s4476_s19  ;;  %v3263_v46 = vld [vmem:[%s5398_s18 + $0x2c] sm:$0x1] }
 0x25a   : > { %v2925_v53 = vpop.permute.xlu0 %2924  ;;  %v3469_v54 = vpop.permute.xlu1 %3468  ;;  %v3368_v57 = vshll.u32 %v3263_v46, 16  ;;  %v3090_v60 = vsel %vm4597_vm2, %v3085_v38, %v3089_v39  ;;  %v3356_v5 = vrot.slane %v3355_v55, 4 }
 0x25b   : > { %2964 = vst.msk [vmem:[#allocation2 + $0x24] sm:$0xf] %vm2954_vm1, %v2925_v53  ;;  %v3485_v56 = vpop.permute.xlu2 %3484  ;;  %v3166_v53 = vrot.slane %v3164_v48, 4 }
 0x25c   : > { %3517 = vst.msk [vmem:[#allocation2] sm:$0xf] %vm3516_vm4, %v3469_v54  ;;  %v3169_v54 = vrot.slane %v3167_v49, 5  ;;  %v3361_v18 = vsel %vm4597_vm2, %v3356_v5, %v3360_v42 }
 0x25d   : > { %3525 = vst.msk [vmem:[#allocation2 + $0x20] sm:$0xf] %vm3516_vm4, %v3485_v56  ;;  %v3365_v56 = vor.u32 %v3364_v43, %v3360_v42 }
 0x25e   : > { %v3170_v4 = vor.u32 %v3169_v54, %v3166_v53 }
 0x260   : > { %2740 = vrot.lane.b32.xlu0 %v2701_v58, %s4473_s28  ;;  %2742 = vrot.lane.b32.xlu1 %v2711_v59, %s4473_s28  ;;  %v3173_v58 = vshll.u32 %v2993_v47, 16  ;;  %s4322_s28 = sshll.u32 %s5898_s14, 2 }
 0x261   : > { %2918 = vrot.lane.b32.xlu2 %v2880_v63, %s4475_s16  ;;  %v3445_v63 = vshrl.u32 %v3273_v52, 16 }
 0x262   : > { %v2818_v6 = vpop.permute.xlu0 %2817  ;;  %v2820_v7 = vpop.permute.xlu1 %2819  ;;  %v3175_v8 = vrot.slane %v3173_v58, 5 }
 0x263   : > { %2862 = vst.msk [vmem:[#allocation2 + $0x10] sm:$0xf] %vm2857_vm0, %v2818_v6  ;;  %v4389_v10 = vld [vmem:[#allocation2] sm:$0xff]  ;;  %v2836_v14 = vpop.permute.xlu2 %2835  ;;  %v3366_v6 = vrot.slane %v3365_v56, 4 }
 0x264   : > { %2863 = vst.msk [vmem:[#allocation2 + $0x14] sm:$0xf] %vm2857_vm0, %v2820_v7  ;;  %3669 = vmatmul.bf16.vlgmr.msra.gmra.mxu0 %v4389_v10  ;;  %v3370_v7 = vrot.slane %v3368_v57, 5  ;;  %v3447_v10 = vrot.slane %v3445_v63, 4  ;;  %v3180_v22 = vor.u32 %v3179_v9, %v3175_v8 }
 0x265   : > { %2871 = vst.msk [vmem:[#allocation2 + $0x34] sm:$0xf] %vm2857_vm0, %v2836_v14 }
 0x266   : > { %v3371_v19 = vsel %vm4597_vm2, %v3366_v6, %v3370_v7  ;;  %v3451_v24 = vor.u32 %v3450_v11, %v3447_v10  ;;  %v3181_v29 = vrot.slane %v3180_v22, 4 }
 0x268   : > { %2920 = vrot.lane.b32.xlu0 %v2881_v17, %s4475_s16  ;;  %3488 = vrot.lane.b32.xlu1 %v3409_v16, %s4477_s20  ;;  %v3171_v17 = vrot.slane %v3170_v4, 4  ;;  %v3460_v16 = vrot.slane %v3458_v2, 4  ;;  %v3452_v31 = vrot.slane %v3451_v24, 4  ;;  %v3186_v39 = vsel %vm4597_vm2, %v3181_v29, %v3185_v30 }
 0x269   : > { %3490 = vrot.lane.b32.xlu2 %v3419_v21, %s4477_s20 }
 0x26a   : > { %v3206_v25 = vpop.permute.xlu0 %3205  ;;  %v2737_v26 = vpop.permute.xlu1 %2736 }
 0x26b   : > { %3245 = vst.msk [vmem:[#allocation2 + $0x24] sm:$0xf] %vm3235_vm3, %v3206_v25  ;;  %v2931_v35 = vpop.permute.xlu2 %2930  ;;  %v3456_v25 = vrot.slane %v3454_v12, 5 }
 0x26c   : > { %2773 = vst.msk [vmem:[#allocation2 + $0x30] sm:$0xf] %vm2760_vm15, %v2737_v26  ;;  %v3176_v26 = vsel %vm4597_vm2, %v3171_v17, %v3175_v8 }
 0x26d   : > { %v3461_v27 = vor.u32 %v3460_v16, %v3456_v25 }
 0x270   : > { %2837 = vrot.lane.b32.xlu0 %v2791_v36, %s4474_s12  ;;  %2839 = vrot.lane.b32.xlu1 %v2792_v37, %s4474_s12  ;;  %v3466_v37 = vrot.slane %v3464_v28, 5 }
 0x271   : > { %3199 = vrot.lane.b32.xlu2 %v3080_v40, %s4476_s19  ;;  %v3457_v40 = vsel %vm4597_vm2, %v3452_v31, %v3456_v25 }
 0x272   : > { %v2915_v50 = vpop.permute.xlu0 %2914  ;;  %v2917_v51 = vpop.permute.xlu1 %2916 }
 0x273   : > { %2959 = vst.msk [vmem:[#allocation2 + $0x10] sm:$0xf] %vm2954_vm1, %v2915_v50  ;;  %v3479_v59 = vpop.permute.xlu2 %3478 }
 0x274   : > { %2960 = vst.msk [vmem:[#allocation2 + $0x14] sm:$0xf] %vm2954_vm1, %v2917_v51 }
 0x278   : > { %3201 = vrot.lane.b32.xlu0 %v3090_v60, %s4476_s19  ;;  %2934 = vrot.lane.b32.xlu1 %v2888_v61, %s4475_s16 }
 0x279   : > { %2936 = vrot.lane.b32.xlu2 %v2889_v3, %s4475_s16  ;;  %s5797_s16 = scalar_lea.vmem %s5892_s10, %s4322_s28 }
 0x27a   : > { %v3487_v13 = vpop.permute.xlu0 %3486  ;;  %v2834_v14 = vpop.permute.xlu1 %2833 }
 0x27b   : > { %3526 = vst.msk [vmem:[#allocation2 + $0x24] sm:$0xf] %vm3516_vm4, %v3487_v13  ;;  %v3493_v21 = vpop.permute.xlu2 %3492 }
 0x27c   : > { %2870 = vst.msk [vmem:[#allocation2 + $0x30] sm:$0xf] %vm2857_vm0, %v2834_v14 }
 0x27d   : > { %2967 = vst.msk [vmem:[#allocation2 + $0x30] sm:$0xf] %vm2954_vm1, %v2931_v35  ;;  %v3462_v35 = vrot.slane %v3461_v27, 4 }
 0x27f   : > { %v3467_v41 = vsel %vm4597_vm2, %v3462_v35, %v3466_v37  ;;  %vm4071_vm2 = vcmask 57344  }
 0x280   : > { %3480 = vrot.lane.b32.xlu0 %v3361_v18, %s4477_s20  ;;  %3482 = vrot.lane.b32.xlu1 %v3371_v19, %s4477_s20 }
 0x281   : > { %3215 = vrot.lane.b32.xlu2 %v3176_v26, %s4476_s19 }
 0x282   : > { %v3196_v33 = vpop.permute.xlu0 %3195  ;;  %v3198_v34 = vpop.permute.xlu1 %3197  ;;  %v4393_v36 = vld [vmem:[#allocation2 + $0x20] sm:$0xff] }
 0x283   : > { %3240 = vst.msk [vmem:[#allocation2 + $0x10] sm:$0xf] %vm3235_vm3, %v3196_v33  ;;  %3689 = vmatmul.bf16.vlgmr.msra.gmra.mxu2 %v4393_v36  ;;  %v2816_v38 = vpop.permute.xlu2 %2815 }
 0x284   : > { %3241 = vst.msk [vmem:[#allocation2 + $0x14] sm:$0xf] %vm3235_vm3, %v3198_v34 }
 0x285   : > { %3522 = vst.msk [vmem:[#allocation2 + $0x14] sm:$0xf] %vm3516_vm4, %v3479_v59 }
 0x286   : > { %2861 = vst.msk [vmem:[#allocation2 + $0xc] sm:$0xf] %vm2857_vm0, %v2816_v38 }
 0x288   : > { %3217 = vrot.lane.b32.xlu0 %v3186_v39, %s4476_s19  ;;  %3496 = vrot.lane.b32.xlu1 %v3457_v40, %s4477_s20 }
 0x289   : > { %3498 = vrot.lane.b32.xlu2 %v3467_v41, %s4477_s20 }
 0x28a   : > { %v2933_v32 = vpop.permute.xlu0 %2932  ;;  %v3477_v42 = vpop.permute.xlu1 %3476 }
 0x28b   : > { %2968 = vst.msk [vmem:[#allocation2 + $0x34] sm:$0xf] %vm2954_vm1, %v2933_v32  ;;  %v2911_v43 = vpop.permute.xlu2 %2910 }
 0x28c   : > { %3521 = vst.msk [vmem:[#allocation2 + $0x10] sm:$0xf] %vm3516_vm4, %v3477_v42 }
 0x292   : > { %v3212_v44 = vpop.permute.xlu0 %3211  ;;  %v3214_v46 = vpop.permute.xlu1 %3213 }
 0x293   : > { %3248 = vst.msk [vmem:[#allocation2 + $0x30] sm:$0xf] %vm3235_vm3, %v3212_v44  ;;  %v4391_v47 = vld [vmem:[#allocation2 + $0x10] sm:$0xff]  ;;  %v2832_v45 = vpop.permute.xlu2 %2831 }
 0x294   : > { %3529 = vst.msk [vmem:[#allocation2 + $0x30] sm:$0xf] %vm3516_vm4, %v3493_v21  ;;  %3679 = vmatmul.bf16.vlgmr.msra.gmra.mxu1 %v4391_v47 }
 0x295   : > { %3249 = vst.msk [vmem:[#allocation2 + $0x34] sm:$0xf] %vm3235_vm3, %v3214_v46 }
 0x29a   : > { %v3495_v48 = vpop.permute.xlu0 %3494  ;;  %v2814_v49 = vpop.permute.xlu1 %2813 }
 0x29b   : > { %3530 = vst.msk [vmem:[#allocation2 + $0x34] sm:$0xf] %vm3516_vm4, %v3495_v48  ;;  %v2725_v50 = vpop.permute.xlu2 %2724 }
 0x29c   : > { %2860 = vst.msk [vmem:[#allocation2 + $0x8] sm:$0xf] %vm2857_vm0, %v2814_v49 }
 0x29d   : > { %2957 = vst.msk [vmem:[#allocation2 + $0x8] sm:$0xf] %vm2954_vm1, %v2911_v43 }
 0x29e   : > { %2767 = vst.msk [vmem:[#allocation2 + $0x18] sm:$0xf] %vm2760_vm15, %v2725_v50 }
 0x2a2   : > { %v2733_v51 = vpop.permute.xlu0 %2732  ;;  %v2735_v52 = vpop.permute.xlu1 %2734  ;;  %v4395_v53 = vld [vmem:[#allocation2 + $0x30] sm:$0xff] }
 0x2a3   : > { %2771 = vst.msk [vmem:[#allocation2 + $0x28] sm:$0xf] %vm2760_vm15, %v2733_v51  ;;  %3699 = vmatmul.bf16.vlgmr.msra.gmra.mxu3 %v4395_v53  ;;  %v2929_v54 = vpop.permute.xlu2 %2928 }
 0x2a4   : > { %2772 = vst.msk [vmem:[#allocation2 + $0x2c] sm:$0xf] %vm2760_vm15, %v2735_v52 }
 0x2a5   : > { %2869 = vst.msk [vmem:[#allocation2 + $0x2c] sm:$0xf] %vm2857_vm0, %v2832_v45 }
 0x2a6   : > { %2966 = vst.msk [vmem:[#allocation2 + $0x2c] sm:$0xf] %vm2954_vm1, %v2929_v54 }
 0x2aa   : > { %v2913_v55 = vpop.permute.xlu0 %2912  ;;  %v2830_v56 = vpop.permute.xlu1 %2829 }
 0x2ab   : > { %2958 = vst.msk [vmem:[#allocation2 + $0xc] sm:$0xf] %vm2954_vm1, %v2913_v55  ;;  %v2822_v57 = vpop.permute.xlu2 %2821 }
 0x2ac   : > { %2868 = vst.msk [vmem:[#allocation2 + $0x28] sm:$0xf] %vm2857_vm0, %v2830_v56 }
 0x2ad   : > { %2864 = vst.msk [vmem:[#allocation2 + $0x18] sm:$0xf] %vm2857_vm0, %v2822_v57 }
 0x2b2   : > { %v3192_v58 = vpop.permute.xlu0 %3191  ;;  %v3194_v59 = vpop.permute.xlu1 %3193 }
 0x2b3   : > { %3238 = vst.msk [vmem:[#allocation2 + $0x8] sm:$0xf] %vm3235_vm3, %v3192_v58  ;;  %v3210_v60 = vpop.permute.xlu2 %3209 }
 0x2b4   : > { %3239 = vst.msk [vmem:[#allocation2 + $0xc] sm:$0xf] %vm3235_vm3, %v3194_v59 }
 0x2b5   : > { %3247 = vst.msk [vmem:[#allocation2 + $0x2c] sm:$0xf] %vm3235_vm3, %v3210_v60 }
 0x2ba   : > { %v2727_v61 = vpop.permute.xlu0 %2726  ;;  %v2927_v62 = vpop.permute.xlu1 %2926 }
 0x2bb   : > { %2768 = vst.msk [vmem:[#allocation2 + $0x1c] sm:$0xf] %vm2760_vm15, %v2727_v61  ;;  %v2919_v63 = vpop.permute.xlu2 %2918 }
 0x2bc   : > { %2965 = vst.msk [vmem:[#allocation2 + $0x28] sm:$0xf] %vm2954_vm1, %v2927_v62 }
 0x2bd   : > { %2961 = vst.msk [vmem:[#allocation2 + $0x18] sm:$0xf] %vm2954_vm1, %v2919_v63 }
 0x2c2   : > { %v3473_v0 = vpop.permute.xlu0 %3472  ;;  %v3475_v1 = vpop.permute.xlu1 %3474 }
 0x2c3   : > { %3519 = vst.msk [vmem:[#allocation2 + $0x8] sm:$0xf] %vm3516_vm4, %v3473_v0  ;;  %v3491_v2 = vpop.permute.xlu2 %3490 }
 0x2c4   : > { %3520 = vst.msk [vmem:[#allocation2 + $0xc] sm:$0xf] %vm3516_vm4, %v3475_v1 }
 0x2c5   : > { %3528 = vst.msk [vmem:[#allocation2 + $0x2c] sm:$0xf] %vm3516_vm4, %v3491_v2 }
 0x2ca   : > { %v2824_v3 = vpop.permute.xlu0 %2823  ;;  %v3208_v4 = vpop.permute.xlu1 %3207 }
 0x2cb   : > { %2865 = vst.msk [vmem:[#allocation2 + $0x1c] sm:$0xf] %vm2857_vm0, %v2824_v3  ;;  %v4390_v5 = vld [vmem:[#allocation2 + $0x8] sm:$0xff]  ;;  %v3200_v6 = vpop.permute.xlu2 %3199 }
 0x2cc   : > { %3246 = vst.msk [vmem:[#allocation2 + $0x28] sm:$0xf] %vm3235_vm3, %v3208_v4  ;;  %3674 = vmatmul.bf16.gmra.mxu0 %v4390_v5 }
 0x2cd   : > { %3242 = vst.msk [vmem:[#allocation2 + $0x18] sm:$0xf] %vm3235_vm3, %v3200_v6 }
 0x2d2   : > { %v2741_v7 = vpop.permute.xlu0 %2740  ;;  %v2743_v8 = vpop.permute.xlu1 %2742 }
 0x2d3   : > { %2775 = vst.msk [vmem:[#allocation2 + $0x38] sm:$0xf] %vm2760_vm15, %v2741_v7  ;;  %v2937_v11 = vpop.permute.xlu2 %2936 }
 0x2d4   : > { %2776 = vst.msk [vmem:[#allocation2 + $0x3c] sm:$0xf] %vm2760_vm15, %v2743_v8 }
 0x2da   : > { %v2921_v9 = vpop.permute.xlu0 %2920  ;;  %v3489_v10 = vpop.permute.xlu1 %3488 }
 0x2db   : > { %2962 = vst.msk [vmem:[#allocation2 + $0x1c] sm:$0xf] %vm2954_vm1, %v2921_v9  ;;  %v3216_v16 = vpop.permute.xlu2 %3215 }
 0x2dc   : > { %3527 = vst.msk [vmem:[#allocation2 + $0x28] sm:$0xf] %vm3516_vm4, %v3489_v10 }
 0x2e1   : > { %v3670_v14 = vpop.f32.mrf.mxu0 }
 0x2e2   : > { %v2838_v12 = vpop.permute.xlu0 %2837  ;;  %v2840_v13 = vpop.permute.xlu1 %2839  ;;  %v3710_v17 = vpack.c.bf16 %v3670_v14, %v3670_v14  ;;  %4127 = vst.msk [vmem:[%s5797_s16 + $0x2] sm:$0x1] %vm4071_vm2, %v3670_v14  ;;  %v5821_v29 = vperm.slane %v3670_v14, 0 }
 0x2e3   : > { %2872 = vst.msk [vmem:[#allocation2 + $0x38] sm:$0xf] %vm2857_vm0, %v2838_v12  ;;  %v4394_v15 = vld [vmem:[#allocation2 + $0x28] sm:$0xff]  ;;  %v3499_v24 = vpop.permute.xlu2 %3498 }
 0x2e4   : > { %2873 = vst.msk [vmem:[#allocation2 + $0x3c] sm:$0xf] %vm2857_vm0, %v2840_v13  ;;  %3694 = vmatmul.bf16.gmra.mxu2 %v4394_v15  ;;  %v3744_v46 = vsub.f32 %v3670_v14, %v5821_v29 }
 0x2e5   : > { %3727 = vst.msk [vmem:[%s5803_s29] sm:$0xf] %vm3726_vm5, %v3710_v17 }
 0x2e6   : > { %2970 = vst.msk [vmem:[#allocation2 + $0x3c] sm:$0xf] %vm2954_vm1, %v2937_v11  ;;  %v4073_v45 = vmul.f32 %v3744_v46, %v3744_v46  ;;  %v4034_v51 = vsel %vm4033_vm6, %v3744_v46, 0.0 }
 0x2e8   : > { %v4089_v56 = vsel %vm4033_vm6, %v4073_v45, 0.0 }
 0x2e9   : > { %v3672_v21 = vpop.f32.mrf.mxu0 }
 0x2ea   : > { %v3202_v18 = vpop.permute.xlu0 %3201  ;;  %v2935_v19 = vpop.permute.xlu1 %2934  ;;  %v3711_v20 = vpack.c.bf16 %v3672_v21, %v3672_v21 }
 0x2eb   : > { %3243 = vst.msk [vmem:[#allocation2 + $0x1c] sm:$0xf] %vm3235_vm3, %v3202_v18 }
 0x2ec   : > { %2969 = vst.msk [vmem:[#allocation2 + $0x38] sm:$0xf] %vm2954_vm1, %v2935_v19 }
 0x2ed   : > { %3250 = vst.msk [vmem:[#allocation2 + $0x38] sm:$0xf] %vm3235_vm3, %v3216_v16 }
 0x2ee   : > { %3728 = vst.msk [vmem:[%s5803_s29 + $0x4] sm:$0xf] %vm3726_vm5, %v3711_v20 }
 0x2f2   : > { %v3481_v22 = vpop.permute.xlu0 %3480  ;;  %v3483_v23 = vpop.permute.xlu1 %3482 }
 0x2f3   : > { %3523 = vst.msk [vmem:[#allocation2 + $0x18] sm:$0xf] %vm3516_vm4, %v3481_v22 }
 0x2f4   : > { %3524 = vst.msk [vmem:[#allocation2 + $0x1c] sm:$0xf] %vm3516_vm4, %v3483_v23 }
 0x2fa   : > { %v3218_v25 = vpop.permute.xlu0 %3217  ;;  %v3497_v26 = vpop.permute.xlu1 %3496 }
 0x2fb   : > { %3251 = vst.msk [vmem:[#allocation2 + $0x3c] sm:$0xf] %vm3235_vm3, %v3218_v25  ;;  %v4392_v27 = vld [vmem:[#allocation2 + $0x18] sm:$0xff] }
 0x2fc   : > { %3532 = vst.msk [vmem:[#allocation2 + $0x3c] sm:$0xf] %vm3516_vm4, %v3499_v24  ;;  %3684 = vmatmul.bf16.gmra.mxu1 %v4392_v27 }
 0x2fd   : > { %3531 = vst.msk [vmem:[#allocation2 + $0x38] sm:$0xf] %vm3516_vm4, %v3497_v26 }
 0x304   : > { %v4396_v28 = vld [vmem:[#allocation2 + $0x38] sm:$0xff] }
 0x305   : > { %3704 = vmatmul.bf16.gmra.mxu3 %v4396_v28 }
 0x306   : > { %v3690_v30 = vpop.f32.mrf.mxu2 }
 0x307   : > { %v3718_v31 = vpack.c.bf16 %v3690_v30, %v3690_v30  ;;  %v3752_v33 = vsub.f32 %v3690_v30, %v5821_v29 }
 0x309   : > { %3735 = vst.msk [vmem:[%s5803_s29 + $0x20] sm:$0xf] %vm3726_vm5, %v3718_v31  ;;  %v4081_v8 = vmul.f32 %v3752_v33, %v3752_v33  ;;  %v4049_v12 = vsel %vm4033_vm6, %v3752_v33, 0.0 }
 0x30b   : > { %v4104_v16 = vsel %vm4033_vm6, %v4081_v8, 0.0 }
 0x30e   : > { %v3692_v34 = vpop.f32.mrf.mxu2 }
 0x30f   : > { %v3719_v36 = vpack.c.bf16 %v3692_v34, %v3692_v34 }
 0x311   : > { %3736 = vst.msk [vmem:[%s5803_s29 + $0x24] sm:$0xf] %vm3726_vm5, %v3719_v36  ;;  %v3680_v35 = vpop.f32.mrf.mxu1 }
 0x312   : > { %v3714_v37 = vpack.c.bf16 %v3680_v35, %v3680_v35  ;;  %v3748_v38 = vsub.f32 %v3680_v35, %v5821_v29 }
 0x314   : > { %3731 = vst.msk [vmem:[%s5803_s29 + $0x10] sm:$0xf] %vm3726_vm5, %v3714_v37  ;;  %v4077_v50 = vmul.f32 %v3748_v38, %v3748_v38  ;;  %v4041_v55 = vsel %vm4033_vm6, %v3748_v38, 0.0 }
 0x316   : > { %v4096_v60 = vsel %vm4033_vm6, %v4077_v50, 0.0 }
 0x319   : > { %v3682_v39 = vpop.f32.mrf.mxu1 }
 0x31a   : > { %v3715_v40 = vpack.c.bf16 %v3682_v39, %v3682_v39 }
 0x31c   : > { %3732 = vst.msk [vmem:[%s5803_s29 + $0x14] sm:$0xf] %vm3726_vm5, %v3715_v40 }
 0x326   : > { %v3700_v41 = vpop.f32.mrf.mxu3 }
 0x327   : > { %v3722_v32 = vpack.c.bf16 %v3700_v41, %v3700_v41  ;;  %v3756_v42 = vsub.f32 %v3700_v41, %v5821_v29 }
 0x329   : > { %3739 = vst.msk [vmem:[%s5803_s29 + $0x30] sm:$0xf] %vm3726_vm5, %v3722_v32  ;;  %v4085_v18 = vmul.f32 %v3756_v42, %v3756_v42  ;;  %v4057_v23 = vsel %vm4033_vm6, %v3756_v42, 0.0 }
 0x32b   : > { %v4112_v28 = vsel %vm4033_vm6, %v4085_v18, 0.0 }
 0x32e   : > { %v3702_v43 = vpop.f32.mrf.mxu3 }
 0x32f   : > { %v3723_v44 = vpack.c.bf16 %v3702_v43, %v3702_v43 }
 0x331   : > { %3740 = vst.msk [vmem:[%s5803_s29 + $0x34] sm:$0xf] %vm3726_vm5, %v3723_v44 }
 0x349   : > { %v3675_v47 = vpop.f32.mrf.mxu0 }
 0x34a   : > { %v3712_v48 = vpack.c.bf16 %v3675_v47, %v3675_v47  ;;  %v3746_v49 = vsub.f32 %v3675_v47, %v5821_v29 }
 0x34c   : > { %3729 = vst.msk [vmem:[%s5803_s29 + $0x8] sm:$0xf] %vm3726_vm5, %v3712_v48  ;;  %v4037_v52 = vsel %vm4033_vm6, %v3746_v49, 0.0  ;;  %v4075_v53 = vmul.f32 %v3746_v49, %v3746_v49 }
 0x34d   : > { %v4038_v54 = vadd.f32 %v4037_v52, %v4034_v51 }
 0x34e   : > { %v4092_v57 = vsel %vm4033_vm6, %v4075_v53, 0.0 }
 0x34f   : > { %v4093_v58 = vadd.f32 %v4092_v57, %v4089_v56  ;;  %v4042_v59 = vadd.f32 %v4041_v55, %v4038_v54 }
 0x351   : > { %v3677_v61 = vpop.f32.mrf.mxu0  ;;  %v4097_v62 = vadd.f32 %v4096_v60, %v4093_v58 }
 0x352   : > { %v3713_v63 = vpack.c.bf16 %v3677_v61, %v3677_v61 }
 0x354   : > { %3730 = vst.msk [vmem:[%s5803_s29 + $0xc] sm:$0xf] %vm3726_vm5, %v3713_v63 }
 0x367   : > { %v3695_v0 = vpop.f32.mrf.mxu2 }
 0x368   : > { %v3720_v1 = vpack.c.bf16 %v3695_v0, %v3695_v0  ;;  %v3754_v5 = vsub.f32 %v3695_v0, %v5821_v29 }
 0x36a   : > { %3737 = vst.msk [vmem:[%s5803_s29 + $0x28] sm:$0xf] %vm3726_vm5, %v3720_v1  ;;  %v4083_v13 = vmul.f32 %v3754_v5, %v3754_v5  ;;  %v4053_v19 = vsel %vm4033_vm6, %v3754_v5, 0.0 }
 0x36c   : > { %v4108_v24 = vsel %vm4033_vm6, %v4083_v13, 0.0 }
 0x36f   : > { %v3697_v2 = vpop.f32.mrf.mxu2 }
 0x370   : > { %v3721_v3 = vpack.c.bf16 %v3697_v2, %v3697_v2 }
 0x372   : > { %3738 = vst.msk [vmem:[%s5803_s29 + $0x2c] sm:$0xf] %vm3726_vm5, %v3721_v3 }
 0x379   : > { %v3685_v4 = vpop.f32.mrf.mxu1 }
 0x37a   : > { %v3716_v6 = vpack.c.bf16 %v3685_v4, %v3685_v4  ;;  %v3750_v7 = vsub.f32 %v3685_v4, %v5821_v29 }
 0x37c   : > { %3733 = vst.msk [vmem:[%s5803_s29 + $0x18] sm:$0xf] %vm3726_vm5, %v3716_v6  ;;  %v4045_v9 = vsel %vm4033_vm6, %v3750_v7, 0.0  ;;  %v4079_v10 = vmul.f32 %v3750_v7, %v3750_v7 }
 0x37d   : > { %v4046_v11 = vadd.f32 %v4045_v9, %v4042_v59 }
 0x37e   : > { %v4100_v14 = vsel %vm4033_vm6, %v4079_v10, 0.0 }
 0x37f   : > { %v4050_v15 = vadd.f32 %v4049_v12, %v4046_v11  ;;  %v4101_v17 = vadd.f32 %v4100_v14, %v4097_v62 }
 0x381   : > { %v4105_v21 = vadd.f32 %v4104_v16, %v4101_v17  ;;  %v3687_v20 = vpop.f32.mrf.mxu1  ;;  %v4054_v22 = vadd.f32 %v4053_v19, %v4050_v15 }
 0x382   : > { %v3717_v25 = vpack.c.bf16 %v3687_v20, %v3687_v20 }
 0x383   : > { %v4058_v26 = vadd.f32 %v4057_v23, %v4054_v22  ;;  %v4109_v27 = vadd.f32 %v4108_v24, %v4105_v21 }
 0x384   : > { %3734 = vst.msk [vmem:[%s5803_s29 + $0x1c] sm:$0xf] %vm3726_vm5, %v3717_v25 }
 0x385   : > { %v4113_v30 = vadd.f32 %v4112_v28, %v4109_v27 }
 0x388   : > { %v3705_v31 = vpop.f32.mrf.mxu3 }
 0x389   : > { %v3724_v33 = vpack.c.bf16 %v3705_v31, %v3705_v31  ;;  %v3758_v34 = vsub.f32 %v3705_v31, %v5821_v29 }
 0x38b   : > { %3741 = vst.msk [vmem:[%s5803_s29 + $0x38] sm:$0xf] %vm3726_vm5, %v3724_v33  ;;  %v4061_v36 = vsel %vm4033_vm6, %v3758_v34, 0.0  ;;  %v4087_v35 = vmul.f32 %v3758_v34, %v3758_v34 }
 0x38c   : > { %v4062_v37 = vadd.f32 %v4061_v36, %v4058_v26 }
 0x38d   : > { %v4116_v38 = vsel %vm4033_vm6, %v4087_v35, 0.0 }
 0x38e   : > { %v4065_v39 = vrot.slane %v4062_v37, 4  ;;  %v4117_v40 = vadd.f32 %v4116_v38, %v4113_v30 }
 0x390   : > { %v4066_v41 = vadd.f32 %v4065_v39, %v4062_v37  ;;  %v4120_v32 = vrot.slane %v4117_v40, 4  ;;  %v3707_v42 = vpop.f32.mrf.mxu3 }
 0x391   : > { %v3725_v43 = vpack.c.bf16 %v3707_v42, %v3707_v42 }
 0x392   : > { %v4067_v44 = vrot.slane %v4066_v41, 2  ;;  %v4121_v46 = vadd.f32 %v4120_v32, %v4117_v40 }
 0x393   : > { %3742 = vst.msk [vmem:[%s5803_s29 + $0x3c] sm:$0xf] %vm3726_vm5, %v3725_v43 }
 0x394   : > { %v4068_v29 = vadd.f32 %v4067_v44, %v4066_v41  ;;  %v4122_v47 = vrot.slane %v4121_v46, 2 }
 0x396   : > { %v4069_v45 = vrot.slane %v4068_v29, 1  ;;  %v4123_v48 = vadd.f32 %v4122_v47, %v4121_v46 }
 0x398   : > { %v4070_v49 = vadd.f32 %v4069_v45, %v4068_v29  ;;  %v4124_v50 = vrot.slane %v4123_v48, 1 }
 0x39a   : > { %4072 = vst.msk [vmem:[%s5797_s16] sm:$0x1] %vm4071_vm2, %v4070_v49  ;;  %v4125_v51 = vadd.f32 %v4124_v50, %v4123_v48 }
 0x39c   : > { %4126 = vst.msk [vmem:[%s5797_s16 + $0x1] sm:$0x1] %vm4071_vm2, %v4125_v51 }
 0x39d PF: > { %s21_s13 = sadd.s32 1, %s4460_s13  }
 0x39e   : > { %p18_p6 = scmp.ge.s32.totalorder %s21_s13, 4  }
 0x3a0   :  { %20 = sbr.rel (!%p18_p6) target bundleno = 1 (0x1), region = 119 }

</bundles_post_ra>
